<compile_context>
chip_gen: v7x
topology: tpu7x:2x2x1
jax: 0.10.0
libtpu: 0.0.40
codegen_flags: <defaults>
</compile_context>

<pallas_src>
import functools

import numpy as np
import jax
import jax.numpy as jnp
from jax.experimental import pallas as pl
from jax.experimental.pallas import tpu as pltpu


OUT_W = 128  # lane-dense output slab width


# ------------------------------- kernel helpers -------------------------------

def _softplus(z):
    # Matches torch.nn.Softplus (beta=1, threshold=20).
    return jnp.where(z > 20.0, z, jnp.log1p(jnp.exp(jnp.minimum(z, 20.0))))


def _layernorm(h, g, b, eps=1e-5):
    # NOTE: zero-padded batch rows hit var == 0 here and rely on eps to stay finite
    # (they are trimmed in the wrapper).
    mu = jnp.mean(h, axis=-1, keepdims=True)
    var = jnp.mean((h - mu) ** 2, axis=-1, keepdims=True)
    return (h - mu) * jax.lax.rsqrt(var + eps) * g + b


# --------------------------------- the kernel ---------------------------------

def mf_kernel(x_ref,
              # fused first layer over x: [wl1 | wh1 | wu01 | wu11 | wc1a]
              w1f, b1f,
              # block-diagonal [wl2 | wh2] second layer, its bias, high 3rd layer
              wlh2, blh2, wh3,
              # fused (block-diagonal) uncertainty hidden layer + VPU output row
              wu2f, wu3row,
              # nonlinear correlation (y_low half of wc1, then wc2/wc3/wc4)
              wc1b, wc2, wc3, wc4,
              # packed bias / gamma / beta slabs
              b128, b32,
              # single lane-dense output slab
              out_ref,
              *, D, HL, HH, HU, HC):
    f32 = jnp.float32
    bf16 = jnp.bfloat16
    NH = HL + HH + 2 * HU          # relu'd "head" columns of the fused first layer

    xb = x_ref[...].astype(bf16)

    # ---- fused first layer: one (TB, D) x (D, NH+HC) matmul -------------------
    a1 = jnp.dot(xb, w1f[...], preferred_element_type=f32) + b1f[...]
    a1r = jnp.maximum(a1[:, 0:NH], 0.0).astype(bf16)   # single bf16 cast of activations
    cx = a1[:, NH:NH + HC]                             # raw x-half of correlation (bc1 folded in)

    # ---- block-diagonal [wl2 | wh2] over the lane-adjacent a1[:, 0:HL+HH] -----
    h12 = jnp.dot(a1r[:, 0:HL + HH], wlh2[...], preferred_element_type=f32) + blh2[...]
    y_low = h12[:, 0:D]                                # low-fidelity output (f32)
    h2 = jnp.maximum(h12[:, D:D + HH], 0.0)            # high-fidelity hidden
    y_high = jnp.dot(h2.astype(bf16), wh3[...], preferred_element_type=f32) + b32[0:1, :]

    # ---- uncertainty heads: fused hidden layer + VPU*XLU final layer ----------
    uh = a1r[:, HL + HH:NH]
    u2 = jnp.maximum(jnp.dot(uh, wu2f[...], preferred_element_type=f32) + b128[0:1, :], 0.0)
    prod = u2 * wu3row[...]                            # VPU; avoids an N=2 MXU matmul
    z_low = jnp.sum(prod[:, 0:HU], axis=-1, keepdims=True) + b128[9:10, 0:1]
    z_high = jnp.sum(prod[:, HU:2 * HU], axis=-1, keepdims=True) + b128[9:10, 1:2]

    # ---- nonlinear correlation (lane concat replaced by split weight) ---------
    c = cx + jnp.dot(y_low.astype(bf16), wc1b[...], preferred_element_type=f32)
    c = _layernorm(jnp.maximum(c, 0.0), b128[1:2, :], b128[2:3, :])
    c = jnp.dot(c.astype(bf16), wc2[...], preferred_element_type=f32) + b128[3:4, :]
    c = _layernorm(jnp.maximum(c, 0.0), b128[4:5, :], b128[5:6, :])
    c = jnp.dot(c.astype(bf16), wc3[...], preferred_element_type=f32) + b128[6:7, :]
    c = _layernorm(jnp.maximum(c, 0.0), b128[7:8, :], b128[8:9, :])
    corr = jnp.dot(c.astype(bf16), wc4[...], preferred_element_type=f32) + b32[1:2, :]

    # ---- single lane-dense (TB, 128) output slab ------------------------------
    out_ref[:, 0:D] = y_low
    out_ref[:, D:2 * D] = y_high + corr
    out_ref[:, 2 * D:2 * D + 1] = _softplus(z_low)
    out_ref[:, 2 * D + 1:2 * D + 2] = _softplus(z_high)
    if OUT_W > 2 * D + 2:  # keep pad lanes deterministic (never read by the wrapper)
        out_ref[:, 2 * D + 2:] = jnp.zeros(
            (out_ref.shape[0], OUT_W - (2 * D + 2)), f32)


# ------------------------------ parameter setup -------------------------------

def param_layout(D=32, HL=64, HH=64, HU=64, HC=128):
    return [
        ('wl1', (D, HL)), ('bl1', (1, HL)), ('wl2', (HL, D)), ('bl2', (1, D)),
        ('wh1', (D, HH)), ('bh1', (1, HH)), ('wh2', (HH, HH)), ('bh2', (1, HH)),
        ('wh3', (HH, D)), ('bh3', (1, D)),
        ('wu01', (D, HU)), ('bu01', (1, HU)), ('wu02', (HU, HU)), ('bu02', (1, HU)),
        ('wu03', (HU, 1)), ('bu03', (1, 1)),
        ('wu11', (D, HU)), ('bu11', (1, HU)), ('wu12', (HU, HU)), ('bu12', (1, HU)),
        ('wu13', (HU, 1)), ('bu13', (1, 1)),
        ('wc1', (2 * D, HC)), ('bc1', (1, HC)), ('g1', (1, HC)), ('be1', (1, HC)),
        ('wc2', (HC, HC)), ('bc2', (1, HC)), ('g2', (1, HC)), ('be2', (1, HC)),
        ('wc3', (HC, HC)), ('bc3', (1, HC)), ('g3', (1, HC)), ('be3', (1, HC)),
        ('wc4', (HC, D)), ('bc4', (1, D)),
    ]


def init_params(key, D=32, HL=64, HH=64, HU=64, HC=128):
    """Random f32 params in the natural (unfused) PyTorch-like layout."""
    params = {}
    for name, shape in param_layout(D, HL, HH, HU, HC):
        key, sub = jax.random.split(key)
        if name.startswith('w'):
            fan_in = shape[0]
            params[name] = (jax.random.normal(sub, shape, jnp.float32)
                            / np.sqrt(fan_in)).astype(jnp.float32)
        elif name.startswith('g'):
            params[name] = (1.0 + 0.1 * jax.random.normal(sub, shape, jnp.float32))
        else:
            params[name] = 0.1 * jax.random.normal(sub, shape, jnp.float32)
    return params


def pack_params(p):
    """Fuse / pack the natural params into the kernel layout.  Run ONCE per param set."""
    bf16 = jnp.bfloat16
    D, HL = p['wl1'].shape
    HH = p['wh1'].shape[1]
    HU = p['wu01'].shape[1]
    HC = p['wc1'].shape[1]
    assert 2 * HU == HC, "bias-slab packing assumes 2*HU == HC"
    assert OUT_W >= 2 * D + 2, "output slab too narrow"

    wc1a = p['wc1'][:D, :]
    wc1b = p['wc1'][D:, :]

    # Fused first layer over x (correlation x-half folded in; bc1 folded into bias).
    w1f = jnp.concatenate([p['wl1'], p['wh1'], p['wu01'], p['wu11'], wc1a], axis=1).astype(bf16)
    b1f = jnp.concatenate([p['bl1'], p['bh1'], p['bu01'], p['bu11'], p['bc1']], axis=1)

    # Block-diagonal [wl2 | wh2] second layer (output padded to 128 lanes).
    wlh2 = jnp.zeros((HL + HH, OUT_W), jnp.float32)
    wlh2 = wlh2.at[:HL, :D].set(p['wl2']).at[HL:, D:D + HH].set(p['wh2']).astype(bf16)
    blh2 = jnp.zeros((1, OUT_W), jnp.float32)
    blh2 = blh2.at[:, :D].set(p['bl2']).at[:, D:D + HH].set(p['bh2'])

    # Fused block-diagonal uncertainty hidden layer + packed output row (VPU path).
    wu2f = jnp.zeros((2 * HU, 2 * HU), jnp.float32)
    wu2f = wu2f.at[:HU, :HU].set(p['wu02']).at[HU:, HU:].set(p['wu12']).astype(bf16)
    wu3row = jnp.concatenate([p['wu03'], p['wu13']], axis=0).reshape(1, 2 * HU)  # f32

    # Packed bias / gamma / beta slabs (row-stacked, lane-dense).
    bu2f = jnp.concatenate([p['bu02'], p['bu12']], axis=1)                  # (1, 128)
    bu3p = jnp.zeros((1, HC), jnp.float32)
    bu3p = bu3p.at[0, 0].set(p['bu03'][0, 0]).at[0, 1].set(p['bu13'][0, 0])
    b128 = jnp.concatenate([bu2f, p['g1'], p['be1'], p['bc2'], p['g2'], p['be2'],
                            p['bc3'], p['g3'], p['be3'], bu3p], axis=0)     # (10, 128)
    b32 = jnp.concatenate([p['bh3'], p['bc4']], axis=0)                     # (2, D)

    packed = (w1f, b1f, wlh2, blh2, p['wh3'].astype(bf16),
              wu2f, wu3row,
              wc1b.astype(bf16), p['wc2'].astype(bf16), p['wc3'].astype(bf16),
              p['wc4'].astype(bf16),
              b128, b32)
    dims = dict(D=D, HL=HL, HH=HH, HU=HU, HC=HC)
    return packed, dims


# ------------------------------ fidelity selector ------------------------------

def select_fidelity_level(num_levels=3, accuracy_requirement=0.9, budget=None):
    # FidelitySelector(input_dim=None) -> non-adaptive table lookup (pure Python scalar).
    expected_accuracy = np.array([0.7, 0.9, 0.99])[:num_levels]
    computational_costs = np.array([1.0, 10.0, 100.0])[:num_levels]
    valid = np.where(expected_accuracy >= accuracy_requirement)[0]
    if len(valid) > 0:
        if budget is not None:
            affordable = valid[computational_costs[valid] <= budget]
            return int(affordable[0]) if len(affordable) > 0 else 0
        return int(valid[0])
    return num_levels - 1


# ---------------------------------- wrapper ------------------------------------

def _round_up(n, m):
    return ((n + m - 1) // m) * m


@functools.partial(jax.jit, static_argnames=("D", "HL", "HH", "HU", "HC", "block_b"))
def _forward_jit(x, packed, *, D, HL, HH, HU, HC, block_b=256):
    B = x.shape[0]
    # Batch tile: multiple of 8 (sublane), capped at block_b, and chosen so the grid
    # has >= 2 steps whenever possible (keeps both v7x TensorCores busy via the
    # "parallel" batch axis).  Use block_b=128 on v5e.
    TB = max(8, min(block_b, _round_up((B + 1) // 2, 8)))
    B_pad = _round_up(B, TB)
    xp = jnp.pad(x, ((0, B_pad - B), (0, 0))) if B_pad != B else x
    grid = (B_pad // TB,)

    kernel = functools.partial(mf_kernel, D=D, HL=HL, HH=HH, HU=HU, HC=HC)

    def resident(a):
        # Constant block index -> stays VMEM-resident across grid iterations.
        return pl.BlockSpec(a.shape, lambda i: (0, 0))

    out = pl.pallas_call(
        kernel,
        out_shape=jax.ShapeDtypeStruct((B_pad, OUT_W), jnp.float32),
        grid=grid,
        in_specs=[pl.BlockSpec((TB, D), lambda i: (i, 0))] + [resident(a) for a in packed],
        out_specs=pl.BlockSpec((TB, OUT_W), lambda i: (i, 0)),
        compiler_params=pltpu.CompilerParams(
            dimension_semantics=("parallel",)),
    )(xp, *packed)

    # Trim padded rows, split the lane-packed output slab.
    y_low = out[:B, 0:D]
    y_corr = out[:B, D:2 * D]
    u_low = out[:B, 2 * D:2 * D + 1]
    u_high = out[:B, 2 * D + 1:2 * D + 2]
    return y_low, y_corr, u_low, u_high


def multi_fidelity_forward(x, packed, dims, fidelity_level=None,
                           return_all_levels=False, block_b=256):
    if fidelity_level is None:
        fidelity_level = select_fidelity_level()

    y_low, y_corr, u_low, u_high = _forward_jit(x, packed, block_b=block_b, **dims)

    outputs = {'low_fidelity': y_low, 'low_uncertainty': u_low}
    if fidelity_level > 0 or return_all_levels:
        # With 2 concrete models, only level_1 is ever materialized.
        if fidelity_level >= 1:
            outputs['level_1'] = y_corr
            outputs['uncertainty_1'] = u_high
    outputs['prediction'] = outputs.get(f'level_{fidelity_level}', y_low)
    outputs['fidelity_level'] = fidelity_level
    return outputs


# ----------------------------- pure-JAX references ------------------------------

def reference_forward(x, p):
    """Exact f32 reference of the PyTorch module math (eval mode)."""
    lin = lambda h, w, b: h @ w + b
    relu = lambda h: jnp.maximum(h, 0.0)
    sp = lambda z: jnp.where(z > 20.0, z, jnp.log1p(jnp.exp(jnp.minimum(z, 20.0))))

    def ln(h, g, b):
        mu = h.mean(-1, keepdims=True)
        var = ((h - mu) ** 2).mean(-1, keepdims=True)
        return (h - mu) / jnp.sqrt(var + 1e-5) * g + b

    h = relu(lin(x, p['wl1'], p['bl1'])); y_low = lin(h, p['wl2'], p['bl2'])
    u = relu(lin(x, p['wu01'], p['bu01'])); u = relu(lin(u, p['wu02'], p['bu02']))
    u_low = sp(lin(u, p['wu03'], p['bu03']))
    h1 = relu(lin(x, p['wh1'], p['bh1'])); h2 = relu(lin(h1, p['wh2'], p['bh2']))
    y_high = lin(h2, p['wh3'], p['bh3'])
    c = jnp.concatenate([x, y_low], -1)
    c = ln(relu(lin(c, p['wc1'], p['bc1'])), p['g1'], p['be1'])
    c = ln(relu(lin(c, p['wc2'], p['bc2'])), p['g2'], p['be2'])
    c = ln(relu(lin(c, p['wc3'], p['bc3'])), p['g3'], p['be3'])
    y_corr = y_high + lin(c, p['wc4'], p['bc4'])
    u = relu(lin(x, p['wu11'], p['bu11'])); u = relu(lin(u, p['wu12'], p['bu12']))
    u_high = sp(lin(u, p['wu13'], p['bu13']))
    return y_low, u_low, y_corr, u_high


def reference_forward_mixed(x, p):
    """Reference with the kernel's mixed precision (bf16 matmuls, f32 accum/elementwise)."""
    bf16 = jnp.bfloat16
    D = x.shape[1]
    mm = lambda h, w: jnp.dot(h.astype(bf16), w.astype(bf16),
                              preferred_element_type=jnp.float32)
    relu = lambda h: jnp.maximum(h, 0.0)
    sp = lambda z: jnp.where(z > 20.0, z, jnp.log1p(jnp.exp(jnp.minimum(z, 20.0))))

    def ln(h, g, b):
        mu = h.mean(-1, keepdims=True)
        var = ((h - mu) ** 2).mean(-1, keepdims=True)
        return (h - mu) * jax.lax.rsqrt(var + 1e-5) * g + b

    h = relu(mm(x, p['wl1']) + p['bl1']); y_low = mm(h, p['wl2']) + p['bl2']
    u = relu(mm(x, p['wu01']) + p['bu01']); u = relu(mm(u, p['wu02']) + p['bu02'])
    u_low = sp(u @ p['wu03'] + p['bu03'])                       # final layer stays f32 (VPU path)
    h1 = relu(mm(x, p['wh1']) + p['bh1']); h2 = relu(mm(h1, p['wh2']) + p['bh2'])
    y_high = mm(h2, p['wh3']) + p['bh3']
    c = mm(x, p['wc1'][:D]) + mm(y_low, p['wc1'][D:]) + p['bc1']
    c = ln(relu(c), p['g1'], p['be1'])
    c = ln(relu(mm(c, p['wc2']) + p['bc2']), p['g2'], p['be2'])
    c = ln(relu(mm(c, p['wc3']) + p['bc3']), p['g3'], p['be3'])
    y_corr = y_high + mm(c, p['wc4']) + p['bc4']
    u = relu(mm(x, p['wu11']) + p['bu11']); u = relu(mm(u, p['wu12']) + p['bu12'])
    u_high = sp(u @ p['wu13'] + p['bu13'])
    return y_low, u_low, y_corr, u_high


# ------------------------------------ main --------------------------------------

if __name__ == "__main__":
    key = jax.random.PRNGKey(0)
    kx, kp = jax.random.split(key)

    # B=200 exercises the batch grid (2 tiles) and padded-row trimming.
    B, D = 200, 32
    x = jax.random.normal(kx, (B, D), jnp.float32)
    params = init_params(kp, D=D)

    # Parameter packing is done ONCE per parameter set (hoisted out of the call path).
    packed, dims = pack_params(params)

    outputs = multi_fidelity_forward(x, packed, dims)
    jax.block_until_ready(outputs['prediction'])

    # Tight check against a mixed-precision (bf16 matmul, f32 accum) reference of the
    # same math, plus a looser check against the exact f32 reference.
    got = (outputs['low_fidelity'], outputs['low_uncertainty'],
           outputs['prediction'], outputs['uncertainty_1'])
    ref_mixed = reference_forward_mixed(x, params)
    ref_f32 = reference_forward(x, params)
    for g, rm in zip(got, ref_mixed):
        np.testing.assert_allclose(np.asarray(g), np.asarray(rm), rtol=2e-2, atol=2e-2)
    for g, rf in zip(got, ref_f32):
        np.testing.assert_allclose(np.asarray(g), np.asarray(rf), rtol=6e-2, atol=6e-2)

    assert outputs['fidelity_level'] == 1
    assert outputs['prediction'].shape == (B, D)
    assert outputs['low_uncertainty'].shape == (B, 1)
    assert outputs['uncertainty_1'].shape == (B, 1)

    print("KERNEL_OK")
</pallas_src>

<mosaic_0001>
module attributes {stable_mosaic.version = 11 : i64} {
  func.func @mf_kernel(%arg0: i32, %arg1: memref<104x32xf32, #tpu.memory_space<vmem>>, %arg2: memref<32x384xbf16, #tpu.memory_space<vmem>>, %arg3: memref<1x384xf32, #tpu.memory_space<vmem>>, %arg4: memref<128x128xbf16, #tpu.memory_space<vmem>>, %arg5: memref<1x128xf32, #tpu.memory_space<vmem>>, %arg6: memref<64x32xbf16, #tpu.memory_space<vmem>>, %arg7: memref<128x128xbf16, #tpu.memory_space<vmem>>, %arg8: memref<1x128xf32, #tpu.memory_space<vmem>>, %arg9: memref<32x128xbf16, #tpu.memory_space<vmem>>, %arg10: memref<128x128xbf16, #tpu.memory_space<vmem>>, %arg11: memref<128x128xbf16, #tpu.memory_space<vmem>>, %arg12: memref<128x32xbf16, #tpu.memory_space<vmem>>, %arg13: memref<10x128xf32, #tpu.memory_space<vmem>>, %arg14: memref<2x32xf32, #tpu.memory_space<vmem>>, %arg15: memref<104x128xf32, #tpu.memory_space<vmem>>) attributes {dimension_semantics = [#tpu.dimension_semantics<parallel>], iteration_bounds = array<i64: 2>, scalar_prefetch = 0 : i64, scratch_operands = 0 : i64, tpu.core_type = #tpu.core_type<tc>, window_params = [{transform_indices = @transform_0, window_bounds = array<i64: 104, 32>}, {pipeline_mode = #tpu.pipeline_mode<synchronous>, transform_indices = @transform_1, window_bounds = array<i64: 32, 384>}, {pipeline_mode = #tpu.pipeline_mode<synchronous>, transform_indices = @transform_2, window_bounds = array<i64: 1, 384>}, {pipeline_mode = #tpu.pipeline_mode<synchronous>, transform_indices = @transform_3, window_bounds = array<i64: 128, 128>}, {pipeline_mode = #tpu.pipeline_mode<synchronous>, transform_indices = @transform_4, window_bounds = array<i64: 1, 128>}, {pipeline_mode = #tpu.pipeline_mode<synchronous>, transform_indices = @transform_5, window_bounds = array<i64: 64, 32>}, {pipeline_mode = #tpu.pipeline_mode<synchronous>, transform_indices = @transform_6, window_bounds = array<i64: 128, 128>}, {pipeline_mode = #tpu.pipeline_mode<synchronous>, transform_indices = @transform_7, window_bounds = array<i64: 1, 128>}, {pipeline_mode = #tpu.pipeline_mode<synchronous>, transform_indices = @transform_8, window_bounds = array<i64: 32, 128>}, {pipeline_mode = #tpu.pipeline_mode<synchronous>, transform_indices = @transform_9, window_bounds = array<i64: 128, 128>}, {pipeline_mode = #tpu.pipeline_mode<synchronous>, transform_indices = @transform_10, window_bounds = array<i64: 128, 128>}, {pipeline_mode = #tpu.pipeline_mode<synchronous>, transform_indices = @transform_11, window_bounds = array<i64: 128, 32>}, {pipeline_mode = #tpu.pipeline_mode<synchronous>, transform_indices = @transform_12, window_bounds = array<i64: 10, 128>}, {pipeline_mode = #tpu.pipeline_mode<synchronous>, transform_indices = @transform_13, window_bounds = array<i64: 2, 32>}, {transform_indices = @transform_14, window_bounds = array<i64: 104, 128>}]} {
    %c0 = arith.constant 0 : index
    %c0_0 = arith.constant 0 : index
    %0 = vector.load %arg1[%c0, %c0_0] : memref<104x32xf32, #tpu.memory_space<vmem>>, vector<104x32xf32>
    %1 = arith.truncf %0 : vector<104x32xf32> to vector<104x32xbf16>
    %c0_1 = arith.constant 0 : index
    %c0_2 = arith.constant 0 : index
    %2 = vector.load %arg2[%c0_1, %c0_2] : memref<32x384xbf16, #tpu.memory_space<vmem>>, vector<32x384xbf16>
    %cst = arith.constant dense<0.000000e+00> : vector<104x384xf32>
    %3 = tpu.matmul %1, %2, %cst {dimension_numbers = #tpu.dot_dimension_numbers<[1], [0], [0], [1], [0, 0, 1, 1], [], []>} : vector<104x32xbf16>, vector<32x384xbf16>, vector<104x384xf32> -> vector<104x384xf32>
    %c0_3 = arith.constant 0 : index
    %c0_4 = arith.constant 0 : index
    %4 = vector.load %arg3[%c0_3, %c0_4] : memref<1x384xf32, #tpu.memory_space<vmem>>, vector<1x384xf32>
    %5 = vector.broadcast %4 : vector<1x384xf32> to vector<104x384xf32>
    %6 = arith.addf %3, %5 : vector<104x384xf32>
    %7 = vector.extract_strided_slice %6 {offsets = [0, 0], sizes = [104, 256], strides = [1, 1]} : vector<104x384xf32> to vector<104x256xf32>
    %cst_5 = arith.constant 0.000000e+00 : f32
    %8 = vector.broadcast %cst_5 : f32 to vector<104x256xf32>
    %9 = arith.maximumf %7, %8 : vector<104x256xf32>
    %10 = arith.truncf %9 : vector<104x256xf32> to vector<104x256xbf16>
    %11 = vector.extract_strided_slice %6 {offsets = [0, 256], sizes = [104, 128], strides = [1, 1]} : vector<104x384xf32> to vector<104x128xf32>
    %12 = vector.extract_strided_slice %10 {offsets = [0, 0], sizes = [104, 128], strides = [1, 1]} : vector<104x256xbf16> to vector<104x128xbf16>
    %c0_6 = arith.constant 0 : index
    %c0_7 = arith.constant 0 : index
    %13 = vector.load %arg4[%c0_6, %c0_7] : memref<128x128xbf16, #tpu.memory_space<vmem>>, vector<128x128xbf16>
    %cst_8 = arith.constant dense<0.000000e+00> : vector<104x128xf32>
    %14 = tpu.matmul %12, %13, %cst_8 {dimension_numbers = #tpu.dot_dimension_numbers<[1], [0], [0], [1], [0, 0, 1, 1], [], []>} : vector<104x128xbf16>, vector<128x128xbf16>, vector<104x128xf32> -> vector<104x128xf32>
    %c0_9 = arith.constant 0 : index
    %c0_10 = arith.constant 0 : index
    %15 = vector.load %arg5[%c0_9, %c0_10] : memref<1x128xf32, #tpu.memory_space<vmem>>, vector<1x128xf32>
    %16 = vector.broadcast %15 : vector<1x128xf32> to vector<104x128xf32>
    %17 = arith.addf %14, %16 : vector<104x128xf32>
    %18 = vector.extract_strided_slice %17 {offsets = [0, 0], sizes = [104, 32], strides = [1, 1]} : vector<104x128xf32> to vector<104x32xf32>
    %19 = vector.extract_strided_slice %17 {offsets = [0, 32], sizes = [104, 64], strides = [1, 1]} : vector<104x128xf32> to vector<104x64xf32>
    %cst_11 = arith.constant 0.000000e+00 : f32
    %20 = vector.broadcast %cst_11 : f32 to vector<104x64xf32>
    %21 = arith.maximumf %19, %20 : vector<104x64xf32>
    %22 = arith.truncf %21 : vector<104x64xf32> to vector<104x64xbf16>
    %c0_12 = arith.constant 0 : index
    %c0_13 = arith.constant 0 : index
    %23 = vector.load %arg6[%c0_12, %c0_13] : memref<64x32xbf16, #tpu.memory_space<vmem>>, vector<64x32xbf16>
    %cst_14 = arith.constant dense<0.000000e+00> : vector<104x32xf32>
    %24 = tpu.matmul %22, %23, %cst_14 {dimension_numbers = #tpu.dot_dimension_numbers<[1], [0], [0], [1], [0, 0, 1, 1], [], []>} : vector<104x64xbf16>, vector<64x32xbf16>, vector<104x32xf32> -> vector<104x32xf32>
    %c0_15 = arith.constant 0 : index
    %c0_16 = arith.constant 0 : index
    %25 = vector.load %arg14[%c0_15, %c0_16] : memref<2x32xf32, #tpu.memory_space<vmem>>, vector<1x32xf32>
    %26 = vector.broadcast %25 : vector<1x32xf32> to vector<104x32xf32>
    %27 = arith.addf %24, %26 : vector<104x32xf32>
    %28 = vector.extract_strided_slice %10 {offsets = [0, 128], sizes = [104, 128], strides = [1, 1]} : vector<104x256xbf16> to vector<104x128xbf16>
    %c0_17 = arith.constant 0 : index
    %c0_18 = arith.constant 0 : index
    %29 = vector.load %arg7[%c0_17, %c0_18] : memref<128x128xbf16, #tpu.memory_space<vmem>>, vector<128x128xbf16>
    %cst_19 = arith.constant dense<0.000000e+00> : vector<104x128xf32>
    %30 = tpu.matmul %28, %29, %cst_19 {dimension_numbers = #tpu.dot_dimension_numbers<[1], [0], [0], [1], [0, 0, 1, 1], [], []>} : vector<104x128xbf16>, vector<128x128xbf16>, vector<104x128xf32> -> vector<104x128xf32>
    %c0_20 = arith.constant 0 : index
    %c0_21 = arith.constant 0 : index
    %31 = vector.load %arg13[%c0_20, %c0_21] : memref<10x128xf32, #tpu.memory_space<vmem>>, vector<1x128xf32>
    %32 = vector.broadcast %31 : vector<1x128xf32> to vector<104x128xf32>
    %33 = arith.addf %30, %32 : vector<104x128xf32>
    %cst_22 = arith.constant 0.000000e+00 : f32
    %34 = vector.broadcast %cst_22 : f32 to vector<104x128xf32>
    %35 = arith.maximumf %33, %34 : vector<104x128xf32>
    %c0_23 = arith.constant 0 : index
    %c0_24 = arith.constant 0 : index
    %36 = vector.load %arg8[%c0_23, %c0_24] : memref<1x128xf32, #tpu.memory_space<vmem>>, vector<1x128xf32>
    %37 = vector.broadcast %36 : vector<1x128xf32> to vector<104x128xf32>
    %38 = arith.mulf %35, %37 : vector<104x128xf32>
    %39 = vector.extract_strided_slice %38 {offsets = [0, 0], sizes = [104, 64], strides = [1, 1]} : vector<104x128xf32> to vector<104x64xf32>
    %cst_25 = arith.constant dense<0.000000e+00> : vector<104xf32>
    %40 = vector.multi_reduction <add>, %39, %cst_25 [1] : vector<104x64xf32> to vector<104xf32>
    %41 = vector.shape_cast %40 : vector<104xf32> to vector<104x1xf32>
    %c9 = arith.constant 9 : index
    %c0_26 = arith.constant 0 : index
    %42 = vector.load %arg13[%c9, %c0_26] : memref<10x128xf32, #tpu.memory_space<vmem>>, vector<1x1xf32>
    %43 = vector.broadcast %42 : vector<1x1xf32> to vector<104x1xf32>
    %44 = arith.addf %41, %43 : vector<104x1xf32>
    %45 = vector.extract_strided_slice %38 {offsets = [0, 64], sizes = [104, 64], strides = [1, 1]} : vector<104x128xf32> to vector<104x64xf32>
    %cst_27 = arith.constant dense<0.000000e+00> : vector<104xf32>
    %46 = vector.multi_reduction <add>, %45, %cst_27 [1] : vector<104x64xf32> to vector<104xf32>
    %47 = vector.shape_cast %46 : vector<104xf32> to vector<104x1xf32>
    %c9_28 = arith.constant 9 : index
    %c1 = arith.constant 1 : index
    %48 = vector.load %arg13[%c9_28, %c1] : memref<10x128xf32, #tpu.memory_space<vmem>>, vector<1x1xf32>
    %49 = vector.broadcast %48 : vector<1x1xf32> to vector<104x1xf32>
    %50 = arith.addf %47, %49 : vector<104x1xf32>
    %51 = arith.truncf %18 : vector<104x32xf32> to vector<104x32xbf16>
    %c0_29 = arith.constant 0 : index
    %c0_30 = arith.constant 0 : index
    %52 = vector.load %arg9[%c0_29, %c0_30] : memref<32x128xbf16, #tpu.memory_space<vmem>>, vector<32x128xbf16>
    %cst_31 = arith.constant dense<0.000000e+00> : vector<104x128xf32>
    %53 = tpu.matmul %51, %52, %cst_31 {dimension_numbers = #tpu.dot_dimension_numbers<[1], [0], [0], [1], [0, 0, 1, 1], [], []>} : vector<104x32xbf16>, vector<32x128xbf16>, vector<104x128xf32> -> vector<104x128xf32>
    %54 = arith.addf %11, %53 : vector<104x128xf32>
    %cst_32 = arith.constant 0.000000e+00 : f32
    %55 = vector.broadcast %cst_32 : f32 to vector<104x128xf32>
    %56 = arith.maximumf %54, %55 : vector<104x128xf32>
    %c1_33 = arith.constant 1 : index
    %c0_34 = arith.constant 0 : index
    %57 = vector.load %arg13[%c1_33, %c0_34] : memref<10x128xf32, #tpu.memory_space<vmem>>, vector<1x128xf32>
    %c2 = arith.constant 2 : index
    %c0_35 = arith.constant 0 : index
    %58 = vector.load %arg13[%c2, %c0_35] : memref<10x128xf32, #tpu.memory_space<vmem>>, vector<1x128xf32>
    %cst_36 = arith.constant dense<0.000000e+00> : vector<104xf32>
    %59 = vector.multi_reduction <add>, %56, %cst_36 [1] : vector<104x128xf32> to vector<104xf32>
    %60 = vector.shape_cast %59 : vector<104xf32> to vector<104x1xf32>
    %cst_37 = arith.constant 1.280000e+02 : f32
    %61 = vector.broadcast %cst_37 : f32 to vector<104x1xf32>
    %62 = arith.divf %60, %61 : vector<104x1xf32>
    %63 = vector.broadcast %62 : vector<104x1xf32> to vector<104x128xf32>
    %64 = arith.subf %56, %63 : vector<104x128xf32>
    %65 = arith.mulf %64, %64 : vector<104x128xf32>
    %cst_38 = arith.constant dense<0.000000e+00> : vector<104xf32>
    %66 = vector.multi_reduction <add>, %65, %cst_38 [1] : vector<104x128xf32> to vector<104xf32>
    %67 = vector.shape_cast %66 : vector<104xf32> to vector<104x1xf32>
    %cst_39 = arith.constant 1.280000e+02 : f32
    %68 = vector.broadcast %cst_39 : f32 to vector<104x1xf32>
    %69 = arith.divf %67, %68 : vector<104x1xf32>
    %70 = vector.broadcast %62 : vector<104x1xf32> to vector<104x128xf32>
    %71 = arith.subf %56, %70 : vector<104x128xf32>
    %cst_40 = arith.constant 9.99999974E-6 : f32
    %72 = vector.broadcast %cst_40 : f32 to vector<104x1xf32>
    %73 = arith.addf %69, %72 : vector<104x1xf32>
    %74 = math.rsqrt %73 : vector<104x1xf32>
    %75 = vector.broadcast %74 : vector<104x1xf32> to vector<104x128xf32>
    %76 = arith.mulf %71, %75 : vector<104x128xf32>
    %77 = vector.broadcast %57 : vector<1x128xf32> to vector<104x128xf32>
    %78 = arith.mulf %76, %77 : vector<104x128xf32>
    %79 = vector.broadcast %58 : vector<1x128xf32> to vector<104x128xf32>
    %80 = arith.addf %78, %79 : vector<104x128xf32>
    %81 = arith.truncf %80 : vector<104x128xf32> to vector<104x128xbf16>
    %c0_41 = arith.constant 0 : index
    %c0_42 = arith.constant 0 : index
    %82 = vector.load %arg10[%c0_41, %c0_42] : memref<128x128xbf16, #tpu.memory_space<vmem>>, vector<128x128xbf16>
    %cst_43 = arith.constant dense<0.000000e+00> : vector<104x128xf32>
    %83 = tpu.matmul %81, %82, %cst_43 {dimension_numbers = #tpu.dot_dimension_numbers<[1], [0], [0], [1], [0, 0, 1, 1], [], []>} : vector<104x128xbf16>, vector<128x128xbf16>, vector<104x128xf32> -> vector<104x128xf32>
    %c3 = arith.constant 3 : index
    %c0_44 = arith.constant 0 : index
    %84 = vector.load %arg13[%c3, %c0_44] : memref<10x128xf32, #tpu.memory_space<vmem>>, vector<1x128xf32>
    %85 = vector.broadcast %84 : vector<1x128xf32> to vector<104x128xf32>
    %86 = arith.addf %83, %85 : vector<104x128xf32>
    %cst_45 = arith.constant 0.000000e+00 : f32
    %87 = vector.broadcast %cst_45 : f32 to vector<104x128xf32>
    %88 = arith.maximumf %86, %87 : vector<104x128xf32>
    %c4 = arith.constant 4 : index
    %c0_46 = arith.constant 0 : index
    %89 = vector.load %arg13[%c4, %c0_46] : memref<10x128xf32, #tpu.memory_space<vmem>>, vector<1x128xf32>
    %c5 = arith.constant 5 : index
    %c0_47 = arith.constant 0 : index
    %90 = vector.load %arg13[%c5, %c0_47] : memref<10x128xf32, #tpu.memory_space<vmem>>, vector<1x128xf32>
    %cst_48 = arith.constant dense<0.000000e+00> : vector<104xf32>
    %91 = vector.multi_reduction <add>, %88, %cst_48 [1] : vector<104x128xf32> to vector<104xf32>
    %92 = vector.shape_cast %91 : vector<104xf32> to vector<104x1xf32>
    %cst_49 = arith.constant 1.280000e+02 : f32
    %93 = vector.broadcast %cst_49 : f32 to vector<104x1xf32>
    %94 = arith.divf %92, %93 : vector<104x1xf32>
    %95 = vector.broadcast %94 : vector<104x1xf32> to vector<104x128xf32>
    %96 = arith.subf %88, %95 : vector<104x128xf32>
    %97 = arith.mulf %96, %96 : vector<104x128xf32>
    %cst_50 = arith.constant dense<0.000000e+00> : vector<104xf32>
    %98 = vector.multi_reduction <add>, %97, %cst_50 [1] : vector<104x128xf32> to vector<104xf32>
    %99 = vector.shape_cast %98 : vector<104xf32> to vector<104x1xf32>
    %cst_51 = arith.constant 1.280000e+02 : f32
    %100 = vector.broadcast %cst_51 : f32 to vector<104x1xf32>
    %101 = arith.divf %99, %100 : vector<104x1xf32>
    %102 = vector.broadcast %94 : vector<104x1xf32> to vector<104x128xf32>
    %103 = arith.subf %88, %102 : vector<104x128xf32>
    %cst_52 = arith.constant 9.99999974E-6 : f32
    %104 = vector.broadcast %cst_52 : f32 to vector<104x1xf32>
    %105 = arith.addf %101, %104 : vector<104x1xf32>
    %106 = math.rsqrt %105 : vector<104x1xf32>
    %107 = vector.broadcast %106 : vector<104x1xf32> to vector<104x128xf32>
    %108 = arith.mulf %103, %107 : vector<104x128xf32>
    %109 = vector.broadcast %89 : vector<1x128xf32> to vector<104x128xf32>
    %110 = arith.mulf %108, %109 : vector<104x128xf32>
    %111 = vector.broadcast %90 : vector<1x128xf32> to vector<104x128xf32>
    %112 = arith.addf %110, %111 : vector<104x128xf32>
    %113 = arith.truncf %112 : vector<104x128xf32> to vector<104x128xbf16>
    %c0_53 = arith.constant 0 : index
    %c0_54 = arith.constant 0 : index
    %114 = vector.load %arg11[%c0_53, %c0_54] : memref<128x128xbf16, #tpu.memory_space<vmem>>, vector<128x128xbf16>
    %cst_55 = arith.constant dense<0.000000e+00> : vector<104x128xf32>
    %115 = tpu.matmul %113, %114, %cst_55 {dimension_numbers = #tpu.dot_dimension_numbers<[1], [0], [0], [1], [0, 0, 1, 1], [], []>} : vector<104x128xbf16>, vector<128x128xbf16>, vector<104x128xf32> -> vector<104x128xf32>
    %c6 = arith.constant 6 : index
    %c0_56 = arith.constant 0 : index
    %116 = vector.load %arg13[%c6, %c0_56] : memref<10x128xf32, #tpu.memory_space<vmem>>, vector<1x128xf32>
    %117 = vector.broadcast %116 : vector<1x128xf32> to vector<104x128xf32>
    %118 = arith.addf %115, %117 : vector<104x128xf32>
    %cst_57 = arith.constant 0.000000e+00 : f32
    %119 = vector.broadcast %cst_57 : f32 to vector<104x128xf32>
    %120 = arith.maximumf %118, %119 : vector<104x128xf32>
    %c7 = arith.constant 7 : index
    %c0_58 = arith.constant 0 : index
    %121 = vector.load %arg13[%c7, %c0_58] : memref<10x128xf32, #tpu.memory_space<vmem>>, vector<1x128xf32>
    %c8 = arith.constant 8 : index
    %c0_59 = arith.constant 0 : index
    %122 = vector.load %arg13[%c8, %c0_59] : memref<10x128xf32, #tpu.memory_space<vmem>>, vector<1x128xf32>
    %cst_60 = arith.constant dense<0.000000e+00> : vector<104xf32>
    %123 = vector.multi_reduction <add>, %120, %cst_60 [1] : vector<104x128xf32> to vector<104xf32>
    %124 = vector.shape_cast %123 : vector<104xf32> to vector<104x1xf32>
    %cst_61 = arith.constant 1.280000e+02 : f32
    %125 = vector.broadcast %cst_61 : f32 to vector<104x1xf32>
    %126 = arith.divf %124, %125 : vector<104x1xf32>
    %127 = vector.broadcast %126 : vector<104x1xf32> to vector<104x128xf32>
    %128 = arith.subf %120, %127 : vector<104x128xf32>
    %129 = arith.mulf %128, %128 : vector<104x128xf32>
    %cst_62 = arith.constant dense<0.000000e+00> : vector<104xf32>
    %130 = vector.multi_reduction <add>, %129, %cst_62 [1] : vector<104x128xf32> to vector<104xf32>
    %131 = vector.shape_cast %130 : vector<104xf32> to vector<104x1xf32>
    %cst_63 = arith.constant 1.280000e+02 : f32
    %132 = vector.broadcast %cst_63 : f32 to vector<104x1xf32>
    %133 = arith.divf %131, %132 : vector<104x1xf32>
    %134 = vector.broadcast %126 : vector<104x1xf32> to vector<104x128xf32>
    %135 = arith.subf %120, %134 : vector<104x128xf32>
    %cst_64 = arith.constant 9.99999974E-6 : f32
    %136 = vector.broadcast %cst_64 : f32 to vector<104x1xf32>
    %137 = arith.addf %133, %136 : vector<104x1xf32>
    %138 = math.rsqrt %137 : vector<104x1xf32>
    %139 = vector.broadcast %138 : vector<104x1xf32> to vector<104x128xf32>
    %140 = arith.mulf %135, %139 : vector<104x128xf32>
    %141 = vector.broadcast %121 : vector<1x128xf32> to vector<104x128xf32>
    %142 = arith.mulf %140, %141 : vector<104x128xf32>
    %143 = vector.broadcast %122 : vector<1x128xf32> to vector<104x128xf32>
    %144 = arith.addf %142, %143 : vector<104x128xf32>
    %145 = arith.truncf %144 : vector<104x128xf32> to vector<104x128xbf16>
    %c0_65 = arith.constant 0 : index
    %c0_66 = arith.constant 0 : index
    %146 = vector.load %arg12[%c0_65, %c0_66] : memref<128x32xbf16, #tpu.memory_space<vmem>>, vector<128x32xbf16>
    %cst_67 = arith.constant dense<0.000000e+00> : vector<104x32xf32>
    %147 = tpu.matmul %145, %146, %cst_67 {dimension_numbers = #tpu.dot_dimension_numbers<[1], [0], [0], [1], [0, 0, 1, 1], [], []>} : vector<104x128xbf16>, vector<128x32xbf16>, vector<104x32xf32> -> vector<104x32xf32>
    %c1_68 = arith.constant 1 : index
    %c0_69 = arith.constant 0 : index
    %148 = vector.load %arg14[%c1_68, %c0_69] : memref<2x32xf32, #tpu.memory_space<vmem>>, vector<1x32xf32>
    %149 = vector.broadcast %148 : vector<1x32xf32> to vector<104x32xf32>
    %150 = arith.addf %147, %149 : vector<104x32xf32>
    %c0_70 = arith.constant 0 : index
    %c0_71 = arith.constant 0 : index
    %151 = vector.load %arg15[%c0_70, %c0_71] : memref<104x128xf32, #tpu.memory_space<vmem>>, vector<104x32xf32>
    tpu.vector_store %arg15[%c0_70, %c0_71], %18 {strides = array<i32>} : memref<104x128xf32, #tpu.memory_space<vmem>>, vector<104x32xf32>,
    %152 = arith.addf %27, %150 : vector<104x32xf32>
    %c0_72 = arith.constant 0 : index
    %c32 = arith.constant 32 : index
    %153 = vector.load %arg15[%c0_72, %c32] : memref<104x128xf32, #tpu.memory_space<vmem>>, vector<104x32xf32>
    tpu.vector_store %arg15[%c0_72, %c32], %152 {strides = array<i32>} : memref<104x128xf32, #tpu.memory_space<vmem>>, vector<104x32xf32>,
    %cst_73 = arith.constant 2.000000e+01 : f32
    %154 = vector.broadcast %cst_73 : f32 to vector<104x1xf32>
    %155 = arith.cmpf ogt, %44, %154 : vector<104x1xf32>
    %cst_74 = arith.constant 2.000000e+01 : f32
    %156 = vector.broadcast %cst_74 : f32 to vector<104x1xf32>
    %157 = arith.minimumf %44, %156 : vector<104x1xf32>
    %158 = math.exp %157 : vector<104x1xf32>
    %159 = math.log1p %158 : vector<104x1xf32>
    %160 = arith.select %155, %44, %159 : vector<104x1xi1>, vector<104x1xf32>
    %c0_75 = arith.constant 0 : index
    %c64 = arith.constant 64 : index
    %161 = vector.load %arg15[%c0_75, %c64] : memref<104x128xf32, #tpu.memory_space<vmem>>, vector<104x1xf32>
    tpu.vector_store %arg15[%c0_75, %c64], %160 {strides = array<i32>} : memref<104x128xf32, #tpu.memory_space<vmem>>, vector<104x1xf32>,
    %cst_76 = arith.constant 2.000000e+01 : f32
    %162 = vector.broadcast %cst_76 : f32 to vector<104x1xf32>
    %163 = arith.cmpf ogt, %50, %162 : vector<104x1xf32>
    %cst_77 = arith.constant 2.000000e+01 : f32
    %164 = vector.broadcast %cst_77 : f32 to vector<104x1xf32>
    %165 = arith.minimumf %50, %164 : vector<104x1xf32>
    %166 = math.exp %165 : vector<104x1xf32>
    %167 = math.log1p %166 : vector<104x1xf32>
    %168 = arith.select %163, %50, %167 : vector<104x1xi1>, vector<104x1xf32>
    %c0_78 = arith.constant 0 : index
    %c65 = arith.constant 65 : index
    %169 = vector.load %arg15[%c0_78, %c65] : memref<104x128xf32, #tpu.memory_space<vmem>>, vector<104x1xf32>
    tpu.vector_store %arg15[%c0_78, %c65], %168 {strides = array<i32>} : memref<104x128xf32, #tpu.memory_space<vmem>>, vector<104x1xf32>,
    %cst_79 = arith.constant 0.000000e+00 : f32
    %170 = vector.broadcast %cst_79 : f32 to vector<104x62xf32>
    %c0_80 = arith.constant 0 : index
    %c66 = arith.constant 66 : index
    %171 = vector.load %arg15[%c0_80, %c66] : memref<104x128xf32, #tpu.memory_space<vmem>>, vector<104x62xf32>
    tpu.vector_store %arg15[%c0_80, %c66], %170 {strides = array<i32>} : memref<104x128xf32, #tpu.memory_space<vmem>>, vector<104x62xf32>,
    return
  }
  func.func @transform_0(%arg0: i32) -> (i32, i32) {
    %c0_i32 = arith.constant 0 : i32
    %c0_i32_0 = arith.constant 0 : i32
    return %arg0, %c0_i32 : i32, i32
  }
  func.func @transform_1(%arg0: i32) -> (i32, i32) {
    %c0_i32 = arith.constant 0 : i32
    %c0_i32_0 = arith.constant 0 : i32
    %c0_i32_1 = arith.constant 0 : i32
    return %c0_i32, %c0_i32_0 : i32, i32
  }
  func.func @transform_2(%arg0: i32) -> (i32, i32) {
    %c0_i32 = arith.constant 0 : i32
    %c0_i32_0 = arith.constant 0 : i32
    %c0_i32_1 = arith.constant 0 : i32
    return %c0_i32, %c0_i32_0 : i32, i32
  }
  func.func @transform_3(%arg0: i32) -> (i32, i32) {
    %c0_i32 = arith.constant 0 : i32
    %c0_i32_0 = arith.constant 0 : i32
    %c0_i32_1 = arith.constant 0 : i32
    return %c0_i32, %c0_i32_0 : i32, i32
  }
  func.func @transform_4(%arg0: i32) -> (i32, i32) {
    %c0_i32 = arith.constant 0 : i32
    %c0_i32_0 = arith.constant 0 : i32
    %c0_i32_1 = arith.constant 0 : i32
    return %c0_i32, %c0_i32_0 : i32, i32
  }
  func.func @transform_5(%arg0: i32) -> (i32, i32) {
    %c0_i32 = arith.constant 0 : i32
    %c0_i32_0 = arith.constant 0 : i32
    %c0_i32_1 = arith.constant 0 : i32
    return %c0_i32, %c0_i32_0 : i32, i32
  }
  func.func @transform_6(%arg0: i32) -> (i32, i32) {
    %c0_i32 = arith.constant 0 : i32
    %c0_i32_0 = arith.constant 0 : i32
    %c0_i32_1 = arith.constant 0 : i32
    return %c0_i32, %c0_i32_0 : i32, i32
  }
  func.func @transform_7(%arg0: i32) -> (i32, i32) {
    %c0_i32 = arith.constant 0 : i32
    %c0_i32_0 = arith.constant 0 : i32
    %c0_i32_1 = arith.constant 0 : i32
    return %c0_i32, %c0_i32_0 : i32, i32
  }
  func.func @transform_8(%arg0: i32) -> (i32, i32) {
    %c0_i32 = arith.constant 0 : i32
    %c0_i32_0 = arith.constant 0 : i32
    %c0_i32_1 = arith.constant 0 : i32
    return %c0_i32, %c0_i32_0 : i32, i32
  }
  func.func @transform_9(%arg0: i32) -> (i32, i32) {
    %c0_i32 = arith.constant 0 : i32
    %c0_i32_0 = arith.constant 0 : i32
    %c0_i32_1 = arith.constant 0 : i32
    return %c0_i32, %c0_i32_0 : i32, i32
  }
  func.func @transform_10(%arg0: i32) -> (i32, i32) {
    %c0_i32 = arith.constant 0 : i32
    %c0_i32_0 = arith.constant 0 : i32
    %c0_i32_1 = arith.constant 0 : i32
    return %c0_i32, %c0_i32_0 : i32, i32
  }
  func.func @transform_11(%arg0: i32) -> (i32, i32) {
    %c0_i32 = arith.constant 0 : i32
    %c0_i32_0 = arith.constant 0 : i32
    %c0_i32_1 = arith.constant 0 : i32
    return %c0_i32, %c0_i32_0 : i32, i32
  }
  func.func @transform_12(%arg0: i32) -> (i32, i32) {
    %c0_i32 = arith.constant 0 : i32
    %c0_i32_0 = arith.constant 0 : i32
    %c0_i32_1 = arith.constant 0 : i32
    return %c0_i32, %c0_i32_0 : i32, i32
  }
  func.func @transform_13(%arg0: i32) -> (i32, i32) {
    %c0_i32 = arith.constant 0 : i32
    %c0_i32_0 = arith.constant 0 : i32
    %c0_i32_1 = arith.constant 0 : i32
    return %c0_i32, %c0_i32_0 : i32, i32
  }
  func.func @transform_14(%arg0: i32) -> (i32, i32) {
    %c0_i32 = arith.constant 0 : i32
    %c0_i32_0 = arith.constant 0 : i32
    return %arg0, %c0_i32 : i32, i32
  }
}

</mosaic_0001>

<bundles_post_ra>
// kernel: _forward_jit.1
= control target key start
LH: loop header
LB: loop body
LE: loop exit
PB: predicated region body
PF: predicated region fallthrough
CT: control target
= control target key end

     0   :  { %s4329_s29 = smov 0   ;;  %s6236_s0 = inlined_call_operand.vmem [shape: f32[208,32], index: 0, kind: input, shape index: {}]   ;;  %s6237_s1 = inlined_call_operand.vmem [shape: bf16[32,384], index: 1, kind: input, shape index: {}]   ;;  %s6238_s2 = inlined_call_operand.vmem [shape: f32[1,384], index: 2, kind: input, shape index: {}]   ;;  %s6239_s3 = inlined_call_operand.vmem [shape: bf16[128,128], index: 3, kind: input, shape index: {}]   ;;  %s6240_s4 = inlined_call_operand.vmem [shape: f32[1,128], index: 4, kind: input, shape index: {}]   ;;  %s6241_s5 = inlined_call_operand.vmem [shape: bf16[64,32], index: 5, kind: input, shape index: {}]   ;;  %s6242_s6 = inlined_call_operand.vmem [shape: bf16[128,128], index: 6, kind: input, shape index: {}]   ;;  %s6243_s7 = inlined_call_operand.vmem [shape: f32[1,128], index: 7, kind: input, shape index: {}]   ;;  %s6244_s8 = inlined_call_operand.vmem [shape: bf16[32,128], index: 8, kind: input, shape index: {}]   ;;  %s6245_s9 = inlined_call_operand.vmem [shape: bf16[128,128], index: 9, kind: input, shape index: {}]   ;;  %s6246_s10 = inlined_call_operand.vmem [shape: bf16[128,128], index: 10, kind: input, shape index: {}]   ;;  %s6247_s11 = inlined_call_operand.vmem [shape: bf16[128,32], index: 11, kind: input, shape index: {}]   ;;  %s6248_s12 = inlined_call_operand.vmem [shape: f32[10,128], index: 12, kind: input, shape index: {}]   ;;  %s6249_s13 = inlined_call_operand.vmem [shape: f32[2,32], index: 13, kind: input, shape index: {}]   ;;  %s6250_s14 = inlined_call_operand.vmem [shape: f32[208,128], index: 14, kind: output, shape index: {}]  }
   0x1 LB: > { %s3370_s30 = sadd.s32 4294967295, %s4246_s29   ;;  %p3374_p0 = scmp.ge.s32.totalorder %s4246_s29, 1  ;;  %s4246_s29 = sphi %s4329_s29, %s24_s29  }
   0x2   : > { %p413_p1 = scmp.lt.s32.totalorder %s4246_s29, 3 }
   0x4   : > { %p414_p2 = pnand %p3374_p0, %p413_p1 }
   0x5   : > { %v4004_v0 = vld [vmem:[%s6237_s1 + $0x4] ss:$12 sps:$4 sm:$0xff] (!%p414_p2)   ;;  %s459_s17 = smul.u32 (!%p414_p2), 13, %s3370_s30  ;;  %v4006_v1 = vld [vmem:[%s6237_s1] ss:$12 sps:$4 sm:$0xff] (!%p414_p2)   ;;  %v4248_v2 = vmov (!%p414_p2), 0   ;;  %v502_v34 = vlaneseq (!%p414_p2) }
   0x6   : > { %417 = sbr.rel (%p414_p2) target bundleno = 2582 (0xa16), region = 76  ;;  %603 = vmatprep.mubr.bf16.mxu0 (!%p414_p2), %v4248_v2  ;;  %571 = vmatprep.subr.bf16.mxu0 (!%p414_p2), %v4004_v0  ;;  %v4007_v3 = vld [vmem:[%s6237_s1 + $0x1c] ss:$12 sps:$4 sm:$0xff] (!%p414_p2)   ;;  %v4009_v4 = vld [vmem:[%s6237_s1 + $0x18] ss:$12 sps:$4 sm:$0xff] (!%p414_p2)   ;;  %v4249_v5 = vmov (!%p414_p2), 0.0  }
   0x7   : > { %p460_p3 = scmp.lt.s32.totalorder (!%p414_p2), %s459_s17, 25  ;;  %3577 = vmatprep.subr.bf16.mxu1 (!%p414_p2), %v4249_v5  ;;  %572 = vmatpush1.bf16.msra.mxu0 (!%p414_p2), %v4006_v1  ;;  %vm549_vm0 = vcmask (!%p414_p2), 261120   ;;  %v4010_v8 = vld [vmem:[%s6239_s3] sm:$0xff] (!%p414_p2)   ;;  %v4011_v10 = vld [vmem:[%s6239_s3 + $0x8] sm:$0xff] (!%p414_p2)   ;;  %v4012_v13 = vld [vmem:[%s6239_s3 + $0x10] sm:$0xff] (!%p414_p2)   ;;  %vm4250_vm1 = vmmov (!%p414_p2), 0  }
   0x8   : > { %573 = vmatprep.subr.bf16.mxu0 (!%p414_p2), %v4007_v3  ;;  %v4013_v17 = vld [vmem:[%s6239_s3 + $0x18] sm:$0xff] (!%p414_p2)   ;;  %v4014_v18 = vld [vmem:[%s6239_s3 + $0x20] sm:$0xff] (!%p414_p2)   ;;  %v4015_v22 = vld [vmem:[%s6239_s3 + $0x28] sm:$0xff] (!%p414_p2)   ;;  %3581 = vmatprep.mubr.msk.bf16.mxu1 (!%p414_p2), %vm4250_vm1, %v4249_v5  ;;  %v4449_v36 = vshrl.u32 (!%p414_p2), %v502_v34, 7  ;;  %vm1037_vm2 = vcmask (!%p414_p2), 523264   ;;  %s4252_s15 = smov (!%p414_p2), 64  }
   0x9   : > { %v4016_v23 = vld [vmem:[%s6239_s3 + $0x30] sm:$0xff] (!%p414_p2)   ;;  %v4017_v33 = vld [vmem:[%s6239_s3 + $0x38] sm:$0xff] (!%p414_p2)   ;;  %v4455_v38 = vld [vmem:[%s6238_s2] sm:$0x7] (!%p414_p2)  ;;  %s4253_s21 = smov (!%p414_p2), 32  }
   0xa   : > { %v4026_v35 = vld [vmem:[%s6237_s1 + $0x8] ss:$12 sps:$4 sm:$0xff] (!%p414_p2)   ;;  %v504_v37 = vsub.s32 (!%p414_p2), 0, %v4449_v36  ;;  %v508_v39 = vsub.s32 (!%p414_p2), 1, %v4449_v36  ;;  %v4018_v54 = vld [vmem:[%s6242_s6] sm:$0xff] (!%p414_p2)  }
   0xb   : > { %574 = vmatpush1.bf16.msra.mxu0 (!%p414_p2), %v4009_v4  ;;  %3578 = vmatpush3.bf16.msra.mxu1 (!%p414_p2), %v4026_v35  ;;  %v4019_v62 = vld [vmem:[%s6242_s6 + $0x8] sm:$0xff] (!%p414_p2)  }
   0xc   : > { %3609 = vmatprep.subr.bf16.mxu0 (!%p414_p2), %v4249_v5  ;;  %3579 = vmatprep.subr.bf16.mxu1 (!%p414_p2), %v4249_v5  ;;  %v4459_v40 = vrot.slane (!%p414_p2), %v4455_v38, %v504_v37  ;;  %v4462_v41 = vrot.slane (!%p414_p2), %v4455_v38, %v508_v39 }
   0xd   : > { %s6270_s17 = smov (!%p460_p3, %s459_s17), 25 }
   0xe   : > { %s3375_s24 = sshll.u32 %s6270_s17, 3  ;;  %s4251_s17 = smov 96  }
   0xf   : > { %s4359_s27 = scalar_lea.vmem %s6236_s0, %s3375_s24  ;;  %s4631_s16 = scalar_lea.vmem %s6250_s14, %s3375_s24 }
  0x10   : > { %v472_v6 = vld [vmem:[%s4359_s27] sm:$0xff]  ;;  %v473_v7 = vld [vmem:[%s4359_s27 + $0x8] sm:$0xff]  ;;  %v474_v11 = vld [vmem:[%s4359_s27 + $0x10] sm:$0xff] }
  0x11   : > { %v4367_v9 = vpack.c.bf16 %v473_v7, %v472_v6  ;;  %v475_v12 = vld [vmem:[%s4359_s27 + $0x18] sm:$0xff]  ;;  %v476_v15 = vld [vmem:[%s4359_s27 + $0x20] sm:$0xff]  ;;  %v477_v16 = vld [vmem:[%s4359_s27 + $0x28] sm:$0xff] }
  0x12   : > { %v4381_v14 = vpack.c.bf16 %v475_v12, %v474_v11  ;;  %v4396_v19 = vpack.c.bf16 %v477_v16, %v476_v15  ;;  %v478_v20 = vld [vmem:[%s4359_s27 + $0x30] sm:$0xff]  ;;  %v479_v21 = vld [vmem:[%s4359_s27 + $0x38] sm:$0xff]  ;;  %v480_v25 = vld [vmem:[%s4359_s27 + $0x40] sm:$0xff] }
  0x13   : > { %3383 = vmatmul.mubr.msk.bf16.vlgmr.msra.gmra.mrb[0].mxu0 %vm549_vm0, %v4367_v9  ;;  %v4411_v24 = vpack.c.bf16 %v479_v21, %v478_v20  ;;  %v481_v26 = vld [vmem:[%s4359_s27 + $0x48] sm:$0xff]  ;;  %v482_v28 = vld [vmem:[%s4359_s27 + $0x50] sm:$0xff]  ;;  %v483_v29 = vld [vmem:[%s4359_s27 + $0x58] sm:$0xff] }
  0x14   : > { %613 = vmatprep.mubr.bf16.mxu0 %v4248_v2  ;;  %3610 = vmatpush3.bf16.msra.mxu0 %v4010_v8  ;;  %v4420_v27 = vpack.c.bf16 %v481_v26, %v480_v25  ;;  %v4427_v30 = vpack.c.bf16 %v483_v29, %v482_v28  ;;  %v484_v31 = vld [vmem:[%s4359_s27 + $0x60] sm:$0xff]  ;;  %v4020_v7 = vld [vmem:[%s6242_s6 + $0x10] sm:$0xff]  }
  0x15   : > { %3611 = vmatprep.subr.bf16.mxu0 %v4249_v5  ;;  %v4433_v32 = vpack.c.bf16 %v484_v31, %v484_v31  ;;  %v4022_v28 = vld [vmem:[%s6242_s6 + $0x20] sm:$0xff]  }
  0x18   : > { %3612 = vmatpush3.bf16.msra.mxu0 %v4011_v10 }
  0x19   : > { %3613 = vmatprep.subr.bf16.mxu0 %v4249_v5 }
  0x1b   : > { %3384 = vmatmul.mubr.msk.bf16.gmra.mrb[4].mxu0 %vm549_vm0, %v4381_v14 }
  0x1c   : > { %623 = vmatprep.mubr.bf16.mxu0 %v4248_v2  ;;  %3614 = vmatpush3.bf16.msra.mxu0 %v4012_v13 }
  0x1d   : > { %3615 = vmatprep.subr.bf16.mxu0 %v4249_v5 }
  0x20   : > { %3616 = vmatpush3.bf16.msra.mxu0 %v4013_v17  ;;  %v4021_v17 = vld [vmem:[%s6242_s6 + $0x18] sm:$0xff]  }
  0x21   : > { %3617 = vmatprep.subr.bf16.mxu0 %v4249_v5 }
  0x23   : > { %3385 = vmatmul.mubr.msk.bf16.gmra.mrb[8].mxu0 %vm549_vm0, %v4396_v19 }
  0x24   : > { %633 = vmatprep.mubr.bf16.mxu0 %v4248_v2  ;;  %3618 = vmatpush3.bf16.msra.mxu0 %v4014_v18 }
  0x25   : > { %3619 = vmatprep.subr.bf16.mxu0 %v4249_v5 }
  0x28   : > { %3620 = vmatpush3.bf16.msra.mxu0 %v4015_v22 }
  0x29   : > { %3621 = vmatprep.subr.bf16.mxu0 %v4249_v5 }
  0x2b   : > { %3386 = vmatmul.mubr.msk.bf16.gmra.mrb[12].mxu0 %vm549_vm0, %v4411_v24 }
  0x2c   : > { %643 = vmatprep.mubr.bf16.mxu0 %v4248_v2  ;;  %3622 = vmatpush3.bf16.msra.mxu0 %v4016_v23 }
  0x2d   : > { %3623 = vmatprep.subr.bf16.mxu0 %v4249_v5 }
  0x30   : > { %3624 = vmatpush3.bf16.msra.mxu0 %v4017_v33 }
  0x31   : > { %3689 = vmatprep.subr.bf16.mxu0 %v4249_v5 }
  0x33   : > { %3387 = vmatmul.mubr.msk.bf16.gmra.mrb[16].mxu0 %vm549_vm0, %v4420_v27 }
  0x34   : > { %653 = vmatprep.mubr.bf16.mxu0 %v4248_v2 }
  0x3b   : > { %3388 = vmatmul.mubr.msk.bf16.gmra.mrb[20].mxu0 %vm549_vm0, %v4427_v30 }
  0x3c   : > { %663 = vmatprep.mubr.bf16.mxu0 %v4248_v2 }
  0x43   : > { %3389 = vmatmul.mubr.msk.bf16.gmra.mrb[24].mxu0 %vm549_vm0, %v4433_v32 }
  0x44   : > { %3625 = vmatprep.mubr.msk.bf16.mxu0 %vm4250_vm1, %v4249_v5 }
  0xe6   : > { %v605_v42 = vpop.f32.mrb[0].mxu0 }
  0xe7   : > { %v606_v43 = vadd.f32 %v605_v42, %v4459_v40  ;;  %v607_v44 = vpop.f32.mrb[1].mxu0  ;;  %v4023_v42 = vld [vmem:[%s6242_s6 + $0x28] sm:$0xff]  }
  0xe8   : > { %v608_v45 = vadd.f32 %v607_v44, %v4462_v41  ;;  %v609_v46 = vpop.f32.mrb[2].mxu0 }
  0xe9   : > { %v610_v47 = vadd.f32 %v609_v46, %v4459_v40  ;;  %v611_v48 = vpop.f32.mrb[3].mxu0  ;;  %v760_v50 = vmax.f32 %v606_v43, 0.0 }
  0xea   : > { %v612_v49 = vadd.f32 %v611_v48, %v4462_v41  ;;  %v761_v52 = vmax.f32 %v608_v45, 0.0 }
  0xeb   : > { %v762_v51 = vmax.f32 %v610_v47, 0.0 }
  0xec   : > { %v763_v53 = vmax.f32 %v612_v49, 0.0 }
  0xed   : > { %v786_v55 = vpack.c.bf16 %v762_v51, %v760_v50  ;;  %v4024_v50 = vld [vmem:[%s6242_s6 + $0x30] sm:$0xff]  }
  0xee   : > { %v4471_v56 = vpack.c.bf16 %v763_v53, %v761_v52  ;;  %v615_v57 = vpop.f32.mrb[4].mxu0 }
  0xef   : > { %v616_v58 = vadd.f32 %v615_v57, %v4459_v40  ;;  %v617_v59 = vpop.f32.mrb[5].mxu0  ;;  %3626 = vmatmul.mubr.bf16.vlgmr.msra.gmra.mrb[28].mxu0 %v786_v55 }
  0xf0   : > { %v618_v60 = vadd.f32 %v617_v59, %v4462_v41  ;;  %v619_v61 = vpop.f32.mrb[6].mxu0  ;;  %3629 = vmatprep.mubr.msk.bf16.mxu0 %vm4250_vm1, %v4249_v5  ;;  %3690 = vmatpush3.bf16.msra.mxu0 %v4018_v54  ;;  %v4025_v59 = vld [vmem:[%s6242_s6 + $0x38] sm:$0xff]  }
  0xf1   : > { %v620_v63 = vadd.f32 %v619_v61, %v4459_v40  ;;  %v621_v0 = vpop.f32.mrb[7].mxu0  ;;  %3691 = vmatprep.subr.bf16.mxu0 %v4249_v5  ;;  %v764_v2 = vmax.f32 %v616_v58, 0.0 }
  0xf2   : > { %v622_v1 = vadd.f32 %v621_v0, %v4462_v41  ;;  %v765_v4 = vmax.f32 %v618_v60, 0.0 }
  0xf3   : > { %v766_v3 = vmax.f32 %v620_v63, 0.0 }
  0xf4   : > { %v767_v6 = vmax.f32 %v622_v1, 0.0  ;;  %3692 = vmatpush3.bf16.msra.mxu0 %v4019_v62 }
  0xf5   : > { %v788_v8 = vpack.c.bf16 %v766_v3, %v764_v2  ;;  %3693 = vmatprep.subr.bf16.mxu0 %v4249_v5 }
  0xf6   : > { %v4487_v10 = vpack.c.bf16 %v767_v6, %v765_v4  ;;  %v625_v11 = vpop.f32.mrb[8].mxu0 }
  0xf7   : > { %v626_v12 = vadd.f32 %v625_v11, %v4459_v40  ;;  %v627_v13 = vpop.f32.mrb[9].mxu0  ;;  %3630 = vmatmul.mubr.bf16.gmra.mrb[32].mxu0 %v788_v8 }
  0xf8   : > { %v628_v15 = vadd.f32 %v627_v13, %v4462_v41  ;;  %v629_v16 = vpop.f32.mrb[10].mxu0  ;;  %3633 = vmatprep.mubr.msk.bf16.mxu0 %vm4250_vm1, %v4249_v5  ;;  %3694 = vmatpush3.bf16.msra.mxu0 %v4020_v7 }
  0xf9   : > { %v630_v18 = vadd.f32 %v629_v16, %v4459_v40  ;;  %v631_v20 = vpop.f32.mrb[11].mxu0  ;;  %3695 = vmatprep.subr.bf16.mxu0 %v4249_v5  ;;  %v768_v22 = vmax.f32 %v626_v12, 0.0 }
  0xfa   : > { %v632_v21 = vadd.f32 %v631_v20, %v4462_v41  ;;  %v769_v25 = vmax.f32 %v628_v15, 0.0 }
  0xfb   : > { %v770_v23 = vmax.f32 %v630_v18, 0.0 }
  0xfc   : > { %v771_v26 = vmax.f32 %v632_v21, 0.0  ;;  %3696 = vmatpush3.bf16.msra.mxu0 %v4021_v17 }
  0xfd   : > { %v790_v29 = vpack.c.bf16 %v770_v23, %v768_v22  ;;  %3697 = vmatprep.subr.bf16.mxu0 %v4249_v5 }
  0xfe   : > { %v4503_v31 = vpack.c.bf16 %v771_v26, %v769_v25  ;;  %v635_v33 = vpop.f32.mrb[12].mxu0 }
  0xff   : > { %v636_v34 = vadd.f32 %v635_v33, %v4459_v40  ;;  %v637_v35 = vpop.f32.mrb[13].mxu0  ;;  %3634 = vmatmul.mubr.bf16.gmra.mrb[36].mxu0 %v790_v29 }
 0x100   : > { %v638_v37 = vadd.f32 %v637_v35, %v4462_v41  ;;  %v639_v39 = vpop.f32.mrb[14].mxu0  ;;  %3637 = vmatprep.mubr.msk.bf16.mxu0 %vm4250_vm1, %v4249_v5  ;;  %3698 = vmatpush3.bf16.msra.mxu0 %v4022_v28 }
 0x101   : > { %v640_v43 = vadd.f32 %v639_v39, %v4459_v40  ;;  %v641_v44 = vpop.f32.mrb[15].mxu0  ;;  %3699 = vmatprep.subr.bf16.mxu0 %v4249_v5  ;;  %v772_v46 = vmax.f32 %v636_v34, 0.0 }
 0x102   : > { %v642_v45 = vadd.f32 %v641_v44, %v4462_v41  ;;  %v773_v48 = vmax.f32 %v638_v37, 0.0 }
 0x103   : > { %v774_v47 = vmax.f32 %v640_v43, 0.0 }
 0x104   : > { %v775_v49 = vmax.f32 %v642_v45, 0.0  ;;  %3700 = vmatpush3.bf16.msra.mxu0 %v4023_v42 }
 0x105   : > { %v792_v51 = vpack.c.bf16 %v774_v47, %v772_v46  ;;  %3701 = vmatprep.subr.bf16.mxu0 %v4249_v5 }
 0x106   : > { %v793_v52 = vpack.c.bf16 %v775_v49, %v773_v48  ;;  %v645_v53 = vpop.f32.mrb[16].mxu0 }
 0x107   : > { %v646_v54 = vadd.f32 %v645_v53, %v4459_v40  ;;  %v647_v55 = vpop.f32.mrb[17].mxu0  ;;  %3638 = vmatmul.mubr.bf16.gmra.mrb[40].mxu0 %v792_v51 }
 0x108   : > { %v648_v57 = vadd.f32 %v647_v55, %v4462_v41  ;;  %v649_v58 = vpop.f32.mrb[18].mxu0  ;;  %3641 = vmatprep.mubr.msk.bf16.mxu0 %vm4250_vm1, %v4249_v5  ;;  %3702 = vmatpush3.bf16.msra.mxu0 %v4024_v50 }
 0x109   : > { %v650_v60 = vadd.f32 %v649_v58, %v4459_v40  ;;  %v651_v61 = vpop.f32.mrb[19].mxu0  ;;  %3703 = vmatprep.subr.bf16.mxu0 %v4249_v5  ;;  %v776_v63 = vmax.f32 %v646_v54, 0.0 }
 0x10a   : > { %v652_v62 = vadd.f32 %v651_v61, %v4462_v41  ;;  %v777_v1 = vmax.f32 %v648_v57, 0.0 }
 0x10b   : > { %v778_v0 = vmax.f32 %v650_v60, 0.0 }
 0x10c   : > { %v779_v2 = vmax.f32 %v652_v62, 0.0  ;;  %3704 = vmatpush3.bf16.msra.mxu0 %v4025_v59 }
 0x10d   : > { %v794_v3 = vpack.c.bf16 %v778_v0, %v776_v63  ;;  %3733 = vmatprep.subr.bf16.mxu0 %v4249_v5 }
 0x10e   : > { %v795_v4 = vpack.c.bf16 %v779_v2, %v777_v1  ;;  %v655_v6 = vpop.f32.mrb[20].mxu0 }
 0x10f   : > { %v656_v7 = vadd.f32 %v655_v6, %v4459_v40  ;;  %v657_v8 = vpop.f32.mrb[21].mxu0  ;;  %3642 = vmatmul.mubr.bf16.gmra.mrb[44].mxu0 %v794_v3 }
 0x110   : > { %v658_v11 = vadd.f32 %v657_v8, %v4462_v41  ;;  %v659_v12 = vpop.f32.mrb[22].mxu0  ;;  %3645 = vmatprep.mubr.msk.bf16.mxu0 %vm4250_vm1, %v4249_v5 }
 0x111   : > { %v660_v13 = vadd.f32 %v659_v12, %v4459_v40  ;;  %v661_v15 = vpop.f32.mrb[23].mxu0  ;;  %v780_v17 = vmax.f32 %v656_v7, 0.0 }
 0x112   : > { %v662_v16 = vadd.f32 %v661_v15, %v4462_v41  ;;  %v781_v20 = vmax.f32 %v658_v11, 0.0 }
 0x113   : > { %v782_v18 = vmax.f32 %v660_v13, 0.0 }
 0x114   : > { %v783_v21 = vmax.f32 %v662_v16, 0.0 }
 0x115   : > { %v796_v22 = vpack.c.bf16 %v782_v18, %v780_v17 }
 0x116   : > { %v797_v23 = vpack.c.bf16 %v783_v21, %v781_v20  ;;  %v665_v25 = vpop.f32.mrb[24].mxu0 }
 0x117   : > { %v666_v26 = vadd.f32 %v665_v25, %v4459_v40  ;;  %3646 = vmatmul.mubr.bf16.gmra.mrb[48].mxu0 %v796_v22  ;;  %v667_v28 = vpop.f32.mrb[25].mxu0  ;;  %v4555_v40 = vld [vmem:[%s6244_s8] sm:$0xff]  }
 0x118   : > { %v669_v29 = vpop.f32.mrb[26].mxu0  ;;  %3649 = vmatprep.mubr.msk.bf16.mxu0 %vm4250_vm1, %v4249_v5 }
 0x119   : > { %v784_v33 = vmax.f32 %v666_v26, 0.0  ;;  %v670_v34 = vpop.f32.mrb[27].mxu0 }
 0x11b   : > { %v798_v35 = vpack.c.bf16 %v784_v33, %v784_v33 }
 0x11f   : > { %3650 = vmatmul.mubr.bf16.gmra.mrb[52].mxu0 %v798_v35 }
 0x120   : > { %3705 = vmatprep.mubr.msk.bf16.mxu0 %vm4250_vm1, %v4249_v5 }
 0x127   : > { %3706 = vmatmul.mubr.bf16.vlgmr.msra.gmra.mrb[56].mxu0 %v4471_v56  ;;  %v4028_v56 = vld [vmem:[%s6237_s1 + $0x20] ss:$12 sps:$4 sm:$0xff]  }
 0x128   : > { %3709 = vmatprep.mubr.msk.bf16.mxu0 %vm4250_vm1, %v4249_v5  ;;  %3734 = vmatpush3.bf16.msra.mxu0 %v4555_v40 }
 0x129   : > { %3735 = vmatprep.subr.bf16.mxu0 %v4249_v5  ;;  %3580 = vmatpush3.bf16.msra.mxu1 %v4028_v56 }
 0x12a   : > { %3653 = vmatprep.subr.bf16.mxu1 %v4249_v5 }
 0x12c   : > { %3582 = vmatmul.mubr.msk.bf16.vlgmr.msra.gmra.mrb[0].mxu1 %vm549_vm0, %v4367_v9 }
 0x12d   : > { %3585 = vmatprep.mubr.msk.bf16.mxu1 %vm4250_vm1, %v4249_v5 }
 0x12f   : > { %3710 = vmatmul.mubr.bf16.gmra.mrb[60].mxu0 %v4487_v10  ;;  %v4565_v10 = vld [vmem:[%s6244_s8 + $0x8] sm:$0xff]  }
 0x130   : > { %3713 = vmatprep.mubr.msk.bf16.mxu0 %vm4250_vm1, %v4249_v5  ;;  %3736 = vmatpush3.bf16.msra.mxu0 %v4565_v10 }
 0x131   : > { %3765 = vmatprep.subr.bf16.mxu0 %v4249_v5 }
 0x134   : > { %3586 = vmatmul.mubr.msk.bf16.gmra.mrb[4].mxu1 %vm549_vm0, %v4381_v14  ;;  %v4030_v14 = vld [vmem:[%s6241_s5] sm:$0xff]  }
 0x135   : > { %3589 = vmatprep.mubr.msk.bf16.mxu1 %vm4250_vm1, %v4249_v5  ;;  %3654 = vmatpush3.bf16.msra.mxu1 %v4030_v14 }
 0x136   : > { %3655 = vmatprep.subr.bf16.mxu1 %v4249_v5 }
 0x137   : > { %3714 = vmatmul.mubr.bf16.gmra.mrb[64].mxu0 %v4503_v31  ;;  %v668_v31 = vadd.f32 %v667_v28, %v4462_v41 }
 0x138   : > { %3717 = vmatprep.mubr.msk.bf16.mxu0 %vm4250_vm1, %v4249_v5 }
 0x139   : > { %v785_v9 = vmax.f32 %v668_v31, 0.0 }
 0x13b   : > { %v799_v37 = vpack.c.bf16 %v785_v9, %v785_v9 }
 0x13c   : > { %3590 = vmatmul.mubr.msk.bf16.gmra.mrb[8].mxu1 %vm549_vm0, %v4396_v19  ;;  %v4031_v19 = vld [vmem:[%s6241_s5 + $0x8] sm:$0xff]  }
 0x13d   : > { %3593 = vmatprep.mubr.msk.bf16.mxu1 %vm4250_vm1, %v4249_v5  ;;  %3656 = vmatpush3.bf16.msra.mxu1 %v4031_v19 }
 0x13e   : > { %3657 = vmatprep.subr.bf16.mxu1 %v4249_v5 }
 0x13f   : > { %3718 = vmatmul.mubr.bf16.gmra.mrb[68].mxu0 %v793_v52 }
 0x140   : > { %3721 = vmatprep.mubr.msk.bf16.mxu0 %vm4250_vm1, %v4249_v5 }
 0x144   : > { %3594 = vmatmul.mubr.msk.bf16.gmra.mrb[12].mxu1 %vm549_vm0, %v4411_v24  ;;  %v4032_v24 = vld [vmem:[%s6241_s5 + $0x10] sm:$0xff]  }
 0x145   : > { %3597 = vmatprep.mubr.msk.bf16.mxu1 %vm4250_vm1, %v4249_v5  ;;  %3658 = vmatpush3.bf16.msra.mxu1 %v4032_v24 }
 0x146   : > { %3659 = vmatprep.subr.bf16.mxu1 %v4249_v5 }
 0x147   : > { %3722 = vmatmul.mubr.bf16.gmra.mrb[72].mxu0 %v795_v4 }
 0x148   : > { %3725 = vmatprep.mubr.msk.bf16.mxu0 %vm4250_vm1, %v4249_v5 }
 0x14c   : > { %3598 = vmatmul.mubr.msk.bf16.gmra.mrb[16].mxu1 %vm549_vm0, %v4420_v27  ;;  %v4033_v27 = vld [vmem:[%s6241_s5 + $0x18] sm:$0xff]  }
 0x14d   : > { %3601 = vmatprep.mubr.msk.bf16.mxu1 %vm4250_vm1, %v4249_v5  ;;  %3660 = vmatpush3.bf16.msra.mxu1 %v4033_v27 }
 0x14e   : > { %3897 = vmatprep.subr.bf16.mxu1 %v4249_v5 }
 0x14f   : > { %3726 = vmatmul.mubr.bf16.gmra.mrb[76].mxu0 %v797_v23 }
 0x150   : > { %3729 = vmatprep.mubr.msk.bf16.mxu0 %vm4250_vm1, %v4249_v5 }
 0x154   : > { %3602 = vmatmul.mubr.msk.bf16.gmra.mrb[20].mxu1 %vm549_vm0, %v4427_v30  ;;  %v4624_v30 = vld [vmem:[%s6240_s4] ss:$0 sm:$0xff] }
 0x155   : > { %3605 = vmatprep.mubr.msk.bf16.mxu1 %vm4250_vm1, %v4249_v5 }
 0x157   : > { %3730 = vmatmul.mubr.bf16.gmra.mrb[80].mxu0 %v799_v37 }
 0x158   : > { %3737 = vmatprep.mubr.msk.bf16.mxu0 %vm4250_vm1, %v4249_v5 }
 0x15c   : > { %3606 = vmatmul.mubr.msk.bf16.gmra.mrb[24].mxu1 %vm549_vm0, %v4433_v32 }
 0x15d   : > { %3661 = vmatprep.mubr.msk.bf16.mxu1 %vm4250_vm1, %v4249_v5 }
 0x1c2   : > { %v905_v32 = vpop.f32.mrb[28].mxu0 }
 0x1c3   : > { %v906_v41 = vadd.f32 %v4624_v30, %v905_v32  ;;  %v3627_v39 = vpop.f32.mrb[29].mxu0 }
 0x1c4   : > { %v908_v42 = vpop.f32.mrb[30].mxu0 }
 0x1c5   : > { %2712 = vst.msk [vmem:[%s4631_s16] sm:$0xff] %vm549_vm0, %v906_v41  ;;  %v909_v43 = vadd.f32 %v4624_v30, %v908_v42  ;;  %v3628_v44 = vpop.f32.mrb[31].mxu0  ;;  %v959_v46 = vmax.f32 %v906_v41, 0.0 }
 0x1c7   : > { %v1498_v45 = vpack.c.bf16 %v909_v43, %v906_v41  ;;  %2713 = vst.msk [vmem:[%s4631_s16 + $0x8] sm:$0xff] %vm549_vm0, %v909_v43  ;;  %v960_v47 = vmax.f32 %v909_v43, 0.0 }
 0x1c9   : > { %3738 = vmatmul.mubr.msk.bf16.vlgmr.msra.gmra.mrb[84].mxu0 %vm549_vm0, %v1498_v45  ;;  %v972_v48 = vpack.c.bf16 %v960_v47, %v959_v46 }
 0x1ca   : > { %v913_v49 = vpop.f32.mrb[32].mxu0  ;;  %3741 = vmatprep.mubr.msk.bf16.mxu0 %vm4250_vm1, %v4249_v5 }
 0x1cb   : > { %v914_v50 = vadd.f32 %v4624_v30, %v913_v49  ;;  %999 = vrot.lane.b32.xlu0 %v972_v48, %s4251_s17  ;;  %v3631_v51 = vpop.f32.mrb[33].mxu0 }
 0x1cc   : > { %v916_v52 = vpop.f32.mrb[34].mxu0 }
 0x1cd   : > { %2714 = vst.msk [vmem:[%s4631_s16 + $0x10] sm:$0xff] %vm549_vm0, %v914_v50  ;;  %v917_v53 = vadd.f32 %v4624_v30, %v916_v52  ;;  %v3632_v54 = vpop.f32.mrb[35].mxu0  ;;  %v961_v55 = vmax.f32 %v914_v50, 0.0 }
 0x1cf   : > { %v962_v57 = vmax.f32 %v917_v53, 0.0  ;;  %v1499_v58 = vpack.c.bf16 %v917_v53, %v914_v50  ;;  %2715 = vst.msk [vmem:[%s4631_s16 + $0x18] sm:$0xff] %vm549_vm0, %v917_v53 }
 0x1d1   : > { %3742 = vmatmul.mubr.msk.bf16.gmra.mrb[88].mxu0 %vm549_vm0, %v1499_v58  ;;  %v973_v59 = vpack.c.bf16 %v962_v57, %v961_v55 }
 0x1d2   : > { %v921_v60 = vpop.f32.mrb[36].mxu0  ;;  %3745 = vmatprep.mubr.msk.bf16.mxu0 %vm4250_vm1, %v4249_v5 }
 0x1d3   : > { %v922_v61 = vadd.f32 %v4624_v30, %v921_v60  ;;  %1001 = vrot.lane.b32.xlu0 %v973_v59, %s4251_s17  ;;  %v3635_v62 = vpop.f32.mrb[37].mxu0 }
 0x1d4   : > { %v924_v63 = vpop.f32.mrb[38].mxu0 }
 0x1d5   : > { %2716 = vst.msk [vmem:[%s4631_s16 + $0x20] sm:$0xff] %vm549_vm0, %v922_v61  ;;  %v925_v0 = vadd.f32 %v4624_v30, %v924_v63  ;;  %v3636_v1 = vpop.f32.mrb[39].mxu0  ;;  %v963_v3 = vmax.f32 %v922_v61, 0.0 }
 0x1d7   : > { %v1500_v2 = vpack.c.bf16 %v925_v0, %v922_v61  ;;  %2717 = vst.msk [vmem:[%s4631_s16 + $0x28] sm:$0xff] %vm549_vm0, %v925_v0  ;;  %v964_v4 = vmax.f32 %v925_v0, 0.0 }
 0x1d9   : > { %3746 = vmatmul.mubr.msk.bf16.gmra.mrb[92].mxu0 %vm549_vm0, %v1500_v2  ;;  %v974_v6 = vpack.c.bf16 %v964_v4, %v963_v3 }
 0x1da   : > { %v929_v7 = vpop.f32.mrb[40].mxu0  ;;  %3781 = vmatprep.mubr.msk.bf16.mxu0 %vm4250_vm1, %v4249_v5 }
 0x1db   : > { %v4663_v8 = vadd.f32 %v4624_v30, %v929_v7  ;;  %1003 = vrot.lane.b32.xlu1 %v974_v6, %s4251_s17  ;;  %v3639_v11 = vpop.f32.mrb[41].mxu0 }
 0x1dc   : > { %v932_v12 = vpop.f32.mrb[42].mxu0 }
 0x1dd   : > { %2718 = vst.msk [vmem:[%s4631_s16 + $0x30] sm:$0xff] %vm549_vm0, %v4663_v8  ;;  %v4670_v13 = vadd.f32 %v4624_v30, %v932_v12  ;;  %v3640_v15 = vpop.f32.mrb[43].mxu0  ;;  %v965_v16 = vmax.f32 %v4663_v8, 0.0 }
 0x1df   : > { %v966_v17 = vmax.f32 %v4670_v13, 0.0  ;;  %v1501_v18 = vpack.c.bf16 %v4670_v13, %v4663_v8  ;;  %2719 = vst.msk [vmem:[%s4631_s16 + $0x38] sm:$0xff] %vm549_vm0, %v4670_v13  ;;  %v512_v13 = vsub.s32 2, %v4449_v36 }
 0x1e1   : > { %v975_v20 = vpack.c.bf16 %v966_v17, %v965_v16 }
 0x1e2   : > { %v937_v21 = vpop.f32.mrb[44].mxu0 }
 0x1e3   : > { %v4680_v22 = vadd.f32 %v4624_v30, %v937_v21  ;;  %1005 = vrot.lane.b32.xlu1 %v975_v20, %s4251_s17  ;;  %v3643_v23 = vpop.f32.mrb[45].mxu0 }
 0x1e4   : > { %v940_v25 = vpop.f32.mrb[46].mxu0 }
 0x1e5   : > { %2720 = vst.msk [vmem:[%s4631_s16 + $0x40] sm:$0xff] %vm549_vm0, %v4680_v22  ;;  %v4687_v26 = vadd.f32 %v4624_v30, %v940_v25  ;;  %v3644_v28 = vpop.f32.mrb[47].mxu0  ;;  %v967_v29 = vmax.f32 %v4680_v22, 0.0 }
 0x1e7   : > { %v968_v33 = vmax.f32 %v4687_v26, 0.0  ;;  %v1502_v34 = vpack.c.bf16 %v4687_v26, %v4680_v22  ;;  %2721 = vst.msk [vmem:[%s4631_s16 + $0x48] sm:$0xff] %vm549_vm0, %v4687_v26 }
 0x1e9   : > { %v976_v35 = vpack.c.bf16 %v968_v33, %v967_v29 }
 0x1ea   : > { %v945_v56 = vpop.f32.mrb[48].mxu0 }
 0x1eb   : > { %v4697_v31 = vadd.f32 %v4624_v30, %v945_v56  ;;  %1007 = vrot.lane.b32.xlu0 %v976_v35, %s4251_s17  ;;  %v3647_v9 = vpop.f32.mrb[49].mxu0 }
 0x1ec   : > { %v948_v37 = vpop.f32.mrb[50].mxu0 }
 0x1ed   : > { %2722 = vst.msk [vmem:[%s4631_s16 + $0x50] sm:$0xff] %vm549_vm0, %v4697_v31  ;;  %v4704_v14 = vadd.f32 %v4624_v30, %v948_v37  ;;  %v3648_v19 = vpop.f32.mrb[51].mxu0  ;;  %v969_v24 = vmax.f32 %v4697_v31, 0.0 }
 0x1ef   : > { %v970_v27 = vmax.f32 %v4704_v14, 0.0  ;;  %v1503_v32 = vpack.c.bf16 %v4704_v14, %v4697_v31  ;;  %2723 = vst.msk [vmem:[%s4631_s16 + $0x58] sm:$0xff] %vm549_vm0, %v4704_v14 }
 0x1f1   : > { %v977_v41 = vpack.c.bf16 %v970_v27, %v969_v24 }
 0x1f2   : > { %v953_v39 = vpop.f32.mrb[52].mxu0 }
 0x1f3   : > { %v4714_v42 = vadd.f32 %v4624_v30, %v953_v39  ;;  %1009 = vrot.lane.b32.xlu1 %v977_v41, %s4251_s17  ;;  %v3651_v43 = vpop.f32.mrb[53].mxu0 }
 0x1f4   : > { %v956_v44 = vpop.f32.mrb[54].mxu0 }
 0x1f5   : > { %2724 = vst.msk [vmem:[%s4631_s16 + $0x60] sm:$0xff] %vm549_vm0, %v4714_v42  ;;  %v3652_v45 = vpop.f32.mrb[55].mxu0  ;;  %v971_v46 = vmax.f32 %v4714_v42, 0.0  ;;  %v1504_v8 = vpack.c.bf16 %v4714_v42, %v4714_v42 }
 0x1f7   : > { %v978_v47 = vpack.c.bf16 %v971_v46, %v971_v46 }
 0x1f9   : > { %1011 = vrot.lane.b32.xlu0 %v978_v47, %s4251_s17 }
 0x1fa   : > { %v4722_v48 = vpop.f32.mrb[56].mxu0 }
 0x1fb   : > { %v3707_v49 = vpop.f32.mrb[57].mxu0 }
 0x1fc   : > { %v4724_v50 = vpop.f32.mrb[58].mxu0 }
 0x1fd   : > { %v3708_v30 = vpop.f32.mrb[59].mxu0 }
 0x1ff   : > { %v706_v1 = vpop.f32.mrb[0].mxu1 }
 0x200   : > { %v3583_v3 = vpop.f32.mrb[1].mxu1 }
 0x201   : > { %v709_v6 = vpop.f32.mrb[2].mxu1 }
 0x202   : > { %v4726_v51 = vpop.f32.mrb[60].mxu0  ;;  %v3584_v11 = vpop.f32.mrb[3].mxu1 }
 0x203   : > { %v3711_v52 = vpop.f32.mrb[61].mxu0 }
 0x204   : > { %v4728_v53 = vpop.f32.mrb[62].mxu0 }
 0x205   : > { %v3712_v54 = vpop.f32.mrb[63].mxu0 }
 0x207   : > { %v4744_v15 = vpop.f32.mrb[4].mxu1 }
 0x208   : > { %v3587_v17 = vpop.f32.mrb[5].mxu1 }
 0x209   : > { %v717_v21 = vpop.f32.mrb[6].mxu1 }
 0x20a   : > { %v4730_v55 = vpop.f32.mrb[64].mxu0  ;;  %v3588_v25 = vpop.f32.mrb[7].mxu1 }
 0x20b   : > { %v3715_v57 = vpop.f32.mrb[65].mxu0 }
 0x20c   : > { %v4732_v58 = vpop.f32.mrb[66].mxu0 }
 0x20d   : > { %v3716_v59 = vpop.f32.mrb[67].mxu0 }
 0x20f   : > { %v4750_v29 = vpop.f32.mrb[8].mxu1 }
 0x210   : > { %v3591_v35 = vpop.f32.mrb[9].mxu1 }
 0x211   : > { %v4752_v9 = vpop.f32.mrb[10].mxu1 }
 0x212   : > { %v4734_v60 = vpop.f32.mrb[68].mxu0  ;;  %v3592_v19 = vpop.f32.mrb[11].mxu1 }
 0x213   : > { %v3719_v61 = vpop.f32.mrb[69].mxu0 }
 0x214   : > { %v4736_v62 = vpop.f32.mrb[70].mxu0 }
 0x215   : > { %v3720_v63 = vpop.f32.mrb[71].mxu0 }
 0x21a   : > { %v4738_v0 = vpop.f32.mrb[72].mxu0 }
 0x21b   : > { %v3723_v2 = vpop.f32.mrb[73].mxu0 }
 0x21c   : > { %v4740_v4 = vpop.f32.mrb[74].mxu0 }
 0x21d   : > { %v3724_v7 = vpop.f32.mrb[75].mxu0 }
 0x222   : > { %v4742_v12 = vpop.f32.mrb[76].mxu0 }
 0x223   : > { %v3727_v16 = vpop.f32.mrb[77].mxu0 }
 0x224   : > { %v4746_v20 = vpop.f32.mrb[78].mxu0 }
 0x225   : > { %v3728_v23 = vpop.f32.mrb[79].mxu0 }
 0x22a   : > { %v4748_v28 = vpop.f32.mrb[80].mxu0 }
 0x22b   : > { %v3731_v33 = vpop.f32.mrb[81].mxu0 }
 0x22c   : > { %v1301_v56 = vpop.f32.mrb[82].mxu0 }
 0x22d   : > { %v3732_v37 = vpop.f32.mrb[83].mxu0 }
 0x23d   : > { %v1000_v24 = vpop.permute.xlu0 %999 }
 0x23e   : > { %3662 = vmatmul.mubr.msk.bf16.vlgmr.msra.gmra.mrb[28].mxu1 %vm1037_vm2, %v1000_v24 }
 0x23f   : > { %3899 = vmatpush3.bf16.msra.mxu1 %v4555_v40  ;;  %3665 = vmatprep.mubr.msk.bf16.mxu1 %vm4250_vm1, %v4249_v5 }
 0x240   : > { %3898 = vmatprep.subr.bf16.mxu1 %v4249_v5 }
 0x243   : > { %3900 = vmatpush3.bf16.msra.mxu1 %v4565_v10 }
 0x244   : > { %3809 = vmatprep.subr.bf16.mxu1 %v4249_v5 }
 0x245   : > { %v1002_v27 = vpop.permute.xlu0 %1001 }
 0x246   : > { %3666 = vmatmul.mubr.msk.bf16.gmra.mrb[32].mxu1 %vm1037_vm2, %v1002_v27 }
 0x247   : > { %3669 = vmatprep.mubr.msk.bf16.mxu1 %vm4250_vm1, %v4249_v5 }
 0x24d   : > { %v1004_v41 = vpop.permute.xlu1 %1003 }
 0x24e   : > { %3670 = vmatmul.mubr.msk.bf16.gmra.mrb[36].mxu1 %vm1037_vm2, %v1004_v41 }
 0x24f   : > { %3673 = vmatprep.mubr.msk.bf16.mxu1 %vm4250_vm1, %v4249_v5 }
 0x255   : > { %v1006_v40 = vpop.permute.xlu1 %1005 }
 0x256   : > { %3674 = vmatmul.mubr.msk.bf16.gmra.mrb[40].mxu1 %vm1037_vm2, %v1006_v40 }
 0x257   : > { %3677 = vmatprep.mubr.msk.bf16.mxu1 %vm4250_vm1, %v4249_v5 }
 0x25d   : > { %v1008_v10 = vpop.permute.xlu0 %1007 }
 0x25e   : > { %3678 = vmatmul.mubr.msk.bf16.gmra.mrb[44].mxu1 %vm1037_vm2, %v1008_v10 }
 0x25f   : > { %3681 = vmatprep.mubr.msk.bf16.mxu1 %vm4250_vm1, %v4249_v5 }
 0x265   : > { %v1010_v39 = vpop.permute.xlu1 %1009 }
 0x266   : > { %3682 = vmatmul.mubr.msk.bf16.gmra.mrb[48].mxu1 %vm1037_vm2, %v1010_v39 }
 0x267   : > { %3685 = vmatprep.mubr.msk.bf16.mxu1 %vm4250_vm1, %v4249_v5 }
 0x26b   : > { %v1012_v43 = vpop.permute.xlu0 %1011 }
 0x26e   : > { %3686 = vmatmul.mubr.msk.bf16.gmra.mrb[52].mxu1 %vm1037_vm2, %v1012_v43 }
 0x26f   : > { %3749 = vmatprep.mubr.msk.bf16.mxu1 %vm4250_vm1, %v4249_v5 }
 0x276   : > { %3750 = vmatmul.mubr.msk.bf16.vlgmr.msra.gmra.mrb[12].mxu1 %vm549_vm0, %v1501_v18  ;;  %v4804_v18 = vrot.slane %v4455_v38, %v512_v13 }
 0x277   : > { %3753 = vmatprep.mubr.msk.bf16.mxu1 %vm4250_vm1, %v4249_v5 }
 0x278   : > { %v707_v22 = vadd.f32 %v706_v1, %v4804_v18  ;;  %v710_v26 = vadd.f32 %v709_v6, %v4804_v18  ;;  %v715_v36 = vadd.f32 %v4744_v15, %v4804_v18  ;;  %v718_v38 = vadd.f32 %v717_v21, %v4804_v18 }
 0x279   : > { %v723_v63 = vadd.f32 %v4750_v29, %v4804_v18  ;;  %v726_v1 = vadd.f32 %v4752_v9, %v4804_v18 }
 0x27e   : > { %3754 = vmatmul.mubr.msk.bf16.gmra.mrb[16].mxu1 %vm549_vm0, %v1502_v34 }
 0x27f   : > { %3757 = vmatprep.mubr.msk.bf16.mxu1 %vm4250_vm1, %v4249_v5 }
 0x286   : > { %3758 = vmatmul.mubr.msk.bf16.gmra.mrb[20].mxu1 %vm549_vm0, %v1503_v32 }
 0x287   : > { %3761 = vmatprep.mubr.msk.bf16.mxu1 %vm4250_vm1, %v4249_v5 }
 0x28e   : > { %3762 = vmatmul.mubr.msk.bf16.gmra.mrb[24].mxu1 %vm549_vm0, %v1504_v8 }
 0x28f   : > { %3825 = vmatprep.mubr.msk.bf16.mxu1 %vm4250_vm1, %v4249_v5 }
 0x29c   : > { %v1576_v34 = vpop.f32.mrb[84].mxu0 }
 0x29d   : > { %v4808_v31 = vadd.f32 %v1576_v34, %v707_v22  ;;  %v3739_v14 = vpop.f32.mrb[85].mxu0 }
 0x29e   : > { %v1579_v32 = vpop.f32.mrb[86].mxu0 }
 0x29f   : > { %v1643_v42 = vmax.f32 %v4808_v31, 0.0  ;;  %v4811_v44 = vadd.f32 %v1579_v32, %v710_v26  ;;  %v3740_v45 = vpop.f32.mrb[87].mxu0 }
 0x2a1   : > { %v1644_v46 = vmax.f32 %v4811_v44, 0.0  ;;  %1658 = vadd.xlane.f32.xlu1 %v1643_v42 }
 0x2a3   : > { %1660 = vadd.xlane.f32.xlu0 %v1644_v46 }
 0x2a4   : > { %v1584_v47 = vpop.f32.mrb[88].mxu0 }
 0x2a5   : > { %v4821_v49 = vadd.f32 %v1584_v47, %v715_v36  ;;  %v3743_v30 = vpop.f32.mrb[89].mxu0 }
 0x2a6   : > { %v1587_v52 = vpop.f32.mrb[90].mxu0 }
 0x2a7   : > { %v1645_v54 = vmax.f32 %v4821_v49, 0.0  ;;  %v4824_v57 = vadd.f32 %v1587_v52, %v718_v38  ;;  %v3744_v59 = vpop.f32.mrb[91].mxu0 }
 0x2a9   : > { %v1646_v61 = vmax.f32 %v4824_v57, 0.0  ;;  %1662 = vadd.xlane.f32.xlu0 %v1645_v54 }
 0x2ab   : > { %1664 = vadd.xlane.f32.xlu1 %v1646_v61 }
 0x2ac   : > { %v1592_v2 = vpop.f32.mrb[92].mxu0 }
 0x2ad   : > { %v4833_v3 = vadd.f32 %v1592_v2, %v723_v63  ;;  %v3747_v6 = vpop.f32.mrb[93].mxu0 }
 0x2ae   : > { %v1595_v7 = vpop.f32.mrb[94].mxu0 }
 0x2af   : > { %v1647_v11 = vmax.f32 %v4833_v3, 0.0  ;;  %v4836_v15 = vadd.f32 %v1595_v7, %v726_v1  ;;  %v3748_v16 = vpop.f32.mrb[95].mxu0 }
 0x2b1   : > { %v1648_v17 = vmax.f32 %v4836_v15, 0.0  ;;  %1666 = vadd.xlane.f32.xlu0 %v1647_v11  ;;  %v4036_v15 = vld [vmem:[%s6245_s9 + $0x10] sm:$0xff]  }
 0x2b3   : > { %1668 = vadd.xlane.f32.xlu1 %v1648_v17 }
 0x32e   : > { %v1659_v43 = vpop.xlane.xlu1 %1658 }
 0x32f   : > { %v1685_v22 = vmul.f32 0.0078125, %v1659_v43  ;;  %v4038_v43 = vld [vmem:[%s6245_s9 + $0x20] sm:$0xff]  }
 0x330   : > { %v1661_v8 = vpop.xlane.xlu0 %1660 }
 0x331   : > { %v4877_v30 = vsub.f32 %v1643_v42, %v1685_v22  ;;  %v1686_v59 = vmul.f32 0.0078125, %v1661_v8  ;;  %v4039_v8 = vld [vmem:[%s6245_s9 + $0x28] sm:$0xff]   ;;  %v4041_v22 = vld [vmem:[%s6245_s9 + $0x38] sm:$0xff]  }
 0x333   : > { %v1711_v7 = vmul.f32 %v4877_v30, %v4877_v30 }
 0x336   : > { %v1663_v14 = vpop.xlane.xlu0 %1662 }
 0x337   : > { %v1687_v47 = vmul.f32 0.0078125, %v1663_v14 }
 0x338   : > { %v1665_v63 = vpop.xlane.xlu1 %1664 }
 0x339   : > { %v4886_v16 = vsub.f32 %v1645_v54, %v1687_v47  ;;  %v1688_v42 = vmul.f32 0.0078125, %v1665_v63 }
 0x33e   : > { %v1667_v52 = vpop.xlane.xlu0 %1666 }
 0x33f   : > { %v1689_v2 = vmul.f32 0.0078125, %v1667_v52 }
 0x349   : > { %v1600_v21 = vpop.f32.mrb[12].mxu1 }
 0x34a   : > { %v4842_v23 = vadd.f32 %v1600_v21, %v4804_v18  ;;  %v3751_v25 = vpop.f32.mrb[13].mxu1 }
 0x34b   : > { %v1603_v29 = vpop.f32.mrb[14].mxu1 }
 0x34c   : > { %v1649_v33 = vmax.f32 %v4842_v23, 0.0  ;;  %v4846_v35 = vadd.f32 %v1603_v29, %v4804_v18  ;;  %v3752_v56 = vpop.f32.mrb[15].mxu1  ;;  %v4891_v29 = vsub.f32 %v1644_v46, %v1686_v59 }
 0x34d   : > { %v1669_v56 = vpop.xlane.xlu1 %1668 }
 0x34e   : > { %v1650_v9 = vmax.f32 %v4846_v35, 0.0  ;;  %1670 = vadd.xlane.f32.xlu0 %v1649_v33  ;;  %v1690_v54 = vmul.f32 0.0078125, %v1669_v56 }
 0x350   : > { %1672 = vadd.xlane.f32.xlu1 %v1650_v9 }
 0x351   : > { %v1608_v37 = vpop.f32.mrb[16].mxu1 }
 0x352   : > { %v4854_v19 = vadd.f32 %v1608_v37, %v4804_v18  ;;  %v3755_v24 = vpop.f32.mrb[17].mxu1  ;;  %v4897_v37 = vsub.f32 %v1647_v11, %v1689_v2  ;;  %v4911_v11 = vsub.f32 %v1648_v17, %v1690_v54  ;;  %v4037_v17 = vld [vmem:[%s6245_s9 + $0x18] sm:$0xff]  }
 0x353   : > { %v1611_v27 = vpop.f32.mrb[18].mxu1  ;;  %v1712_v24 = vmul.f32 %v4891_v29, %v4891_v29 }
 0x354   : > { %v1651_v41 = vmax.f32 %v4854_v19, 0.0  ;;  %v4858_v40 = vadd.f32 %v1611_v27, %v4804_v18  ;;  %v3756_v10 = vpop.f32.mrb[19].mxu1  ;;  %v4903_v27 = vsub.f32 %v1646_v61, %v1688_v42  ;;  %v1715_v44 = vmul.f32 %v4897_v37, %v4897_v37  ;;  %v4035_v61 = vld [vmem:[%s6245_s9 + $0x8] sm:$0xff]  }
 0x355   : > { %v4034_v10 = vld [vmem:[%s6245_s9] sm:$0xff]   ;;  %v1716_v57 = vmul.f32 %v4911_v11, %v4911_v11 }
 0x356   : > { %v1652_v39 = vmax.f32 %v4858_v40, 0.0  ;;  %1674 = vadd.xlane.f32.xlu0 %v1651_v41  ;;  %v1714_v46 = vmul.f32 %v4903_v27, %v4903_v27  ;;  %3766 = vmatpush3.bf16.msra.mxu0 %v4034_v10 }
 0x357   : > { %3767 = vmatprep.subr.bf16.mxu0 %v4249_v5 }
 0x358   : > { %1676 = vadd.xlane.f32.xlu1 %v1652_v39 }
 0x359   : > { %v1616_v13 = vpop.f32.mrb[20].mxu1 }
 0x35a   : > { %v4866_v26 = vadd.f32 %v1616_v13, %v4804_v18  ;;  %v3759_v34 = vpop.f32.mrb[21].mxu1  ;;  %3768 = vmatpush3.bf16.msra.mxu0 %v4035_v61  ;;  %v4040_v13 = vld [vmem:[%s6245_s9 + $0x30] sm:$0xff]  }
 0x35b   : > { %v1619_v32 = vpop.f32.mrb[22].mxu1  ;;  %3769 = vmatprep.subr.bf16.mxu0 %v4249_v5 }
 0x35c   : > { %v1653_v45 = vmax.f32 %v4866_v26, 0.0  ;;  %v4870_v36 = vadd.f32 %v1619_v32, %v4804_v18  ;;  %v3760_v38 = vpop.f32.mrb[23].mxu1 }
 0x35e   : > { %v1654_v49 = vmax.f32 %v4870_v36, 0.0  ;;  %1678 = vadd.xlane.f32.xlu0 %v1653_v45  ;;  %3770 = vmatpush3.bf16.msra.mxu0 %v4036_v15 }
 0x35f   : > { %3771 = vmatprep.subr.bf16.mxu0 %v4249_v5 }
 0x360   : > { %1680 = vadd.xlane.f32.xlu1 %v1654_v49 }
 0x361   : > { %v1624_v1 = vpop.f32.mrb[24].mxu1 }
 0x362   : > { %v4882_v3 = vadd.f32 %v1624_v1, %v4804_v18  ;;  %v3763_v6 = vpop.f32.mrb[25].mxu1  ;;  %v1713_v18 = vmul.f32 %v4886_v16, %v4886_v16  ;;  %3772 = vmatpush3.bf16.msra.mxu0 %v4037_v17 }
 0x363   : > { %v1627_v31 = vpop.f32.mrb[26].mxu1  ;;  %3773 = vmatprep.subr.bf16.mxu0 %v4249_v5 }
 0x364   : > { %v1655_v21 = vmax.f32 %v4882_v3, 0.0  ;;  %v3764_v25 = vpop.f32.mrb[27].mxu1  ;;  %1724 = vadd.xlane.f32.xlu1 %v1711_v7 }
 0x366   : > { %1682 = vadd.xlane.f32.xlu0 %v1655_v21  ;;  %3774 = vmatpush3.bf16.msra.mxu0 %v4038_v43 }
 0x367   : > { %3775 = vmatprep.subr.bf16.mxu0 %v4249_v5 }
 0x368   : > { %1728 = vadd.xlane.f32.xlu1 %v1713_v18 }
 0x36a   : > { %1726 = vadd.xlane.f32.xlu0 %v1712_v24  ;;  %3776 = vmatpush3.bf16.msra.mxu0 %v4039_v8 }
 0x36b   : > { %3777 = vmatprep.subr.bf16.mxu0 %v4249_v5 }
 0x36c   : > { %1732 = vadd.xlane.f32.xlu1 %v1715_v44 }
 0x36e   : > { %1730 = vadd.xlane.f32.xlu0 %v1714_v46  ;;  %3778 = vmatpush3.bf16.msra.mxu0 %v4040_v13 }
 0x36f   : > { %3779 = vmatprep.subr.bf16.mxu0 %v4249_v5 }
 0x372   : > { %1734 = vadd.xlane.f32.xlu0 %v1716_v57  ;;  %3780 = vmatpush3.bf16.msra.mxu0 %v4041_v22 }
 0x3db   : > { %v1671_v34 = vpop.xlane.xlu0 %1670 }
 0x3dc   : > { %v1691_v14 = vmul.f32 0.0078125, %v1671_v34 }
 0x3dd   : > { %v1673_v32 = vpop.xlane.xlu1 %1672 }
 0x3de   : > { %v1692_v38 = vmul.f32 0.0078125, %v1673_v32  ;;  %v4948_v47 = vsub.f32 %v1649_v33, %v1691_v14 }
 0x3e0   : > { %v1717_v52 = vmul.f32 %v4948_v47, %v4948_v47  ;;  %v4954_v59 = vsub.f32 %v1650_v9, %v1692_v38 }
 0x3e2   : > { %1736 = vadd.xlane.f32.xlu1 %v1717_v52  ;;  %v1718_v63 = vmul.f32 %v4954_v59, %v4954_v59  ;;  %v4992_v52 = vld [vmem:[%s6248_s12 + $0x1] ss:$0 sm:$0xff] }
 0x3e3   : > { %v1675_v1 = vpop.xlane.xlu0 %1674 }
 0x3e4   : > { %v1693_v2 = vmul.f32 0.0078125, %v1675_v1  ;;  %1738 = vadd.xlane.f32.xlu0 %v1718_v63 }
 0x3e5   : > { %v1677_v6 = vpop.xlane.xlu1 %1676 }
 0x3e6   : > { %v1694_v7 = vmul.f32 0.0078125, %v1677_v6  ;;  %v4960_v23 = vsub.f32 %v1651_v41, %v1693_v2 }
 0x3e8   : > { %v1719_v33 = vmul.f32 %v4960_v23, %v4960_v23  ;;  %v4966_v35 = vsub.f32 %v1652_v39, %v1694_v7  ;;  %v4999_v7 = vld [vmem:[%s6248_s12 + $0x2] ss:$0 sm:$0xff] }
 0x3ea   : > { %1740 = vadd.xlane.f32.xlu1 %v1719_v33  ;;  %v1720_v9 = vmul.f32 %v4966_v35, %v4966_v35 }
 0x3eb   : > { %v1679_v31 = vpop.xlane.xlu0 %1678 }
 0x3ec   : > { %v1695_v42 = vmul.f32 0.0078125, %v1679_v31  ;;  %1742 = vadd.xlane.f32.xlu0 %v1720_v9 }
 0x3ed   : > { %v1681_v25 = vpop.xlane.xlu1 %1680 }
 0x3ee   : > { %v1696_v56 = vmul.f32 0.0078125, %v1681_v25  ;;  %v4972_v19 = vsub.f32 %v1653_v45, %v1695_v42 }
 0x3f0   : > { %v1721_v41 = vmul.f32 %v4972_v19, %v4972_v19  ;;  %v4978_v40 = vsub.f32 %v1654_v49, %v1696_v56 }
 0x3f1   : > { %v1725_v39 = vpop.xlane.xlu1 %1724 }
 0x3f2   : > { %v1750_v18 = vmul.f32 0.0078125, %v1725_v39  ;;  %1744 = vadd.xlane.f32.xlu1 %v1721_v41  ;;  %v1722_v54 = vmul.f32 %v4978_v40, %v4978_v40 }
 0x3f3   : > { %v1683_v24 = vpop.xlane.xlu0 %1682 }
 0x3f4   : > { %v1763_v44 = vadd.f32 1e-05, %v1750_v18  ;;  %v1697_v46 = vmul.f32 0.0078125, %v1683_v24  ;;  %1746 = vadd.xlane.f32.xlu0 %v1722_v54 }
 0x3f5   : > { %v1729_v26 = vpop.xlane.xlu1 %1728 }
 0x3f6   : > { %4058 = vrsqrt.f32 %v1763_v44  ;;  %v1752_v45 = vmul.f32 0.0078125, %v1729_v26  ;;  %v4984_v10 = vsub.f32 %v1655_v21, %v1697_v46 }
 0x3f7   : > { %v1727_v36 = vpop.xlane.xlu0 %1726 }
 0x3f8   : > { %v1751_v49 = vmul.f32 0.0078125, %v1727_v36  ;;  %v1723_v57 = vmul.f32 %v4984_v10, %v4984_v10  ;;  %v1765_v61 = vadd.f32 1e-05, %v1752_v45 }
 0x3f9   : > { %v1733_v17 = vpop.xlane.xlu1 %1732 }
 0x3fa   : > { %v1764_v15 = vadd.f32 1e-05, %v1751_v49  ;;  %1748 = vadd.xlane.f32.xlu1 %v1723_v57  ;;  %v1754_v13 = vmul.f32 0.0078125, %v1733_v17 }
 0x3fb   : > { %v1731_v43 = vpop.xlane.xlu0 %1730 }
 0x3fc   : > { %4060 = vrsqrt.f32 %v1764_v15  ;;  %v1753_v8 = vmul.f32 0.0078125, %v1731_v43  ;;  %v1767_v21 = vadd.f32 1e-05, %v1754_v13 }
 0x3fd   : > { %4062 = vrsqrt.f32 %v1765_v61 }
 0x3fe   : > { %v1766_v22 = vadd.f32 1e-05, %v1753_v8 }
 0x3ff   : > { %v1735_v34 = vpop.xlane.xlu0 %1734 }
 0x400   : > { %v4059_v14 = vpop.eup %4058  ;;  %4064 = vrsqrt.f32 %v1766_v22  ;;  %v1755_v3 = vmul.f32 0.0078125, %v1735_v34 }
 0x401   : > { %v1789_v38 = vmul.f32 %v4059_v14, %v4877_v30 }
 0x402   : > { %v1768_v32 = vadd.f32 1e-05, %v1755_v3 }
 0x403   : > { %v1806_v1 = vmul.f32 %v4992_v52, %v1789_v38 }
 0x404   : > { %4066 = vrsqrt.f32 %v1768_v32 }
 0x405   : > { %4068 = vrsqrt.f32 %v1767_v21  ;;  %v1823_v9 = vadd.f32 %v4999_v7, %v1806_v1 }
 0x406   : > { %v4061_v63 = vpop.eup %4060 }
 0x407   : > { %v1790_v2 = vmul.f32 %v4061_v63, %v4891_v29  ;;  %v4063_v6 = vpop.eup %4062 }
 0x408   : > { %v1791_v42 = vmul.f32 %v4063_v6, %v4886_v16 }
 0x409   : > { %v1807_v30 = vmul.f32 %v4992_v52, %v1790_v2 }
 0x40a   : > { %v4065_v33 = vpop.eup %4064  ;;  %v1808_v39 = vmul.f32 %v4992_v52, %v1791_v42 }
 0x40b   : > { %v1824_v31 = vadd.f32 %v4999_v7, %v1807_v30  ;;  %v1792_v25 = vmul.f32 %v4065_v33, %v4903_v27 }
 0x40c   : > { %v1825_v44 = vadd.f32 %v4999_v7, %v1808_v39 }
 0x40d   : > { %v1836_v56 = vpack.c.bf16 %v1824_v31, %v1823_v9  ;;  %v1809_v29 = vmul.f32 %v4992_v52, %v1792_v25 }
 0x40e   : > { %v4067_v41 = vpop.eup %4066 }
 0x40f   : > { %3782 = vmatmul.mubr.bf16.vlgmr.msra.gmra.mrb[96].mxu0 %v1836_v56  ;;  %v4069_v18 = vpop.eup %4068  ;;  %v1826_v54 = vadd.f32 %v4999_v7, %v1809_v29  ;;  %v1794_v24 = vmul.f32 %v4067_v41, %v4911_v11 }
 0x410   : > { %3785 = vmatprep.mubr.msk.bf16.mxu0 %vm4250_vm1, %v4249_v5  ;;  %v1793_v16 = vmul.f32 %v4069_v18, %v4897_v37 }
 0x411   : > { %v1837_v27 = vpack.c.bf16 %v1826_v54, %v1825_v44  ;;  %v1811_v46 = vmul.f32 %v4992_v52, %v1794_v24 }
 0x412   : > { %v1810_v26 = vmul.f32 %v4992_v52, %v1793_v16 }
 0x413   : > { %v1828_v45 = vadd.f32 %v4999_v7, %v1811_v46 }
 0x414   : > { %v1827_v36 = vadd.f32 %v4999_v7, %v1810_v26 }
 0x416   : > { %v1838_v49 = vpack.c.bf16 %v1828_v45, %v1827_v36 }
 0x417   : > { %3786 = vmatmul.mubr.bf16.gmra.mrb[100].mxu0 %v1837_v27 }
 0x418   : > { %3789 = vmatprep.mubr.msk.bf16.mxu0 %vm4250_vm1, %v4249_v5 }
 0x41f   : > { %3790 = vmatmul.mubr.bf16.gmra.mrb[104].mxu0 %v1838_v49 }
 0x420   : > { %3793 = vmatprep.mubr.msk.bf16.mxu0 %vm4250_vm1, %v4249_v5 }
 0x46f   : > { %v1737_v11 = vpop.xlane.xlu1 %1736 }
 0x470   : > { %v1756_v37 = vmul.f32 0.0078125, %v1737_v11 }
 0x471   : > { %v1739_v57 = vpop.xlane.xlu0 %1738 }
 0x472   : > { %v1769_v61 = vadd.f32 1e-05, %v1756_v37  ;;  %v1757_v15 = vmul.f32 0.0078125, %v1739_v57 }
 0x474   : > { %4070 = vrsqrt.f32 %v1769_v61  ;;  %v1770_v17 = vadd.f32 1e-05, %v1757_v15 }
 0x476   : > { %4072 = vrsqrt.f32 %v1770_v17 }
 0x477   : > { %v1741_v43 = vpop.xlane.xlu1 %1740 }
 0x478   : > { %v1758_v8 = vmul.f32 0.0078125, %v1741_v43  ;;  %v5052_v43 = vld [vmem:[%s6248_s12 + $0x3] ss:$0 sm:$0xff] }
 0x479   : > { %v1743_v13 = vpop.xlane.xlu0 %1742 }
 0x47a   : > { %v1771_v22 = vadd.f32 1e-05, %v1758_v8  ;;  %v1759_v34 = vmul.f32 0.0078125, %v1743_v13 }
 0x47c   : > { %4074 = vrsqrt.f32 %v1771_v22  ;;  %v1772_v14 = vadd.f32 1e-05, %v1759_v34 }
 0x47e   : > { %v4071_v3 = vpop.eup %4070  ;;  %4076 = vrsqrt.f32 %v1772_v14 }
 0x47f   : > { %v1745_v21 = vpop.xlane.xlu1 %1744  ;;  %v1795_v32 = vmul.f32 %v4071_v3, %v4948_v47 }
 0x480   : > { %v4073_v38 = vpop.eup %4072  ;;  %v1760_v63 = vmul.f32 0.0078125, %v1745_v21 }
 0x481   : > { %v1747_v1 = vpop.xlane.xlu0 %1746  ;;  %v1796_v2 = vmul.f32 %v4073_v38, %v4954_v59  ;;  %v1812_v6 = vmul.f32 %v4992_v52, %v1795_v32 }
 0x482   : > { %v1773_v30 = vadd.f32 1e-05, %v1760_v63  ;;  %v1761_v33 = vmul.f32 0.0078125, %v1747_v1 }
 0x483   : > { %v1813_v9 = vmul.f32 %v4992_v52, %v1796_v2  ;;  %v1829_v42 = vadd.f32 %v4999_v7, %v1812_v6 }
 0x484   : > { %4078 = vrsqrt.f32 %v1773_v30  ;;  %v1774_v31 = vadd.f32 1e-05, %v1761_v33 }
 0x485   : > { %v1830_v25 = vadd.f32 %v4999_v7, %v1813_v9 }
 0x486   : > { %v4075_v56 = vpop.eup %4074  ;;  %4080 = vrsqrt.f32 %v1774_v31 }
 0x487   : > { %v1749_v47 = vpop.xlane.xlu1 %1748  ;;  %v1839_v29 = vpack.c.bf16 %v1830_v25, %v1829_v42  ;;  %v1797_v41 = vmul.f32 %v4075_v56, %v4960_v23 }
 0x488   : > { %v4077_v39 = vpop.eup %4076  ;;  %v1762_v59 = vmul.f32 0.0078125, %v1749_v47 }
 0x489   : > { %3794 = vmatmul.mubr.bf16.gmra.mrb[108].mxu0 %v1839_v29  ;;  %v1798_v18 = vmul.f32 %v4077_v39, %v4966_v35  ;;  %v1814_v54 = vmul.f32 %v4992_v52, %v1797_v41 }
 0x48a   : > { %v1775_v24 = vadd.f32 1e-05, %v1762_v59  ;;  %3797 = vmatprep.mubr.msk.bf16.mxu0 %vm4250_vm1, %v4249_v5 }
 0x48b   : > { %v1815_v44 = vmul.f32 %v4992_v52, %v1798_v18  ;;  %v1831_v16 = vadd.f32 %v4999_v7, %v1814_v54 }
 0x48c   : > { %4082 = vrsqrt.f32 %v1775_v24 }
 0x48d   : > { %v1832_v27 = vadd.f32 %v4999_v7, %v1815_v44 }
 0x48e   : > { %v4079_v46 = vpop.eup %4078 }
 0x48f   : > { %v1840_v23 = vpack.c.bf16 %v1832_v27, %v1831_v16  ;;  %v1799_v26 = vmul.f32 %v4079_v46, %v4972_v19 }
 0x490   : > { %v4081_v45 = vpop.eup %4080 }
 0x491   : > { %3798 = vmatmul.mubr.bf16.gmra.mrb[112].mxu0 %v1840_v23  ;;  %v1800_v35 = vmul.f32 %v4081_v45, %v4978_v40  ;;  %v1816_v36 = vmul.f32 %v4992_v52, %v1799_v26 }
 0x492   : > { %3801 = vmatprep.mubr.msk.bf16.mxu0 %vm4250_vm1, %v4249_v5 }
 0x493   : > { %v1817_v49 = vmul.f32 %v4992_v52, %v1800_v35  ;;  %v1833_v11 = vadd.f32 %v4999_v7, %v1816_v36 }
 0x495   : > { %v1834_v37 = vadd.f32 %v4999_v7, %v1817_v49 }
 0x496   : > { %v4083_v57 = vpop.eup %4082 }
 0x497   : > { %v1841_v61 = vpack.c.bf16 %v1834_v37, %v1833_v11  ;;  %v1801_v15 = vmul.f32 %v4083_v57, %v4984_v10 }
 0x499   : > { %3802 = vmatmul.mubr.bf16.gmra.mrb[116].mxu0 %v1841_v61  ;;  %v1818_v19 = vmul.f32 %v4992_v52, %v1801_v15 }
 0x49a   : > { %3805 = vmatprep.mubr.msk.bf16.mxu0 %vm4250_vm1, %v4249_v5 }
 0x49b   : > { %v1835_v40 = vadd.f32 %v4999_v7, %v1818_v19 }
 0x49d   : > { %v1842_v17 = vpack.c.bf16 %v1835_v40, %v1835_v40 }
 0x4a1   : > { %3806 = vmatmul.mubr.bf16.gmra.mrb[120].mxu0 %v1842_v17 }
 0x4e2   : > { %v1946_v8 = vpop.f32.mrb[96].mxu0 }
 0x4e3   : > { %v5055_v13 = vadd.f32 %v5052_v43, %v1946_v8  ;;  %v3783_v10 = vpop.f32.mrb[97].mxu0 }
 0x4e4   : > { %v1949_v22 = vpop.f32.mrb[98].mxu0 }
 0x4e5   : > { %v2000_v52 = vmax.f32 %v5055_v13, 0.0  ;;  %v5059_v34 = vadd.f32 %v5052_v43, %v1949_v22  ;;  %v3784_v14 = vpop.f32.mrb[99].mxu0 }
 0x4e7   : > { %v2001_v7 = vmax.f32 %v5059_v34, 0.0  ;;  %2015 = vadd.xlane.f32.xlu0 %v2000_v52 }
 0x4e9   : > { %2017 = vadd.xlane.f32.xlu1 %v2001_v7 }
 0x4ea   : > { %v1954_v3 = vpop.f32.mrb[100].mxu0 }
 0x4eb   : > { %v5067_v21 = vadd.f32 %v5052_v43, %v1954_v3  ;;  %v3787_v32 = vpop.f32.mrb[101].mxu0 }
 0x4ec   : > { %v1957_v38 = vpop.f32.mrb[102].mxu0 }
 0x4ed   : > { %v2002_v63 = vmax.f32 %v5067_v21, 0.0  ;;  %v5071_v1 = vadd.f32 %v5052_v43, %v1957_v38  ;;  %v3788_v2 = vpop.f32.mrb[103].mxu0 }
 0x4ef   : > { %v2003_v6 = vmax.f32 %v5071_v1, 0.0  ;;  %2019 = vadd.xlane.f32.xlu0 %v2002_v63 }
 0x4f1   : > { %2021 = vadd.xlane.f32.xlu1 %v2003_v6 }
 0x4f2   : > { %v1962_v30 = vpop.f32.mrb[104].mxu0 }
 0x4f3   : > { %v5079_v33 = vadd.f32 %v5052_v43, %v1962_v30  ;;  %v3791_v9 = vpop.f32.mrb[105].mxu0 }
 0x4f4   : > { %v1965_v31 = vpop.f32.mrb[106].mxu0 }
 0x4f5   : > { %v2004_v42 = vmax.f32 %v5079_v33, 0.0  ;;  %v5083_v25 = vadd.f32 %v5052_v43, %v1965_v31  ;;  %v3792_v56 = vpop.f32.mrb[107].mxu0 }
 0x4f7   : > { %v2005_v47 = vmax.f32 %v5083_v25, 0.0  ;;  %2023 = vadd.xlane.f32.xlu0 %v2004_v42  ;;  %v4046_v25 = vld [vmem:[%s6246_s10 + $0x20] sm:$0xff]  }
 0x4f9   : > { %2025 = vadd.xlane.f32.xlu1 %v2005_v47 }
 0x55c   : > { %v1970_v29 = vpop.f32.mrb[108].mxu0 }
 0x55d   : > { %v5091_v41 = vadd.f32 %v5052_v43, %v1970_v29  ;;  %v3795_v39 = vpop.f32.mrb[109].mxu0 }
 0x55e   : > { %v1973_v59 = vpop.f32.mrb[110].mxu0 }
 0x55f   : > { %v2006_v18 = vmax.f32 %v5091_v41, 0.0  ;;  %v5095_v54 = vadd.f32 %v5052_v43, %v1973_v59  ;;  %v3796_v24 = vpop.f32.mrb[111].mxu0 }
 0x561   : > { %v2007_v44 = vmax.f32 %v5095_v54, 0.0  ;;  %2027 = vadd.xlane.f32.xlu0 %v2006_v18 }
 0x563   : > { %2029 = vadd.xlane.f32.xlu1 %v2007_v44 }
 0x564   : > { %v1978_v16 = vpop.f32.mrb[112].mxu0 }
 0x565   : > { %v5103_v27 = vadd.f32 %v5052_v43, %v1978_v16  ;;  %v3799_v46 = vpop.f32.mrb[113].mxu0 }
 0x566   : > { %v1981_v23 = vpop.f32.mrb[114].mxu0 }
 0x567   : > { %v2008_v26 = vmax.f32 %v5103_v27, 0.0  ;;  %v5107_v45 = vadd.f32 %v5052_v43, %v1981_v23  ;;  %v3800_v35 = vpop.f32.mrb[115].mxu0 }
 0x569   : > { %v2009_v36 = vmax.f32 %v5107_v45, 0.0  ;;  %2031 = vadd.xlane.f32.xlu0 %v2008_v26 }
 0x56b   : > { %2033 = vadd.xlane.f32.xlu1 %v2009_v36 }
 0x56c   : > { %v1986_v49 = vpop.f32.mrb[116].mxu0 }
 0x56d   : > { %v5115_v11 = vadd.f32 %v5052_v43, %v1986_v49  ;;  %v3803_v37 = vpop.f32.mrb[117].mxu0 }
 0x56e   : > { %v1989_v57 = vpop.f32.mrb[118].mxu0  ;;  %v4044_v37 = vld [vmem:[%s6246_s10 + $0x10] sm:$0xff]  }
 0x56f   : > { %v2010_v61 = vmax.f32 %v5115_v11, 0.0  ;;  %v5119_v15 = vadd.f32 %v5052_v43, %v1989_v57  ;;  %v3804_v19 = vpop.f32.mrb[119].mxu0  ;;  %v4048_v57 = vld [vmem:[%s6246_s10 + $0x30] sm:$0xff]  }
 0x570   : > { %v4049_v19 = vld [vmem:[%s6246_s10 + $0x38] sm:$0xff]  }
 0x571   : > { %v2011_v40 = vmax.f32 %v5119_v15, 0.0  ;;  %2035 = vadd.xlane.f32.xlu0 %v2010_v61 }
 0x573   : > { %2037 = vadd.xlane.f32.xlu1 %v2011_v40 }
 0x574   : > { %v2016_v17 = vpop.xlane.xlu0 %2015  ;;  %v1994_v8 = vpop.f32.mrb[120].mxu0 }
 0x575   : > { %v2041_v10 = vmul.f32 0.0078125, %v2016_v17  ;;  %v5127_v22 = vadd.f32 %v5052_v43, %v1994_v8  ;;  %v3807_v14 = vpop.f32.mrb[121].mxu0 }
 0x576   : > { %v2018_v3 = vpop.xlane.xlu1 %2017  ;;  %v1997_v32 = vpop.f32.mrb[122].mxu0 }
 0x577   : > { %v2012_v38 = vmax.f32 %v5127_v22, 0.0  ;;  %v2042_v2 = vmul.f32 0.0078125, %v2018_v3  ;;  %v3808_v30 = vpop.f32.mrb[123].mxu0  ;;  %v5132_v9 = vsub.f32 %v2000_v52, %v2041_v10 }
 0x579   : > { %2039 = vadd.xlane.f32.xlu0 %v2012_v38  ;;  %v2067_v31 = vmul.f32 %v5132_v9, %v5132_v9  ;;  %v5140_v43 = vsub.f32 %v2001_v7, %v2042_v2  ;;  %v4042_v7 = vld [vmem:[%s6246_s10] sm:$0xff]  }
 0x57a   : > { %3810 = vmatpush3.bf16.msra.mxu1 %v4042_v7 }
 0x57b   : > { %2080 = vadd.xlane.f32.xlu1 %v2067_v31  ;;  %v2068_v56 = vmul.f32 %v5140_v43, %v5140_v43  ;;  %3811 = vmatprep.subr.bf16.mxu1 %v4249_v5 }
 0x57c   : > { %v2020_v29 = vpop.xlane.xlu0 %2019 }
 0x57d   : > { %v2043_v39 = vmul.f32 0.0078125, %v2020_v29  ;;  %2082 = vadd.xlane.f32.xlu0 %v2068_v56 }
 0x57e   : > { %v2022_v13 = vpop.xlane.xlu1 %2021 }
 0x57f   : > { %v2044_v52 = vmul.f32 0.0078125, %v2022_v13  ;;  %v5146_v59 = vsub.f32 %v2002_v63, %v2043_v39  ;;  %v4043_v63 = vld [vmem:[%s6246_s10 + $0x8] sm:$0xff]  }
 0x580   : > { %3812 = vmatpush3.bf16.msra.mxu1 %v4043_v63 }
 0x581   : > { %v2069_v24 = vmul.f32 %v5146_v59, %v5146_v59  ;;  %v5152_v34 = vsub.f32 %v2003_v6, %v2044_v52  ;;  %3813 = vmatprep.subr.bf16.mxu1 %v4249_v5 }
 0x583   : > { %2084 = vadd.xlane.f32.xlu1 %v2069_v24  ;;  %v2070_v16 = vmul.f32 %v5152_v34, %v5152_v34 }
 0x584   : > { %v2024_v46 = vpop.xlane.xlu0 %2023  ;;  %3814 = vmatpush3.bf16.msra.mxu1 %v4044_v37 }
 0x585   : > { %v2045_v21 = vmul.f32 0.0078125, %v2024_v46  ;;  %2086 = vadd.xlane.f32.xlu0 %v2070_v16  ;;  %3815 = vmatprep.subr.bf16.mxu1 %v4249_v5 }
 0x586   : > { %v2026_v1 = vpop.xlane.xlu1 %2025 }
 0x587   : > { %v2046_v6 = vmul.f32 0.0078125, %v2026_v1  ;;  %v5165_v23 = vsub.f32 %v2004_v42, %v2045_v21  ;;  %v4045_v42 = vld [vmem:[%s6246_s10 + $0x18] sm:$0xff]  }
 0x588   : > { %3816 = vmatpush3.bf16.msra.mxu1 %v4045_v42 }
 0x589   : > { %v2071_v35 = vmul.f32 %v5165_v23, %v5165_v23  ;;  %v5172_v49 = vsub.f32 %v2005_v47, %v2046_v6  ;;  %3817 = vmatprep.subr.bf16.mxu1 %v4249_v5  ;;  %v4047_v47 = vld [vmem:[%s6246_s10 + $0x28] sm:$0xff]  }
 0x58b   : > { %2088 = vadd.xlane.f32.xlu1 %v2071_v35  ;;  %v2072_v33 = vmul.f32 %v5172_v49, %v5172_v49 }
 0x58c   : > { %3818 = vmatpush3.bf16.msra.mxu1 %v4046_v25 }
 0x58d   : > { %2090 = vadd.xlane.f32.xlu0 %v2072_v33  ;;  %3819 = vmatprep.subr.bf16.mxu1 %v4249_v5 }
 0x590   : > { %3820 = vmatpush3.bf16.msra.mxu1 %v4047_v47 }
 0x591   : > { %3821 = vmatprep.subr.bf16.mxu1 %v4249_v5 }
 0x594   : > { %3822 = vmatpush3.bf16.msra.mxu1 %v4048_v57 }
 0x595   : > { %3823 = vmatprep.subr.bf16.mxu1 %v4249_v5 }
 0x598   : > { %3824 = vmatpush3.bf16.msra.mxu1 %v4049_v19 }
 0x599   : > { %3853 = vmatprep.subr.bf16.mxu1 %v4249_v5 }
 0x5ee   : > { %v2028_v17 = vpop.xlane.xlu0 %2027 }
 0x5ef   : > { %v2047_v8 = vmul.f32 0.0078125, %v2028_v17 }
 0x5f0   : > { %v2030_v10 = vpop.xlane.xlu1 %2029 }
 0x5f1   : > { %v2048_v14 = vmul.f32 0.0078125, %v2030_v10  ;;  %v5202_v3 = vsub.f32 %v2006_v18, %v2047_v8 }
 0x5f3   : > { %v2073_v32 = vmul.f32 %v5202_v3, %v5202_v3  ;;  %v5208_v2 = vsub.f32 %v2007_v44, %v2048_v14 }
 0x5f5   : > { %2092 = vadd.xlane.f32.xlu1 %v2073_v32  ;;  %v2074_v30 = vmul.f32 %v5208_v2, %v5208_v2 }
 0x5f6   : > { %v2032_v31 = vpop.xlane.xlu0 %2031 }
 0x5f7   : > { %v2049_v56 = vmul.f32 0.0078125, %v2032_v31  ;;  %2094 = vadd.xlane.f32.xlu0 %v2074_v30 }
 0x5f8   : > { %v2034_v29 = vpop.xlane.xlu1 %2033 }
 0x5f9   : > { %v2050_v39 = vmul.f32 0.0078125, %v2034_v29  ;;  %v5214_v41 = vsub.f32 %v2008_v26, %v2049_v56  ;;  %v5253_v56 = vld [vmem:[%s6248_s12 + $0x5] ss:$0 sm:$0xff] }
 0x5fb   : > { %v2075_v18 = vmul.f32 %v5214_v41, %v5214_v41  ;;  %v5220_v54 = vsub.f32 %v2009_v36, %v2050_v39 }
 0x5fd   : > { %2096 = vadd.xlane.f32.xlu1 %v2075_v18  ;;  %v2076_v44 = vmul.f32 %v5220_v54, %v5220_v54 }
 0x5fe   : > { %v2036_v13 = vpop.xlane.xlu0 %2035 }
 0x5ff   : > { %v2051_v52 = vmul.f32 0.0078125, %v2036_v13  ;;  %2098 = vadd.xlane.f32.xlu0 %v2076_v44 }
 0x600   : > { %v2038_v24 = vpop.xlane.xlu1 %2037 }
 0x601   : > { %v2052_v7 = vmul.f32 0.0078125, %v2038_v24  ;;  %v5226_v27 = vsub.f32 %v2010_v61, %v2051_v52 }
 0x603   : > { %v2077_v26 = vmul.f32 %v5226_v27, %v5226_v27  ;;  %v5232_v45 = vsub.f32 %v2011_v40, %v2052_v7 }
 0x605   : > { %2100 = vadd.xlane.f32.xlu1 %v2077_v26  ;;  %v2078_v36 = vmul.f32 %v5232_v45, %v5232_v45 }
 0x606   : > { %v2040_v16 = vpop.xlane.xlu0 %2039 }
 0x607   : > { %v2053_v46 = vmul.f32 0.0078125, %v2040_v16  ;;  %2102 = vadd.xlane.f32.xlu0 %v2078_v36 }
 0x608   : > { %v2081_v21 = vpop.xlane.xlu1 %2080 }
 0x609   : > { %v2106_v63 = vmul.f32 0.0078125, %v2081_v21  ;;  %v5238_v11 = vsub.f32 %v2012_v38, %v2053_v46  ;;  %v5245_v38 = vld [vmem:[%s6248_s12 + $0x4] ss:$0 sm:$0xff] }
 0x60a   : > { %v2083_v61 = vpop.xlane.xlu0 %2082 }
 0x60b   : > { %v2119_v1 = vadd.f32 1e-05, %v2106_v63  ;;  %v2107_v6 = vmul.f32 0.0078125, %v2083_v61  ;;  %v2079_v15 = vmul.f32 %v5238_v11, %v5238_v11 }
 0x60d   : > { %4084 = vrsqrt.f32 %v2119_v1  ;;  %v2120_v40 = vadd.f32 1e-05, %v2107_v6  ;;  %2104 = vadd.xlane.f32.xlu1 %v2079_v15 }
 0x60f   : > { %4086 = vrsqrt.f32 %v2120_v40 }
 0x610   : > { %v2085_v35 = vpop.xlane.xlu1 %2084 }
 0x611   : > { %v2108_v37 = vmul.f32 0.0078125, %v2085_v35 }
 0x612   : > { %v2087_v33 = vpop.xlane.xlu0 %2086 }
 0x613   : > { %v2121_v42 = vadd.f32 1e-05, %v2108_v37  ;;  %v2109_v25 = vmul.f32 0.0078125, %v2087_v33 }
 0x615   : > { %4088 = vrsqrt.f32 %v2121_v42  ;;  %v2122_v47 = vadd.f32 1e-05, %v2109_v25 }
 0x617   : > { %v4085_v22 = vpop.eup %4084  ;;  %4090 = vrsqrt.f32 %v2122_v47 }
 0x618   : > { %v2145_v57 = vmul.f32 %v4085_v22, %v5132_v9  ;;  %v2089_v19 = vpop.xlane.xlu1 %2088 }
 0x619   : > { %v4087_v17 = vpop.eup %4086  ;;  %v2110_v8 = vmul.f32 0.0078125, %v2089_v19 }
 0x61a   : > { %v2162_v10 = vmul.f32 %v5245_v38, %v2145_v57  ;;  %v2146_v14 = vmul.f32 %v4087_v17, %v5140_v43  ;;  %v2091_v32 = vpop.xlane.xlu0 %2090 }
 0x61b   : > { %v2123_v30 = vadd.f32 1e-05, %v2110_v8  ;;  %v2111_v31 = vmul.f32 0.0078125, %v2091_v32 }
 0x61c   : > { %v2163_v29 = vmul.f32 %v5245_v38, %v2146_v14  ;;  %v2179_v9 = vadd.f32 %v5253_v56, %v2162_v10 }
 0x61d   : > { %4092 = vrsqrt.f32 %v2123_v30  ;;  %v2124_v39 = vadd.f32 1e-05, %v2111_v31 }
 0x61e   : > { %v2180_v18 = vadd.f32 %v5253_v56, %v2163_v29 }
 0x61f   : > { %v4089_v44 = vpop.eup %4088  ;;  %4094 = vrsqrt.f32 %v2124_v39 }
 0x620   : > { %v2192_v13 = vpack.c.bf16 %v2180_v18, %v2179_v9  ;;  %v2147_v43 = vmul.f32 %v4089_v44, %v5146_v59 }
 0x621   : > { %v4091_v52 = vpop.eup %4090 }
 0x622   : > { %3826 = vmatmul.mubr.bf16.vlgmr.msra.gmra.mrb[56].mxu1 %v2192_v13  ;;  %v2148_v24 = vmul.f32 %v4091_v52, %v5152_v34  ;;  %v2164_v7 = vmul.f32 %v5245_v38, %v2147_v43 }
 0x623   : > { %3829 = vmatprep.mubr.msk.bf16.mxu1 %vm4250_vm1, %v4249_v5 }
 0x624   : > { %v2165_v26 = vmul.f32 %v5245_v38, %v2148_v24  ;;  %v2181_v36 = vadd.f32 %v5253_v56, %v2164_v7 }
 0x626   : > { %v2182_v16 = vadd.f32 %v5253_v56, %v2165_v26 }
 0x627   : > { %v4093_v46 = vpop.eup %4092 }
 0x628   : > { %v2193_v21 = vpack.c.bf16 %v2182_v16, %v2181_v36  ;;  %v2149_v63 = vmul.f32 %v4093_v46, %v5165_v23 }
 0x629   : > { %v4095_v59 = vpop.eup %4094 }
 0x62a   : > { %3830 = vmatmul.mubr.bf16.gmra.mrb[60].mxu1 %v2193_v21  ;;  %v2150_v61 = vmul.f32 %v4095_v59, %v5172_v49  ;;  %v2166_v34 = vmul.f32 %v5245_v38, %v2149_v63 }
 0x62b   : > { %3833 = vmatprep.mubr.msk.bf16.mxu1 %vm4250_vm1, %v4249_v5 }
 0x62c   : > { %v2167_v1 = vmul.f32 %v5245_v38, %v2150_v61  ;;  %v2183_v6 = vadd.f32 %v5253_v56, %v2166_v34 }
 0x62e   : > { %v2184_v15 = vadd.f32 %v5253_v56, %v2167_v1 }
 0x630   : > { %v2194_v40 = vpack.c.bf16 %v2184_v15, %v2183_v6 }
 0x632   : > { %3834 = vmatmul.mubr.bf16.gmra.mrb[64].mxu1 %v2194_v40 }
 0x633   : > { %3837 = vmatprep.mubr.msk.bf16.mxu1 %vm4250_vm1, %v4249_v5 }
 0x682   : > { %v2093_v23 = vpop.xlane.xlu1 %2092 }
 0x683   : > { %v2112_v35 = vmul.f32 0.0078125, %v2093_v23 }
 0x684   : > { %v2095_v37 = vpop.xlane.xlu0 %2094 }
 0x685   : > { %v2125_v49 = vadd.f32 1e-05, %v2112_v35  ;;  %v2113_v33 = vmul.f32 0.0078125, %v2095_v37 }
 0x687   : > { %4096 = vrsqrt.f32 %v2125_v49  ;;  %v2126_v42 = vadd.f32 1e-05, %v2113_v33 }
 0x689   : > { %4098 = vrsqrt.f32 %v2126_v42 }
 0x68a   : > { %v2097_v25 = vpop.xlane.xlu1 %2096 }
 0x68b   : > { %v2114_v47 = vmul.f32 0.0078125, %v2097_v25  ;;  %v5308_v25 = vld [vmem:[%s6248_s12 + $0x6] ss:$0 sm:$0xff] }
 0x68c   : > { %v2099_v22 = vpop.xlane.xlu0 %2098 }
 0x68d   : > { %v2127_v57 = vadd.f32 1e-05, %v2114_v47  ;;  %v2115_v19 = vmul.f32 0.0078125, %v2099_v22 }
 0x68f   : > { %4100 = vrsqrt.f32 %v2127_v57  ;;  %v2128_v17 = vadd.f32 1e-05, %v2115_v19 }
 0x691   : > { %v4097_v8 = vpop.eup %4096  ;;  %4102 = vrsqrt.f32 %v2128_v17 }
 0x692   : > { %v2101_v10 = vpop.xlane.xlu1 %2100  ;;  %v2151_v14 = vmul.f32 %v4097_v8, %v5202_v3 }
 0x693   : > { %v4099_v32 = vpop.eup %4098  ;;  %v2116_v30 = vmul.f32 0.0078125, %v2101_v10 }
 0x694   : > { %v2103_v31 = vpop.xlane.xlu0 %2102  ;;  %v2152_v29 = vmul.f32 %v4099_v32, %v5208_v2  ;;  %v2168_v39 = vmul.f32 %v5245_v38, %v2151_v14 }
 0x695   : > { %v2129_v9 = vadd.f32 1e-05, %v2116_v30  ;;  %v2117_v18 = vmul.f32 0.0078125, %v2103_v31 }
 0x696   : > { %v2169_v44 = vmul.f32 %v5245_v38, %v2152_v29  ;;  %v2185_v43 = vadd.f32 %v5253_v56, %v2168_v39 }
 0x697   : > { %4104 = vrsqrt.f32 %v2129_v9  ;;  %v2130_v13 = vadd.f32 1e-05, %v2117_v18 }
 0x698   : > { %v2186_v52 = vadd.f32 %v5253_v56, %v2169_v44 }
 0x699   : > { %v4101_v24 = vpop.eup %4100  ;;  %4106 = vrsqrt.f32 %v2130_v13 }
 0x69a   : > { %v2105_v3 = vpop.xlane.xlu1 %2104  ;;  %v2195_v7 = vpack.c.bf16 %v2186_v52, %v2185_v43  ;;  %v2153_v26 = vmul.f32 %v4101_v24, %v5214_v41 }
 0x69b   : > { %v4103_v36 = vpop.eup %4102  ;;  %v2118_v2 = vmul.f32 0.0078125, %v2105_v3 }
 0x69c   : > { %3838 = vmatmul.mubr.bf16.gmra.mrb[68].mxu1 %v2195_v7  ;;  %v2154_v16 = vmul.f32 %v4103_v36, %v5220_v54  ;;  %v2170_v46 = vmul.f32 %v5245_v38, %v2153_v26 }
 0x69d   : > { %v2131_v21 = vadd.f32 1e-05, %v2118_v2  ;;  %3841 = vmatprep.mubr.msk.bf16.mxu1 %vm4250_vm1, %v4249_v5 }
 0x69e   : > { %v2171_v63 = vmul.f32 %v5245_v38, %v2154_v16  ;;  %v2187_v59 = vadd.f32 %v5253_v56, %v2170_v46 }
 0x69f   : > { %4108 = vrsqrt.f32 %v2131_v21 }
 0x6a0   : > { %v2188_v61 = vadd.f32 %v5253_v56, %v2171_v63 }
 0x6a1   : > { %v4105_v34 = vpop.eup %4104 }
 0x6a2   : > { %v2196_v41 = vpack.c.bf16 %v2188_v61, %v2187_v59  ;;  %v2155_v1 = vmul.f32 %v4105_v34, %v5226_v27 }
 0x6a3   : > { %v4107_v6 = vpop.eup %4106 }
 0x6a4   : > { %3842 = vmatmul.mubr.bf16.gmra.mrb[72].mxu1 %v2196_v41  ;;  %v2156_v54 = vmul.f32 %v4107_v6, %v5232_v45  ;;  %v2172_v15 = vmul.f32 %v5245_v38, %v2155_v1 }
 0x6a5   : > { %3845 = vmatprep.mubr.msk.bf16.mxu1 %vm4250_vm1, %v4249_v5 }
 0x6a6   : > { %v2173_v40 = vmul.f32 %v5245_v38, %v2156_v54  ;;  %v2189_v23 = vadd.f32 %v5253_v56, %v2172_v15 }
 0x6a8   : > { %v2190_v35 = vadd.f32 %v5253_v56, %v2173_v40 }
 0x6a9   : > { %v4109_v37 = vpop.eup %4108 }
 0x6aa   : > { %v2197_v49 = vpack.c.bf16 %v2190_v35, %v2189_v23  ;;  %v2157_v33 = vmul.f32 %v4109_v37, %v5238_v11 }
 0x6ac   : > { %3846 = vmatmul.mubr.bf16.gmra.mrb[76].mxu1 %v2197_v49  ;;  %v2174_v27 = vmul.f32 %v5245_v38, %v2157_v33 }
 0x6ad   : > { %3849 = vmatprep.mubr.msk.bf16.mxu1 %vm4250_vm1, %v4249_v5 }
 0x6ae   : > { %v2191_v45 = vadd.f32 %v5253_v56, %v2174_v27 }
 0x6b0   : > { %v2198_v42 = vpack.c.bf16 %v2191_v45, %v2191_v45 }
 0x6b4   : > { %3850 = vmatmul.mubr.bf16.gmra.mrb[80].mxu1 %v2198_v42 }
 0x6b5   : > { %3869 = vmatprep.mubr.msk.bf16.mxu1 %vm4250_vm1, %v4249_v5 }
 0x6f5   : > { %v2302_v47 = vpop.f32.mrb[56].mxu1 }
 0x6f6   : > { %v5311_v11 = vadd.f32 %v5308_v25, %v2302_v47  ;;  %v3827_v38 = vpop.f32.mrb[57].mxu1 }
 0x6f7   : > { %v2305_v22 = vpop.f32.mrb[58].mxu1 }
 0x6f8   : > { %v2356_v57 = vmax.f32 %v5311_v11, 0.0  ;;  %v5315_v56 = vadd.f32 %v5308_v25, %v2305_v22  ;;  %v3828_v19 = vpop.f32.mrb[59].mxu1 }
 0x6fa   : > { %v2357_v17 = vmax.f32 %v5315_v56, 0.0  ;;  %2371 = vadd.xlane.f32.xlu0 %v2356_v57 }
 0x6fc   : > { %2373 = vadd.xlane.f32.xlu1 %v2357_v17 }
 0x6fd   : > { %v2310_v8 = vpop.f32.mrb[60].mxu1 }
 0x6fe   : > { %v5323_v10 = vadd.f32 %v5308_v25, %v2310_v8  ;;  %v3831_v14 = vpop.f32.mrb[61].mxu1 }
 0x6ff   : > { %v2313_v32 = vpop.f32.mrb[62].mxu1 }
 0x700   : > { %v2358_v30 = vmax.f32 %v5323_v10, 0.0  ;;  %v5327_v31 = vadd.f32 %v5308_v25, %v2313_v32  ;;  %v3832_v29 = vpop.f32.mrb[63].mxu1 }
 0x702   : > { %v2359_v39 = vmax.f32 %v5327_v31, 0.0  ;;  %2375 = vadd.xlane.f32.xlu0 %v2358_v30 }
 0x704   : > { %2377 = vadd.xlane.f32.xlu1 %v2359_v39 }
 0x705   : > { %v2318_v9 = vpop.f32.mrb[64].mxu1 }
 0x706   : > { %v5335_v18 = vadd.f32 %v5308_v25, %v2318_v9  ;;  %v3835_v44 = vpop.f32.mrb[65].mxu1 }
 0x707   : > { %v2321_v13 = vpop.f32.mrb[66].mxu1 }
 0x708   : > { %v2360_v43 = vmax.f32 %v5335_v18, 0.0  ;;  %v5339_v52 = vadd.f32 %v5308_v25, %v2321_v13  ;;  %v3836_v24 = vpop.f32.mrb[67].mxu1 }
 0x70a   : > { %v2361_v3 = vmax.f32 %v5339_v52, 0.0  ;;  %2379 = vadd.xlane.f32.xlu0 %v2360_v43  ;;  %v4054_v52 = vld [vmem:[%s6247_s11 + $0x20] sm:$0xff]  }
 0x70c   : > { %2381 = vadd.xlane.f32.xlu1 %v2361_v3 }
 0x76f   : > { %v2326_v7 = vpop.f32.mrb[68].mxu1 }
 0x770   : > { %v5347_v26 = vadd.f32 %v5308_v25, %v2326_v7  ;;  %v3839_v36 = vpop.f32.mrb[69].mxu1 }
 0x771   : > { %v2329_v2 = vpop.f32.mrb[70].mxu1 }
 0x772   : > { %v2362_v16 = vmax.f32 %v5347_v26, 0.0  ;;  %v5351_v46 = vadd.f32 %v5308_v25, %v2329_v2  ;;  %v3840_v21 = vpop.f32.mrb[71].mxu1 }
 0x774   : > { %v2363_v63 = vmax.f32 %v5351_v46, 0.0  ;;  %2383 = vadd.xlane.f32.xlu0 %v2362_v16 }
 0x776   : > { %2385 = vadd.xlane.f32.xlu1 %v2363_v63 }
 0x777   : > { %v2334_v59 = vpop.f32.mrb[72].mxu1 }
 0x778   : > { %v5359_v61 = vadd.f32 %v5308_v25, %v2334_v59  ;;  %v3843_v34 = vpop.f32.mrb[73].mxu1 }
 0x779   : > { %v2337_v41 = vpop.f32.mrb[74].mxu1 }
 0x77a   : > { %v2364_v1 = vmax.f32 %v5359_v61, 0.0  ;;  %v5363_v6 = vadd.f32 %v5308_v25, %v2337_v41  ;;  %v3844_v54 = vpop.f32.mrb[75].mxu1 }
 0x77c   : > { %v2365_v15 = vmax.f32 %v5363_v6, 0.0  ;;  %2387 = vadd.xlane.f32.xlu0 %v2364_v1 }
 0x77e   : > { %2389 = vadd.xlane.f32.xlu1 %v2365_v15 }
 0x77f   : > { %v2342_v40 = vpop.f32.mrb[76].mxu1 }
 0x780   : > { %v5371_v23 = vadd.f32 %v5308_v25, %v2342_v40  ;;  %v3847_v35 = vpop.f32.mrb[77].mxu1 }
 0x781   : > { %v2345_v37 = vpop.f32.mrb[78].mxu1  ;;  %v4052_v35 = vld [vmem:[%s6247_s11 + $0x10] sm:$0xff]  }
 0x782   : > { %v2366_v49 = vmax.f32 %v5371_v23, 0.0  ;;  %v5375_v33 = vadd.f32 %v5308_v25, %v2345_v37  ;;  %v3848_v27 = vpop.f32.mrb[79].mxu1  ;;  %v4056_v37 = vld [vmem:[%s6247_s11 + $0x30] sm:$0xff]  }
 0x783   : > { %v4057_v27 = vld [vmem:[%s6247_s11 + $0x38] sm:$0xff]  }
 0x784   : > { %v2367_v45 = vmax.f32 %v5375_v33, 0.0  ;;  %2391 = vadd.xlane.f32.xlu0 %v2366_v49 }
 0x786   : > { %2393 = vadd.xlane.f32.xlu1 %v2367_v45 }
 0x787   : > { %v2350_v42 = vpop.f32.mrb[80].mxu1  ;;  %v2372_v47 = vpop.xlane.xlu0 %2371 }
 0x788   : > { %v5383_v38 = vadd.f32 %v5308_v25, %v2350_v42  ;;  %v2397_v22 = vmul.f32 0.0078125, %v2372_v47  ;;  %v3851_v19 = vpop.f32.mrb[81].mxu1 }
 0x789   : > { %v2374_v8 = vpop.xlane.xlu1 %2373  ;;  %v2353_v14 = vpop.f32.mrb[82].mxu1 }
 0x78a   : > { %v2368_v32 = vmax.f32 %v5383_v38, 0.0  ;;  %v2398_v29 = vmul.f32 0.0078125, %v2374_v8  ;;  %v3852_v9 = vpop.f32.mrb[83].mxu1  ;;  %v5388_v44 = vsub.f32 %v2356_v57, %v2397_v22 }
 0x78c   : > { %2395 = vadd.xlane.f32.xlu0 %v2368_v32  ;;  %v2423_v13 = vmul.f32 %v5388_v44, %v5388_v44  ;;  %v5396_v25 = vsub.f32 %v2357_v17, %v2398_v29  ;;  %v4050_v17 = vld [vmem:[%s6247_s11] sm:$0xff]  }
 0x78d   : > { %3854 = vmatpush3.bf16.msra.mxu1 %v4050_v17 }
 0x78e   : > { %2436 = vadd.xlane.f32.xlu1 %v2423_v13  ;;  %v2424_v24 = vmul.f32 %v5396_v25, %v5396_v25  ;;  %3855 = vmatprep.subr.bf16.mxu1 %v4249_v5 }
 0x78f   : > { %v2376_v7 = vpop.xlane.xlu0 %2375 }
 0x790   : > { %v2399_v36 = vmul.f32 0.0078125, %v2376_v7  ;;  %2438 = vadd.xlane.f32.xlu0 %v2424_v24 }
 0x791   : > { %v2378_v11 = vpop.xlane.xlu1 %2377 }
 0x792   : > { %v2400_v57 = vmul.f32 0.0078125, %v2378_v11  ;;  %v5402_v2 = vsub.f32 %v2358_v30, %v2399_v36  ;;  %v4051_v30 = vld [vmem:[%s6247_s11 + $0x8] sm:$0xff]  }
 0x793   : > { %3856 = vmatpush3.bf16.msra.mxu1 %v4051_v30 }
 0x794   : > { %v2425_v21 = vmul.f32 %v5402_v2, %v5402_v2  ;;  %v5408_v56 = vsub.f32 %v2359_v39, %v2400_v57  ;;  %3857 = vmatprep.subr.bf16.mxu1 %v4249_v5 }
 0x796   : > { %2440 = vadd.xlane.f32.xlu1 %v2425_v21  ;;  %v2426_v59 = vmul.f32 %v5408_v56, %v5408_v56 }
 0x797   : > { %v2380_v34 = vpop.xlane.xlu0 %2379  ;;  %3858 = vmatpush3.bf16.msra.mxu1 %v4052_v35 }
 0x798   : > { %v2401_v10 = vmul.f32 0.0078125, %v2380_v34  ;;  %2442 = vadd.xlane.f32.xlu0 %v2426_v59  ;;  %3859 = vmatprep.subr.bf16.mxu1 %v4249_v5 }
 0x799   : > { %v2382_v31 = vpop.xlane.xlu1 %2381 }
 0x79a   : > { %v2402_v39 = vmul.f32 0.0078125, %v2382_v31  ;;  %v5421_v41 = vsub.f32 %v2360_v43, %v2401_v10  ;;  %v4053_v43 = vld [vmem:[%s6247_s11 + $0x18] sm:$0xff]  }
 0x79b   : > { %3860 = vmatpush3.bf16.msra.mxu1 %v4053_v43 }
 0x79c   : > { %v2427_v54 = vmul.f32 %v5421_v41, %v5421_v41  ;;  %v5428_v40 = vsub.f32 %v2361_v3, %v2402_v39  ;;  %3861 = vmatprep.subr.bf16.mxu1 %v4249_v5  ;;  %v4055_v3 = vld [vmem:[%s6247_s11 + $0x28] sm:$0xff]  }
 0x79e   : > { %2444 = vadd.xlane.f32.xlu1 %v2427_v54  ;;  %v2428_v18 = vmul.f32 %v5428_v40, %v5428_v40  ;;  %v5500_v54 = vld [vmem:[%s6248_s12] ss:$0 sm:$0xff] }
 0x79f   : > { %3862 = vmatpush3.bf16.msra.mxu1 %v4054_v52 }
 0x7a0   : > { %2446 = vadd.xlane.f32.xlu0 %v2428_v18  ;;  %3863 = vmatprep.subr.bf16.mxu1 %v4249_v5  ;;  %v1251_v18 = vadd.f32 %v5500_v54, %v4722_v48  ;;  %v5516_v48 = vld [vmem:[%s6243_s7] ss:$0 sm:$0xff] }
 0x7a3   : > { %3864 = vmatpush3.bf16.msra.mxu1 %v4055_v3  ;;  %v1254_v3 = vadd.f32 %v5500_v54, %v4724_v50  ;;  %v1259_v50 = vadd.f32 %v5500_v54, %v4726_v51  ;;  %v5531_v51 = vld [vmem:[%s6248_s12 + $0x8] ss:$0 sm:$0xff] }
 0x7a4   : > { %3865 = vmatprep.subr.bf16.mxu1 %v4249_v5 }
 0x7a7   : > { %3866 = vmatpush3.bf16.msra.mxu1 %v4056_v37 }
 0x7a8   : > { %3867 = vmatprep.subr.bf16.mxu1 %v4249_v5 }
 0x7ab   : > { %3868 = vmatpush3.bf16.msra.mxu1 %v4057_v27  ;;  %v1262_v27 = vadd.f32 %v5500_v54, %v4728_v53 }
 0x801   : > { %v2384_v42 = vpop.xlane.xlu0 %2383 }
 0x802   : > { %v2403_v47 = vmul.f32 0.0078125, %v2384_v42 }
 0x803   : > { %v2386_v22 = vpop.xlane.xlu1 %2385 }
 0x804   : > { %v5457_v19 = vsub.f32 %v2362_v16, %v2403_v47  ;;  %v2404_v8 = vmul.f32 0.0078125, %v2386_v22  ;;  %v1304_v47 = vmax.f32 %v1251_v18, 0.0  ;;  %v5511_v22 = vld [vmem:[%s6248_s12 + $0x7] ss:$0 sm:$0xff] }
 0x806   : > { %v5461_v14 = vsub.f32 %v2363_v63, %v2404_v8  ;;  %v2429_v29 = vmul.f32 %v5457_v19, %v5457_v19  ;;  %v1305_v8 = vmax.f32 %v1254_v3, 0.0 }
 0x808   : > { %2448 = vadd.xlane.f32.xlu1 %v2429_v29  ;;  %v2430_v9 = vmul.f32 %v5461_v14, %v5461_v14 }
 0x809   : > { %v2388_v13 = vpop.xlane.xlu0 %2387 }
 0x80a   : > { %v2405_v24 = vmul.f32 0.0078125, %v2388_v13  ;;  %2450 = vadd.xlane.f32.xlu0 %v2430_v9 }
 0x80b   : > { %v2390_v7 = vpop.xlane.xlu1 %2389 }
 0x80c   : > { %v5469_v26 = vsub.f32 %v2364_v1, %v2405_v24  ;;  %v2406_v16 = vmul.f32 0.0078125, %v2390_v7  ;;  %v1307_v24 = vmax.f32 %v1262_v27, 0.0 }
 0x80e   : > { %v5473_v46 = vsub.f32 %v2365_v15, %v2406_v16  ;;  %v2431_v63 = vmul.f32 %v5469_v26, %v5469_v26 }
 0x810   : > { %2452 = vadd.xlane.f32.xlu1 %v2431_v63  ;;  %v2432_v36 = vmul.f32 %v5473_v46, %v5473_v46 }
 0x811   : > { %v2392_v11 = vpop.xlane.xlu0 %2391 }
 0x812   : > { %v2407_v57 = vmul.f32 0.0078125, %v2392_v11  ;;  %2454 = vadd.xlane.f32.xlu0 %v2432_v36  ;;  %v5524_v36 = vmul.f32 %v5516_v48, %v1304_v47  ;;  %v1270_v11 = vadd.f32 %v5500_v54, %v4732_v58  ;;  %v5542_v58 = vmul.f32 %v5516_v48, %v1307_v24 }
 0x813   : > { %v2394_v21 = vpop.xlane.xlu1 %2393 }
 0x814   : > { %v5481_v61 = vsub.f32 %v2366_v49, %v2407_v57  ;;  %v2408_v1 = vmul.f32 0.0078125, %v2394_v21 }
 0x816   : > { %v5485_v6 = vsub.f32 %v2367_v45, %v2408_v1  ;;  %v2433_v15 = vmul.f32 %v5481_v61, %v5481_v61  ;;  %v1306_v1 = vmax.f32 %v1259_v50, 0.0  ;;  %v1291_v50 = vadd.f32 %v5500_v54, %v4742_v12 }
 0x818   : > { %2456 = vadd.xlane.f32.xlu1 %v2433_v15  ;;  %v2434_v17 = vmul.f32 %v5485_v6, %v5485_v6 }
 0x819   : > { %v2396_v59 = vpop.xlane.xlu0 %2395 }
 0x81a   : > { %v2409_v34 = vmul.f32 0.0078125, %v2396_v59  ;;  %2458 = vadd.xlane.f32.xlu0 %v2434_v17 }
 0x81b   : > { %v2437_v10 = vpop.xlane.xlu1 %2436 }
 0x81c   : > { %v5493_v23 = vsub.f32 %v2368_v32, %v2409_v34  ;;  %v2462_v49 = vmul.f32 0.0078125, %v2437_v10 }
 0x81d   : > { %v2439_v30 = vpop.xlane.xlu0 %2438 }
 0x81e   : > { %v2475_v33 = vadd.f32 1e-05, %v2462_v49  ;;  %v2463_v45 = vmul.f32 0.0078125, %v2439_v30  ;;  %v2435_v31 = vmul.f32 %v5493_v23, %v5493_v23  ;;  %v1275_v49 = vadd.f32 %v5500_v54, %v4734_v60 }
 0x81f   : > { %v1278_v30 = vadd.f32 %v5500_v54, %v4736_v62 }
 0x820   : > { %4110 = vrsqrt.f32 %v2475_v33  ;;  %v2476_v39 = vadd.f32 1e-05, %v2463_v45  ;;  %2460 = vadd.xlane.f32.xlu1 %v2435_v31  ;;  %v1326_v33 = vmul.f32 %v5516_v48, %v1306_v1 }
 0x821   : > { %v1311_v18 = vmax.f32 %v1278_v30, 0.0 }
 0x822   : > { %4112 = vrsqrt.f32 %v2476_v39 }
 0x823   : > { %v2441_v35 = vpop.xlane.xlu1 %2440 }
 0x824   : > { %v2464_v38 = vmul.f32 0.0078125, %v2441_v35 }
 0x825   : > { %v2443_v32 = vpop.xlane.xlu0 %2442 }
 0x826   : > { %v2477_v43 = vadd.f32 1e-05, %v2464_v38  ;;  %v2465_v52 = vmul.f32 0.0078125, %v2443_v32  ;;  %v1310_v32 = vmax.f32 %v1275_v49, 0.0 }
 0x828   : > { %4114 = vrsqrt.f32 %v2477_v43  ;;  %v2478_v37 = vadd.f32 1e-05, %v2465_v52  ;;  %v1286_v43 = vadd.f32 %v5500_v54, %v4740_v4  ;;  %v1283_v52 = vadd.f32 %v5500_v54, %v4738_v0 }
 0x829   : > { %v1330_v4 = vmul.f32 %v5516_v48, %v1310_v32 }
 0x82a   : > { %v4111_v42 = vpop.eup %4110  ;;  %4116 = vrsqrt.f32 %v2478_v37  ;;  %v1313_v47 = vmax.f32 %v1286_v43, 0.0  ;;  %v1312_v0 = vmax.f32 %v1283_v52, 0.0 }
 0x82b   : > { %v2501_v29 = vmul.f32 %v4111_v42, %v5388_v44  ;;  %v2445_v53 = vpop.xlane.xlu1 %2444  ;;  %v5534_v44 = vmul.f32 %v5516_v48, %v1305_v8  ;;  %v1331_v42 = vmul.f32 %v5516_v48, %v1311_v18  ;;  %v1294_v8 = vadd.f32 %v5500_v54, %v4746_v20 }
 0x82c   : > { %v4113_v9 = vpop.eup %4112  ;;  %v2466_v13 = vmul.f32 0.0078125, %v2445_v53  ;;  %v1332_v12 = vmul.f32 %v5516_v48, %v1312_v0 }
 0x82d   : > { %v2518_v7 = vmul.f32 %v5511_v22, %v2501_v29  ;;  %v2502_v16 = vmul.f32 %v4113_v9, %v5396_v25  ;;  %v2447_v63 = vpop.xlane.xlu0 %2446  ;;  %v1267_v25 = vadd.f32 %v5500_v54, %v4730_v55  ;;  %v1309_v55 = vmax.f32 %v1270_v11, 0.0 }
 0x82e   : > { %v2479_v57 = vadd.f32 1e-05, %v2466_v13  ;;  %v2467_v21 = vmul.f32 0.0078125, %v2447_v63  ;;  %v1315_v20 = vmax.f32 %v1294_v8, 0.0 }
 0x82f   : > { %v2519_v15 = vmul.f32 %v5511_v22, %v2502_v16  ;;  %v2535_v59 = vadd.f32 %v5531_v51, %v2518_v7  ;;  %v1308_v45 = vmax.f32 %v1267_v25, 0.0  ;;  %v1329_v62 = vmul.f32 %v5516_v48, %v1309_v55 }
 0x830   : > { %4118 = vrsqrt.f32 %v2479_v57  ;;  %v2480_v17 = vadd.f32 1e-05, %v2467_v21  ;;  %1407 = vrot.lane.b32.xlu0 %v5524_v36, %s4252_s15  ;;  %v1333_v7 = vmul.f32 %v5516_v48, %v1313_v47  ;;  %v1314_v16 = vmax.f32 %v1291_v50, 0.0 }
 0x831   : > { %1409 = vrot.lane.b32.xlu1 %v5534_v44, %s4252_s15  ;;  %v2536_v34 = vadd.f32 %v5531_v51, %v2519_v15  ;;  %v1335_v57 = vmul.f32 %v5516_v48, %v1315_v20  ;;  %v1343_v15 = vsel %vm1037_vm2, %v1326_v33, 0.0 }
 0x832   : > { %v4115_v10 = vpop.eup %4114  ;;  %4120 = vrsqrt.f32 %v2480_v17  ;;  %v1334_v21 = vmul.f32 %v5516_v48, %v1314_v16  ;;  %v1346_v17 = vsel %vm1037_vm2, %v5542_v58, 0.0  ;;  %v1364_v55 = vsel %vm1037_vm2, %v1333_v7, 0.0 }
 0x833   : > { %v2548_v31 = vpack.c.bf16 %v2536_v34, %v2535_v59  ;;  %v2503_v39 = vmul.f32 %v4115_v10, %v5402_v2  ;;  %v1328_v2 = vmul.f32 %v5516_v48, %v1308_v45  ;;  %v1340_v59 = vsel %vm1037_vm2, %v5534_v44, 0.0 }
 0x834   : > { %v4117_v35 = vpop.eup %4116  ;;  %1413 = vrot.lane.b32.xlu0 %v5542_v58, %s4252_s15  ;;  %v1352_v34 = vsel %vm1037_vm2, %v1329_v62, 0.0  ;;  %v1355_v10 = vsel %vm1037_vm2, %v1330_v4, 0.0  ;;  %v1361_v58 = vsel %vm1037_vm2, %v1332_v12, 0.0  ;;  %v1370_v44 = vsel %vm1037_vm2, %v1335_v57, 0.0 }
 0x835   : > { %1411 = vrot.lane.b32.xlu1 %v1326_v33, %s4252_s15  ;;  %3870 = vmatmul.mubr.bf16.vlgmr.msra.gmra.mrb[28].mxu1 %v2548_v31  ;;  %v2504_v38 = vmul.f32 %v4117_v35, %v5408_v56  ;;  %v2520_v60 = vmul.f32 %v5511_v22, %v2503_v39  ;;  %v1367_v49 = vsel %vm1037_vm2, %v1334_v21, 0.0 }
 0x836   : > { %3873 = vmatprep.mubr.msk.bf16.mxu1 %vm4250_vm1, %v4249_v5 }
 0x837   : > { %v2521_v3 = vmul.f32 %v5511_v22, %v2504_v38  ;;  %v2537_v56 = vadd.f32 %v5531_v51, %v2520_v60 }
 0x838   : > { %1417 = vrot.lane.b32.xlu0 %v1329_v62, %s4252_s15 }
 0x839   : > { %1415 = vrot.lane.b32.xlu1 %v1328_v2, %s4252_s15  ;;  %v2538_v37 = vadd.f32 %v5531_v51, %v2521_v3 }
 0x83a   : > { %v4119_v27 = vpop.eup %4118 }
 0x83b   : > { %v2549_v29 = vpack.c.bf16 %v2538_v37, %v2537_v56  ;;  %v2505_v53 = vmul.f32 %v4119_v27, %v5421_v41  ;;  %v1299_v41 = vadd.f32 %v5500_v54, %v4748_v28  ;;  %v1337_v54 = vsel %vm1037_vm2, %v5524_v36, 0.0 }
 0x83c   : > { %v4121_v9 = vpop.eup %4120  ;;  %1421 = vrot.lane.b32.xlu0 %v1331_v42, %s4252_s15  ;;  %v1358_v36 = vsel %vm1037_vm2, %v1331_v42, 0.0 }
 0x83d   : > { %1419 = vrot.lane.b32.xlu1 %v1330_v4, %s4252_s15  ;;  %3874 = vmatmul.mubr.bf16.gmra.mrb[32].mxu1 %v2549_v29  ;;  %v2506_v13 = vmul.f32 %v4121_v9, %v5428_v40  ;;  %v2522_v24 = vmul.f32 %v5511_v22, %v2505_v53  ;;  %v1316_v1 = vmax.f32 %v1299_v41, 0.0 }
 0x83e   : > { %3877 = vmatprep.mubr.msk.bf16.mxu1 %vm4250_vm1, %v4249_v5 }
 0x83f   : > { %v2523_v63 = vmul.f32 %v5511_v22, %v2506_v13  ;;  %v2539_v40 = vadd.f32 %v5531_v51, %v2522_v24  ;;  %v1336_v28 = vmul.f32 %v5516_v48, %v1316_v1  ;;  %v1349_v48 = vsel %vm1037_vm2, %v1328_v2, 0.0 }
 0x840   : > { %1425 = vrot.lane.b32.xlu0 %v1333_v7, %s4252_s15 }
 0x841   : > { %1423 = vrot.lane.b32.xlu1 %v1332_v12, %s4252_s15  ;;  %v2540_v11 = vadd.f32 %v5531_v51, %v2523_v63  ;;  %v1373_v30 = vsel %vm1037_vm2, %v1336_v28, 0.0 }
 0x843   : > { %v2550_v25 = vpack.c.bf16 %v2540_v11, %v2539_v40 }
 0x844   : > { %1429 = vrot.lane.b32.xlu0 %v1335_v57, %s4252_s15 }
 0x845   : > { %1427 = vrot.lane.b32.xlu1 %v1334_v21, %s4252_s15  ;;  %3878 = vmatmul.mubr.bf16.gmra.mrb[36].mxu1 %v2550_v25 }
 0x846   : > { %3881 = vmatprep.mubr.msk.bf16.mxu1 %vm4250_vm1, %v4249_v5 }
 0x849   : > { %1431 = vrot.lane.b32.xlu1 %v1336_v28, %s4252_s15 }
 0x863   : > { %1338 = vadd.xlane.f32.xlu0 %v1337_v54 }
 0x867   : > { %1344 = vadd.xlane.f32.xlu0 %v1343_v15 }
 0x86b   : > { %1347 = vadd.xlane.f32.xlu0 %v1346_v17 }
 0x86d   : > { %1341 = vadd.xlane.f32.xlu1 %v1340_v59 }
 0x86f   : > { %1353 = vadd.xlane.f32.xlu0 %v1352_v34 }
 0x871   : > { %1350 = vadd.xlane.f32.xlu1 %v1349_v48 }
 0x873   : > { %1359 = vadd.xlane.f32.xlu0 %v1358_v36 }
 0x875   : > { %1356 = vadd.xlane.f32.xlu1 %v1355_v10 }
 0x877   : > { %1365 = vadd.xlane.f32.xlu0 %v1364_v55 }
 0x879   : > { %1362 = vadd.xlane.f32.xlu1 %v1361_v58 }
 0x87b   : > { %1371 = vadd.xlane.f32.xlu0 %v1370_v44 }
 0x87d   : > { %1368 = vadd.xlane.f32.xlu1 %v1367_v49 }
 0x881   : > { %1374 = vadd.xlane.f32.xlu1 %v1373_v30 }
 0x895   : > { %v2449_v33 = vpop.xlane.xlu1 %2448 }
 0x896   : > { %v2468_v45 = vmul.f32 0.0078125, %v2449_v33 }
 0x897   : > { %v2451_v31 = vpop.xlane.xlu0 %2450 }
 0x898   : > { %v2481_v39 = vadd.f32 1e-05, %v2468_v45  ;;  %v2469_v35 = vmul.f32 0.0078125, %v2451_v31 }
 0x89a   : > { %4122 = vrsqrt.f32 %v2481_v39  ;;  %v2482_v38 = vadd.f32 1e-05, %v2469_v35 }
 0x89c   : > { %4124 = vrsqrt.f32 %v2482_v38 }
 0x89d   : > { %v2453_v60 = vpop.xlane.xlu1 %2452 }
 0x89e   : > { %v2470_v62 = vmul.f32 0.0078125, %v2453_v60 }
 0x89f   : > { %v2455_v32 = vpop.xlane.xlu0 %2454 }
 0x8a0   : > { %v2483_v18 = vadd.f32 1e-05, %v2470_v62  ;;  %v2471_v43 = vmul.f32 0.0078125, %v2455_v32 }
 0x8a2   : > { %4126 = vrsqrt.f32 %v2483_v18  ;;  %v2484_v2 = vadd.f32 1e-05, %v2471_v43 }
 0x8a4   : > { %v4123_v52 = vpop.eup %4122  ;;  %4128 = vrsqrt.f32 %v2484_v2 }
 0x8a5   : > { %v2457_v3 = vpop.xlane.xlu1 %2456  ;;  %v2507_v56 = vmul.f32 %v4123_v52, %v5457_v19 }
 0x8a6   : > { %v4125_v37 = vpop.eup %4124  ;;  %v2472_v27 = vmul.f32 0.0078125, %v2457_v3 }
 0x8a7   : > { %v2459_v4 = vpop.xlane.xlu0 %2458  ;;  %v2508_v42 = vmul.f32 %v4125_v37, %v5461_v14  ;;  %v2524_v47 = vmul.f32 %v5511_v22, %v2507_v56 }
 0x8a8   : > { %v2485_v8 = vadd.f32 1e-05, %v2472_v27  ;;  %v2473_v0 = vmul.f32 0.0078125, %v2459_v4 }
 0x8a9   : > { %v2525_v50 = vmul.f32 %v5511_v22, %v2508_v42  ;;  %v2541_v9 = vadd.f32 %v5531_v51, %v2524_v47 }
 0x8aa   : > { %4130 = vrsqrt.f32 %v2485_v8  ;;  %v2486_v29 = vadd.f32 1e-05, %v2473_v0 }
 0x8ab   : > { %v1408_v53 = vpop.permute.xlu0 %1407  ;;  %v2542_v13 = vadd.f32 %v5531_v51, %v2525_v50 }
 0x8ac   : > { %v4127_v24 = vpop.eup %4126  ;;  %4132 = vrsqrt.f32 %v2486_v29  ;;  %v1446_v19 = vsel %vm1037_vm2, %v1408_v53, 0.0 }
 0x8ad   : > { %v2461_v7 = vpop.xlane.xlu1 %2460  ;;  %1447 = vadd.xlane.f32.xlu0 %v1446_v19  ;;  %v2551_v14 = vpack.c.bf16 %v2542_v13, %v2541_v9  ;;  %v2509_v20 = vmul.f32 %v4127_v24, %v5469_v26 }
 0x8ae   : > { %v4129_v12 = vpop.eup %4128  ;;  %v2474_v16 = vmul.f32 0.0078125, %v2461_v7 }
 0x8af   : > { %3882 = vmatmul.mubr.bf16.gmra.mrb[40].mxu1 %v2551_v14  ;;  %v1414_v41 = vpop.permute.xlu0 %1413  ;;  %v2510_v63 = vmul.f32 %v4129_v12, %v5473_v46  ;;  %v2526_v40 = vmul.f32 %v5511_v22, %v2509_v20 }
 0x8b0   : > { %v2487_v11 = vadd.f32 1e-05, %v2474_v16  ;;  %3885 = vmatprep.mubr.msk.bf16.mxu1 %vm4250_vm1, %v4249_v5  ;;  %v1455_v48 = vsel %vm1037_vm2, %v1414_v41, 0.0 }
 0x8b1   : > { %v1410_v57 = vpop.permute.xlu1 %1409  ;;  %v2527_v21 = vmul.f32 %v5511_v22, %v2510_v63  ;;  %v2543_v25 = vadd.f32 %v5531_v51, %v2526_v40 }
 0x8b2   : > { %4134 = vrsqrt.f32 %v2487_v11  ;;  %v1449_v1 = vsel %vm1037_vm2, %v1410_v57, 0.0 }
 0x8b3   : > { %1450 = vadd.xlane.f32.xlu1 %v1449_v1  ;;  %v1418_v26 = vpop.permute.xlu0 %1417  ;;  %v2544_v28 = vadd.f32 %v5531_v51, %v2527_v21 }
 0x8b4   : > { %v4131_v54 = vpop.eup %4130  ;;  %v1461_v49 = vsel %vm1037_vm2, %v1418_v26, 0.0 }
 0x8b5   : > { %v1412_v46 = vpop.permute.xlu1 %1411  ;;  %v2552_v15 = vpack.c.bf16 %v2544_v28, %v2543_v25  ;;  %v2511_v17 = vmul.f32 %v4131_v54, %v5481_v61 }
 0x8b6   : > { %v4133_v59 = vpop.eup %4132  ;;  %v1452_v34 = vsel %vm1037_vm2, %v1412_v46, 0.0 }
 0x8b7   : > { %3886 = vmatmul.mubr.bf16.gmra.mrb[44].mxu1 %v2552_v15  ;;  %1453 = vadd.xlane.f32.xlu0 %v1452_v34  ;;  %v2512_v36 = vmul.f32 %v4133_v59, %v5485_v6  ;;  %v2528_v10 = vmul.f32 %v5511_v22, %v2511_v17  ;;  %v1422_v55 = vpop.permute.xlu0 %1421 }
 0x8b8   : > { %1456 = vadd.xlane.f32.xlu1 %v1455_v48  ;;  %3889 = vmatprep.mubr.msk.bf16.mxu1 %vm4250_vm1, %v4249_v5  ;;  %v1467_v60 = vsel %vm1037_vm2, %v1422_v55, 0.0 }
 0x8b9   : > { %v1416_v58 = vpop.permute.xlu1 %1415  ;;  %v2529_v44 = vmul.f32 %v5511_v22, %v2512_v36  ;;  %v2545_v30 = vadd.f32 %v5531_v51, %v2528_v10 }
 0x8ba   : > { %v1458_v61 = vsel %vm1037_vm2, %v1416_v58, 0.0 }
 0x8bb   : > { %1459 = vadd.xlane.f32.xlu0 %v1458_v61  ;;  %v2546_v33 = vadd.f32 %v5531_v51, %v2529_v44  ;;  %v1426_v35 = vpop.permute.xlu0 %1425 }
 0x8bc   : > { %v4135_v6 = vpop.eup %4134  ;;  %1462 = vadd.xlane.f32.xlu1 %v1461_v49 }
 0x8bd   : > { %v1420_v45 = vpop.permute.xlu1 %1419  ;;  %v2553_v31 = vpack.c.bf16 %v2546_v33, %v2545_v30  ;;  %v2513_v39 = vmul.f32 %v4135_v6, %v5493_v23  ;;  %v1473_v23 = vsel %vm1037_vm2, %v1426_v35, 0.0 }
 0x8be   : > { %v1464_v38 = vsel %vm1037_vm2, %v1420_v45, 0.0 }
 0x8bf   : > { %3890 = vmatmul.mubr.bf16.gmra.mrb[48].mxu1 %v2553_v31  ;;  %1465 = vadd.xlane.f32.xlu0 %v1464_v38  ;;  %v2530_v62 = vmul.f32 %v5511_v22, %v2513_v39  ;;  %v1430_v2 = vpop.permute.xlu0 %1429 }
 0x8c0   : > { %1468 = vadd.xlane.f32.xlu1 %v1467_v60  ;;  %3893 = vmatprep.mubr.msk.bf16.mxu1 %vm4250_vm1, %v4249_v5  ;;  %v1479_v22 = vsel %vm1037_vm2, %v1430_v2, 0.0 }
 0x8c1   : > { %v1424_v32 = vpop.permute.xlu1 %1423  ;;  %v2547_v18 = vadd.f32 %v5531_v51, %v2530_v62  ;;  %v5661_v51 = vld [vmem:[%s6248_s12 + $0x9] ss:$0 sm:$0xff] }
 0x8c2   : > { %v1470_v43 = vsel %vm1037_vm2, %v1424_v32, 0.0 }
 0x8c3   : > { %1471 = vadd.xlane.f32.xlu0 %v1470_v43  ;;  %v2554_v3 = vpack.c.bf16 %v2547_v18, %v2547_v18 }
 0x8c4   : > { %1474 = vadd.xlane.f32.xlu1 %v1473_v23 }
 0x8c5   : > { %v1428_v52 = vpop.permute.xlu1 %1427 }
 0x8c6   : > { %v1476_v56 = vsel %vm1037_vm2, %v1428_v52, 0.0 }
 0x8c7   : > { %3894 = vmatmul.mubr.bf16.gmra.mrb[52].mxu1 %v2554_v3  ;;  %1477 = vadd.xlane.f32.xlu0 %v1476_v56 }
 0x8c8   : > { %1480 = vadd.xlane.f32.xlu1 %v1479_v22 }
 0x8c9   : > { %v1432_v37 = vpop.permute.xlu1 %1431 }
 0x8ca   : > { %v1482_v27 = vsel %vm1037_vm2, %v1432_v37, 0.0 }
 0x8cb   : > { %1483 = vadd.xlane.f32.xlu0 %v1482_v27 }
 0x8f0   : > { %v1339_v4 = vpop.xlane.xlu0 %1338 }
 0x8f1   : > { %v5664_v42 = vadd.f32 %v5661_v51, %v1339_v4 }
 0x8f3   : > { %v2817_v47 = vmin.f32 %v5664_v42, 20.0  ;;  %vm2804_vm3 = vcmp.gt.f32.partialorder %v5664_v42, 20.0 }
 0x8f4   : > { %v1345_v8 = vpop.xlane.xlu0 %1344 }
 0x8f5   : > { %v2830_v0 = vmul.f32 1.442695, %v2817_v47  ;;  %v5668_v50 = vadd.f32 %v5661_v51, %v1345_v8 }
 0x8f7   : > { %4136 = vpow2.f32 %v2830_v0  ;;  %v2819_v29 = vmin.f32 %v5668_v50, 20.0  ;;  %vm2806_vm4 = vcmp.gt.f32.partialorder %v5668_v50, 20.0 }
 0x8f8   : > { %v1348_v53 = vpop.xlane.xlu0 %1347 }
 0x8f9   : > { %v2834_v9 = vmul.f32 1.442695, %v2819_v29  ;;  %v5672_v13 = vadd.f32 %v5661_v51, %v1348_v53 }
 0x8fa   : > { %v1342_v24 = vpop.xlane.xlu1 %1341 }
 0x8fb   : > { %4138 = vpow2.f32 %v2834_v9  ;;  %v5675_v19 = vadd.f32 %v5661_v51, %v1342_v24  ;;  %v2820_v14 = vmin.f32 %v5672_v13, 20.0  ;;  %vm2807_vm10 = vcmp.gt.f32.partialorder %v5672_v13, 20.0 }
 0x8fc   : > { %v1354_v7 = vpop.xlane.xlu0 %1353 }
 0x8fd   : > { %v2818_v20 = vmin.f32 %v5675_v19, 20.0  ;;  %v5680_v12 = vadd.f32 %v5661_v51, %v1354_v7  ;;  %v2836_v57 = vmul.f32 1.442695, %v2820_v14  ;;  %vm2805_vm7 = vcmp.gt.f32.partialorder %v5675_v19, 20.0 }
 0x8fe   : > { %v1351_v16 = vpop.xlane.xlu1 %1350 }
 0x8ff   : > { %v2832_v41 = vmul.f32 1.442695, %v2818_v20  ;;  %v5683_v63 = vadd.f32 %v5661_v51, %v1351_v16  ;;  %v2822_v1 = vmin.f32 %v5680_v12, 20.0  ;;  %vm2809_vm13 = vcmp.gt.f32.partialorder %v5680_v12, 20.0 }
 0x900   : > { %v1360_v40 = vpop.xlane.xlu0 %1359 }
 0x901   : > { %v5685_v11 = vpop.eup %4136  ;;  %4140 = vpow2.f32 %v2832_v41  ;;  %v5688_v21 = vadd.f32 %v5661_v51, %v1360_v40  ;;  %v2821_v26 = vmin.f32 %v5683_v63, 20.0  ;;  %v2840_v36 = vmul.f32 1.442695, %v2822_v1 }
 0x902   : > { %v1357_v25 = vpop.xlane.xlu1 %1356  ;;  %v2856_v28 = vadd.f32 1.0, %v5685_v11  ;;  %v2859_v33 = vmul.f32 -0.5, %v5685_v11  ;;  %v2862_v56 = vand.u32 2147483647, %v5685_v11  ;;  %vm2808_vm8 = vcmp.gt.f32.partialorder %v5683_v63, 20.0 }
 0x903   : > { %v2824_v54 = vmin.f32 %v5688_v21, 20.0  ;;  %v5695_v46 = vadd.f32 %v5661_v51, %v1357_v25  ;;  %v2838_v15 = vmul.f32 1.442695, %v2821_v26 }
 0x904   : > { %v1366_v17 = vpop.xlane.xlu0 %1365  ;;  %4142 = vlog2.f32 %v2856_v28  ;;  %v2860_v2 = vadd.f32 1.0, %v2859_v33  ;;  %vm2863_vm5 = vcmp.lt.f32.partialorder %v2862_v56, 0.0004427343 }
 0x905   : > { %v4139_v59 = vpop.eup %4138  ;;  %4144 = vpow2.f32 %v2836_v57  ;;  %v2823_v34 = vmin.f32 %v5695_v46, 20.0  ;;  %v5699_v48 = vadd.f32 %v5661_v51, %v1366_v17  ;;  %v2844_v58 = vmul.f32 1.442695, %v2824_v54 }
 0x906   : > { %4146 = vpow2.f32 %v2838_v15  ;;  %v1363_v10 = vpop.xlane.xlu1 %1362  ;;  %v2874_v55 = vadd.f32 1.0, %v4139_v59  ;;  %v2877_v38 = vmul.f32 -0.5, %v4139_v59  ;;  %v2880_v22 = vand.u32 2147483647, %v4139_v59 }
 0x907   : > { %v2842_v44 = vmul.f32 1.442695, %v2823_v34  ;;  %v2826_v61 = vmin.f32 %v5699_v48, 20.0  ;;  %v5703_v49 = vadd.f32 %v5661_v51, %v1363_v10  ;;  %v2861_v7 = vmul.f32 %v5685_v11, %v2860_v2 }
 0x908   : > { %v5705_v30 = vpop.f32.mrb[28].mxu1  ;;  %4148 = vlog2.f32 %v2874_v55  ;;  %v1372_v6 = vpop.xlane.xlu0 %1371  ;;  %v2878_v4 = vadd.f32 1.0, %v2877_v38  ;;  %vm5736_vm6 = vcmp.lt.f32.partialorder %v2880_v22, 0.0004427343  ;;  %vm2810_vm11 = vcmp.gt.f32.partialorder %v5695_v46, 20.0 }
 0x909   : > { %4150 = vpow2.f32 %v2842_v44  ;;  %v3871_v45 = vpop.f32.mrb[29].mxu1  ;;  %v2825_v31 = vmin.f32 %v5703_v49, 20.0  ;;  %v2848_v62 = vmul.f32 1.442695, %v2826_v61  ;;  %v5717_v23 = vadd.f32 %v5661_v51, %v1372_v6 }
 0x90a   : > { %4152 = vpow2.f32 %v2840_v36  ;;  %v1369_v39 = vpop.xlane.xlu1 %1368  ;;  %v5709_v35 = vpop.f32.mrb[30].mxu1  ;;  %v2879_v1 = vmul.f32 %v4139_v59, %v2878_v4  ;;  %vm2812_vm15 = vcmp.gt.f32.partialorder %v5703_v49, 20.0 }
 0x90b   : > { %v5711_v60 = vpop.eup %4140  ;;  %4154 = vpow2.f32 %v2844_v58  ;;  %v5714_v32 = vadd.f32 %v5661_v51, %v1369_v39  ;;  %v3872_v18 = vpop.f32.mrb[31].mxu1  ;;  %v2846_v43 = vmul.f32 1.442695, %v2825_v31  ;;  %v2828_v9 = vmin.f32 %v5717_v23, 20.0 }
 0x90c   : > { %v2865_v52 = vadd.f32 1.0, %v5711_v60  ;;  %v2868_v34 = vmul.f32 -0.5, %v5711_v60  ;;  %v2871_v59 = vand.u32 2147483647, %v5711_v60 }
 0x90d   : > { %v2827_v3 = vmin.f32 %v5714_v32, 20.0  ;;  %4156 = vpow2.f32 %v2846_v43  ;;  %v2852_v10 = vmul.f32 1.442695, %v2828_v9 }
 0x90e   : > { %v4143_v37 = vpop.eup %4142  ;;  %v1375_v27 = vpop.xlane.xlu1 %1374  ;;  %4158 = vpow2.f32 %v2848_v62  ;;  %v2869_v6 = vadd.f32 1.0, %v2868_v34  ;;  %vm5775_vm9 = vcmp.lt.f32.partialorder %v2871_v59, 0.0004427343 }
 0x90f   : > { %v5723_v47 = vpop.eup %4144  ;;  %v2850_v8 = vmul.f32 1.442695, %v2827_v3  ;;  %v5726_v0 = vadd.f32 %v5661_v51, %v1375_v27  ;;  %v2858_v29 = vmul.f32 0.6931472, %v4143_v37  ;;  %4160 = vlog2.f32 %v2865_v52 }
 0x910   : > { %v5728_v53 = vpop.eup %4146  ;;  %v5732_v24 = vpop.f32.mrb[32].mxu1  ;;  %v2883_v25 = vadd.f32 1.0, %v5723_v47  ;;  %v2886_v55 = vmul.f32 -0.5, %v5723_v47  ;;  %v2870_v9 = vmul.f32 %v5711_v60, %v2869_v6 }
 0x911   : > { %4162 = vpow2.f32 %v2850_v8  ;;  %v2829_v14 = vmin.f32 %v5726_v0, 20.0  ;;  %v3875_v20 = vpop.f32.mrb[33].mxu1  ;;  %v2864_v57 = vsel %vm2863_vm5, %v2861_v7, %v2858_v29  ;;  %v2892_v26 = vadd.f32 1.0, %v5728_v53 }
 0x912   : > { %v4149_v41 = vpop.eup %4148  ;;  %v5740_v40 = vpop.f32.mrb[34].mxu1  ;;  %v2973_v15 = vsel %vm2804_vm3, %v5664_v42, %v2864_v57  ;;  %v2895_v42 = vmul.f32 -0.5, %v5728_v53  ;;  %v2887_v2 = vadd.f32 1.0, %v2886_v55  ;;  %v2898_v22 = vand.u32 2147483647, %v5728_v53 }
 0x913   : > { %v5744_v11 = vpop.eup %4150  ;;  %v2854_v28 = vmul.f32 1.442695, %v2829_v14  ;;  %v3876_v54 = vpop.f32.mrb[35].mxu1  ;;  %v2876_v17 = vmul.f32 0.6931472, %v4149_v41  ;;  %2999 = vrot.lane.b32.xlu1 %v2973_v15, %s4252_s15  ;;  %4164 = vlog2.f32 %v2892_v26 }
 0x914   : > { %v5750_v36 = vpop.eup %4152  ;;  %v2910_v61 = vadd.f32 1.0, %v5744_v11  ;;  %v2896_v43 = vadd.f32 1.0, %v2895_v42  ;;  %v2913_v37 = vmul.f32 -0.5, %v5744_v11  ;;  %v2889_v7 = vand.u32 2147483647, %v5723_v47 }
 0x915   : > { %v5755_v58 = vpop.eup %4154  ;;  %4166 = vpow2.f32 %v2854_v28  ;;  %v2882_v44 = vsel %vm5736_vm6, %v2879_v1, %v2876_v17  ;;  %v2901_v39 = vadd.f32 1.0, %v5750_v36  ;;  %v2904_v27 = vmul.f32 -0.5, %v5750_v36 }
 0x916   : > { %v2975_v33 = vsel %vm2806_vm4, %v5668_v50, %v2882_v44  ;;  %4168 = vlog2.f32 %v2883_v25  ;;  %v2919_v38 = vadd.f32 1.0, %v5755_v58  ;;  %v2916_v14 = vand.u32 2147483647, %v5744_v11 }
 0x917   : > { %4170 = vlog2.f32 %v2910_v61  ;;  %v5764_v45 = vpop.eup %4156  ;;  %3003 = vrot.lane.b32.xlu1 %v2975_v33, %s4252_s15  ;;  %v2907_v20 = vand.u32 2147483647, %v5750_v36  ;;  %v2897_v57 = vmul.f32 %v5728_v53, %v2896_v43  ;;  %v2888_v1 = vmul.f32 %v5723_v47, %v2887_v2 }
 0x918   : > { %4172 = vpow2.f32 %v2852_v10  ;;  %v5768_v31 = vpop.f32.mrb[36].mxu1  ;;  %v5772_v62 = vpop.eup %4158  ;;  %v2928_v52 = vadd.f32 1.0, %v5764_v45  ;;  %v2931_v16 = vmul.f32 -0.5, %v5764_v45  ;;  %vm5802_vm12 = vcmp.lt.f32.partialorder %v2898_v22, 0.0004427343 }
 0x919   : > { %v3879_v50 = vpop.f32.mrb[37].mxu1  ;;  %v4161_v3 = vpop.eup %4160  ;;  %4174 = vlog2.f32 %v2901_v39  ;;  %v2914_v54 = vadd.f32 1.0, %v2913_v37  ;;  %v2905_v15 = vadd.f32 1.0, %v2904_v27  ;;  %vm5810_vm14 = vcmp.lt.f32.partialorder %v2889_v7, 0.0004427343 }
 0x91a   : > { %v5780_v56 = vpop.f32.mrb[38].mxu1  ;;  %v2867_v29 = vmul.f32 0.6931472, %v4161_v3  ;;  %4176 = vlog2.f32 %v2928_v52  ;;  %v2922_v34 = vmul.f32 -0.5, %v5755_v58  ;;  %vm5816_vm0 = vcmp.lt.f32.partialorder %v2916_v14, 0.0004427343 }
 0x91b   : > { %v5785_v4 = vpop.eup %4162  ;;  %v3880_v8 = vpop.f32.mrb[39].mxu1  ;;  %4178 = vlog2.f32 %v2919_v38  ;;  %vm5820_vm1 = vcmp.lt.f32.partialorder %v2907_v20, 0.0004427343  ;;  %v2932_v55 = vadd.f32 1.0, %v2931_v16  ;;  %v2937_v44 = vadd.f32 1.0, %v5772_v62 }
 0x91c   : > { %v2873_v41 = vsel %vm5775_vm9, %v2870_v9, %v2867_v29  ;;  %v2946_v60 = vadd.f32 1.0, %v5785_v4  ;;  %v2934_v6 = vand.u32 2147483647, %v5764_v45  ;;  %v2949_v39 = vmul.f32 -0.5, %v5785_v4 }
 0x91d   : > { %v4165_v26 = vpop.eup %4164  ;;  %v2974_v25 = vsel %vm2805_vm7, %v5675_v19, %v2873_v41  ;;  %v2915_v43 = vmul.f32 %v5744_v11, %v2914_v54  ;;  %v2906_v2 = vmul.f32 %v5750_v36, %v2905_v15  ;;  %v2923_v3 = vadd.f32 1.0, %v2922_v34 }
 0x91e   : > { %3001 = vrot.lane.b32.xlu0 %v2974_v25, %s4252_s15  ;;  %v2894_v47 = vmul.f32 0.6931472, %v4165_v26  ;;  %4180 = vlog2.f32 %v2946_v60  ;;  %v2925_v22 = vand.u32 2147483647, %v5755_v58  ;;  %v2933_v11 = vmul.f32 %v5764_v45, %v2932_v55 }
 0x91f   : > { %v5806_v17 = vpop.eup %4166  ;;  %4182 = vlog2.f32 %v2937_v44  ;;  %vm5851_vm2 = vcmp.lt.f32.partialorder %v2934_v6, 0.0004427343  ;;  %v2940_v16 = vmul.f32 -0.5, %v5772_v62  ;;  %vm2811_vm4 = vcmp.gt.f32.partialorder %v5688_v21, 20.0 }
 0x920   : > { %v4169_v19 = vpop.eup %4168  ;;  %v2900_v61 = vsel %vm5802_vm12, %v2897_v57, %v2894_v47  ;;  %v2964_v36 = vadd.f32 1.0, %v5806_v17  ;;  %vm5867_vm3 = vcmp.lt.f32.partialorder %v2925_v22, 0.0004427343  ;;  %v2943_v34 = vand.u32 2147483647, %v5772_v62 }
 0x921   : > { %v4171_v42 = vpop.eup %4170  ;;  %v2885_v33 = vmul.f32 0.6931472, %v4169_v19  ;;  %v2977_v50 = vsel %vm2808_vm8, %v5683_v63, %v2900_v61  ;;  %v2941_v53 = vadd.f32 1.0, %v2940_v16  ;;  %vm2814_vm6 = vcmp.gt.f32.partialorder %v5714_v32, 20.0 }
 0x922   : > { %v5829_v38 = vpop.eup %4172  ;;  %v2912_v18 = vmul.f32 0.6931472, %v4171_v42  ;;  %3007 = vrot.lane.b32.xlu1 %v2977_v50, %s4252_s15  ;;  %4184 = vlog2.f32 %v2964_v36  ;;  %v2970_v61 = vand.u32 2147483647, %v5806_v17  ;;  %vm2944_vm7 = vcmp.lt.f32.partialorder %v2943_v34, 0.0004427343 }
 0x923   : > { %v2891_v52 = vsel %vm5810_vm14, %v2888_v1, %v2885_v33  ;;  %v4175_v37 = vpop.eup %4174  ;;  %v2955_v45 = vadd.f32 1.0, %v5829_v38  ;;  %v2952_v1 = vand.u32 2147483647, %v5785_v4  ;;  %v2958_v19 = vmul.f32 -0.5, %v5829_v38 }
 0x924   : > { %v2976_v27 = vsel %vm2807_vm10, %v5672_v13, %v2891_v52  ;;  %v2918_v63 = vsel %vm5816_vm0, %v2915_v43, %v2912_v18  ;;  %v4177_v8 = vpop.eup %4176  ;;  %v2903_v9 = vmul.f32 0.6931472, %v4175_v37  ;;  %v2950_v13 = vadd.f32 1.0, %v2949_v39 }
 0x925   : > { %3005 = vrot.lane.b32.xlu0 %v2976_v27, %s4252_s15  ;;  %v2979_v29 = vsel %vm2810_vm11, %v5695_v46, %v2918_v63  ;;  %v4179_v14 = vpop.eup %4178  ;;  %v2930_v20 = vmul.f32 0.6931472, %v4177_v8  ;;  %v2924_v46 = vmul.f32 %v5755_v58, %v2923_v3  ;;  %4186 = vlog2.f32 %v2955_v45 }
 0x926   : > { %3011 = vrot.lane.b32.xlu1 %v2979_v29, %s4252_s15  ;;  %v2909_v41 = vsel %vm5820_vm1, %v2906_v2, %v2903_v9  ;;  %v2921_v57 = vmul.f32 0.6931472, %v4179_v14  ;;  %v2951_v47 = vmul.f32 %v5785_v4, %v2950_v13  ;;  %vm2953_vm5 = vcmp.lt.f32.partialorder %v2952_v1, 0.0004427343 }
 0x927   : > { %v2978_v60 = vsel %vm2809_vm13, %v5680_v12, %v2909_v41  ;;  %v2936_v26 = vsel %vm5851_vm2, %v2933_v11, %v2930_v20  ;;  %v2967_v12 = vmul.f32 -0.5, %v5806_v17  ;;  %v2942_v42 = vmul.f32 %v5772_v62, %v2941_v53 }
 0x928   : > { %v4181_v28 = vpop.eup %4180  ;;  %v2981_v58 = vsel %vm2812_vm15, %v5703_v49, %v2936_v26  ;;  %v2927_v54 = vsel %vm5867_vm3, %v2924_v46, %v2921_v57  ;;  %v2959_v33 = vadd.f32 1.0, %v2958_v19  ;;  %vm2813_vm8 = vcmp.gt.f32.partialorder %v5699_v48, 20.0 }
 0x929   : > { %3009 = vrot.lane.b32.xlu0 %v2978_v60, %s4252_s15  ;;  %v2948_v15 = vmul.f32 0.6931472, %v4181_v28  ;;  %v2980_v49 = vsel %vm2811_vm4, %v5688_v21, %v2927_v54  ;;  %v4183_v59 = vpop.eup %4182  ;;  %v2968_v55 = vadd.f32 1.0, %v2967_v12  ;;  %v2961_v39 = vand.u32 2147483647, %v5829_v38 }
 0x92a   : > { %3015 = vrot.lane.b32.xlu1 %v2981_v58, %s4252_s15  ;;  %v2939_v44 = vmul.f32 0.6931472, %v4183_v59  ;;  %vm2971_vm9 = vcmp.lt.f32.partialorder %v2970_v61, 0.0004427343  ;;  %vm2816_vm10 = vcmp.gt.f32.partialorder %v5726_v0, 20.0  ;;  %v2960_v52 = vmul.f32 %v5829_v38, %v2959_v33 }
 0x92b   : > { %v2954_v10 = vsel %vm2953_vm5, %v2951_v47, %v2948_v15  ;;  %vm2962_vm11 = vcmp.lt.f32.partialorder %v2961_v39, 0.0004427343  ;;  %vm2815_vm12 = vcmp.gt.f32.partialorder %v5717_v23, 20.0 }
 0x92c   : > { %v2983_v4 = vsel %vm2814_vm6, %v5714_v32, %v2954_v10  ;;  %v4185_v6 = vpop.eup %4184  ;;  %v2945_v21 = vsel %vm2944_vm7, %v2942_v42, %v2939_v44  ;;  %v2969_v32 = vmul.f32 %v5806_v17, %v2968_v55 }
 0x92d   : > { %3013 = vrot.lane.b32.xlu0 %v2980_v49, %s4252_s15  ;;  %v2982_v50 = vsel %vm2813_vm8, %v5699_v48, %v2945_v21  ;;  %v2966_v18 = vmul.f32 0.6931472, %v4185_v6 }
 0x92e   : > { %3019 = vrot.lane.b32.xlu1 %v2983_v4, %s4252_s15 }
 0x92f   : > { %v4187_v43 = vpop.eup %4186  ;;  %v2972_v62 = vsel %vm2971_vm9, %v2969_v32, %v2966_v18 }
 0x930   : > { %v2957_v2 = vmul.f32 0.6931472, %v4187_v43  ;;  %v2985_v3 = vsel %vm2816_vm10, %v5726_v0, %v2972_v62 }
 0x931   : > { %3017 = vrot.lane.b32.xlu0 %v2982_v50, %s4252_s15 }
 0x932   : > { %3023 = vrot.lane.b32.xlu1 %v2985_v3, %s4252_s15  ;;  %v2963_v48 = vsel %vm2962_vm11, %v2960_v52, %v2957_v2 }
 0x933   : > { %v2984_v17 = vsel %vm2815_vm12, %v5717_v23, %v2963_v48 }
 0x935   : > { %3021 = vrot.lane.b32.xlu0 %v2984_v17, %s4252_s15 }
 0x93a   : > { %v1448_v22 = vpop.xlane.xlu0 %1447 }
 0x93b   : > { %v5903_v37 = vadd.f32 %v5661_v51, %v1448_v22 }
 0x93d   : > { %v3065_v27 = vmin.f32 %v5903_v37, 20.0  ;;  %vm3052_vm14 = vcmp.gt.f32.partialorder %v5903_v37, 20.0 }
 0x93f   : > { %v3078_v63 = vmul.f32 1.442695, %v3065_v27 }
 0x940   : > { %v1451_v38 = vpop.xlane.xlu1 %1450 }
 0x941   : > { %4188 = vpow2.f32 %v3078_v63  ;;  %v5907_v0 = vadd.f32 %v5661_v51, %v1451_v38 }
 0x943   : > { %v3066_v11 = vmin.f32 %v5907_v0, 20.0  ;;  %vm3053_vm15 = vcmp.gt.f32.partialorder %v5907_v0, 20.0 }
 0x944   : > { %v1454_v36 = vpop.xlane.xlu0 %1453 }
 0x945   : > { %v3080_v8 = vmul.f32 1.442695, %v3066_v11  ;;  %v1457_v29 = vpop.xlane.xlu1 %1456  ;;  %v5911_v23 = vadd.f32 %v5661_v51, %v1454_v36 }
 0x946   : > { %v5914_v9 = vadd.f32 %v5661_v51, %v1457_v29 }
 0x947   : > { %4190 = vpow2.f32 %v3080_v8  ;;  %v3067_v7 = vmin.f32 %v5911_v23, 20.0  ;;  %vm3054_vm1 = vcmp.gt.f32.partialorder %v5911_v23, 20.0 }
 0x948   : > { %v3068_v13 = vmin.f32 %v5914_v9, 20.0  ;;  %v1460_v14 = vpop.xlane.xlu0 %1459  ;;  %vm3055_vm0 = vcmp.gt.f32.partialorder %v5914_v9, 20.0 }
 0x949   : > { %v3082_v20 = vmul.f32 1.442695, %v3067_v7  ;;  %v1463_v16 = vpop.xlane.xlu1 %1462  ;;  %v5919_v45 = vadd.f32 %v5661_v51, %v1460_v14 }
 0x94a   : > { %v3084_v41 = vmul.f32 1.442695, %v3068_v13  ;;  %v5922_v57 = vadd.f32 %v5661_v51, %v1463_v16 }
 0x94b   : > { %v4189_v46 = vpop.eup %4188  ;;  %4192 = vpow2.f32 %v3082_v20  ;;  %v3069_v1 = vmin.f32 %v5919_v45, 20.0  ;;  %vm3056_vm5 = vcmp.gt.f32.partialorder %v5919_v45, 20.0 }
 0x94c   : > { %4194 = vpow2.f32 %v3084_v41  ;;  %v3070_v60 = vmin.f32 %v5922_v57, 20.0  ;;  %v1466_v26 = vpop.xlane.xlu0 %1465  ;;  %v3104_v25 = vadd.f32 1.0, %v4189_v46  ;;  %v3107_v59 = vmul.f32 -0.5, %v4189_v46 }
 0x94d   : > { %v3086_v28 = vmul.f32 1.442695, %v3069_v1  ;;  %v1469_v58 = vpop.xlane.xlu1 %1468  ;;  %v5927_v54 = vadd.f32 %v5661_v51, %v1466_v26  ;;  %v3110_v43 = vand.u32 2147483647, %v4189_v46  ;;  %vm3057_vm6 = vcmp.gt.f32.partialorder %v5922_v57, 20.0 }
 0x94e   : > { %v3088_v12 = vmul.f32 1.442695, %v3070_v60  ;;  %v5930_v15 = vadd.f32 %v5661_v51, %v1469_v58  ;;  %4196 = vlog2.f32 %v3104_v25  ;;  %v3108_v50 = vadd.f32 1.0, %v3107_v59 }
 0x94f   : > { %v3071_v47 = vmin.f32 %v5927_v54, 20.0  ;;  %vm3111_vm13 = vcmp.lt.f32.partialorder %v3110_v43, 0.0004427343  ;;  %vm3058_vm8 = vcmp.gt.f32.partialorder %v5927_v54, 20.0 }
 0x950   : > { %4198 = vpow2.f32 %v3088_v12  ;;  %v3072_v53 = vmin.f32 %v5930_v15, 20.0  ;;  %v1472_v34 = vpop.xlane.xlu0 %1471  ;;  %v3109_v63 = vmul.f32 %v4189_v46, %v3108_v50  ;;  %vm3059_vm7 = vcmp.gt.f32.partialorder %v5930_v15, 20.0 }
 0x951   : > { %v4191_v19 = vpop.eup %4190  ;;  %4200 = vpow2.f32 %v3086_v28  ;;  %v1475_v49 = vpop.xlane.xlu1 %1474  ;;  %v5935_v10 = vadd.f32 %v5661_v51, %v1472_v34  ;;  %v3090_v55 = vmul.f32 1.442695, %v3071_v47 }
 0x952   : > { %v3092_v4 = vmul.f32 1.442695, %v3072_v53  ;;  %v5938_v44 = vadd.f32 %v5661_v51, %v1475_v49  ;;  %v3113_v42 = vadd.f32 1.0, %v4191_v19  ;;  %v3116_v17 = vmul.f32 -0.5, %v4191_v19 }
 0x953   : > { %v3073_v33 = vmin.f32 %v5935_v10, 20.0  ;;  %v3119_v13 = vand.u32 2147483647, %v4191_v19 }
 0x954   : > { %4202 = vpow2.f32 %v3092_v4  ;;  %v3074_v61 = vmin.f32 %v5938_v44, 20.0  ;;  %v1478_v6 = vpop.xlane.xlu0 %1477  ;;  %v3117_v7 = vadd.f32 1.0, %v3116_v17 }
 0x955   : > { %v5942_v21 = vpop.eup %4192  ;;  %v5945_v39 = vadd.f32 %v5661_v51, %v1478_v6  ;;  %4204 = vlog2.f32 %v3113_v42  ;;  %v3094_v48 = vmul.f32 1.442695, %v3073_v33  ;;  %vm3120_vm2 = vcmp.lt.f32.partialorder %v3119_v13, 0.0004427343 }
 0x956   : > { %v4195_v18 = vpop.eup %4194  ;;  %4206 = vpow2.f32 %v3090_v55  ;;  %v3096_v32 = vmul.f32 1.442695, %v3074_v61  ;;  %v3122_v62 = vadd.f32 1.0, %v5942_v21  ;;  %v3125_v14 = vmul.f32 -0.5, %v5942_v21 }
 0x957   : > { %v3075_v2 = vmin.f32 %v5945_v39, 20.0  ;;  %v3131_v52 = vadd.f32 1.0, %v4195_v18  ;;  %v3134_v8 = vmul.f32 -0.5, %v4195_v18  ;;  %v3118_v25 = vmul.f32 %v4191_v19, %v3117_v7 }
 0x958   : > { %v4197_v3 = vpop.eup %4196  ;;  %4208 = vpow2.f32 %v3096_v32  ;;  %v3137_v28 = vand.u32 2147483647, %v4195_v18  ;;  %v3126_v58 = vadd.f32 1.0, %v3125_v14  ;;  %v3128_v12 = vand.u32 2147483647, %v5942_v21 }
 0x959   : > { %v3098_v22 = vmul.f32 1.442695, %v3075_v2  ;;  %v3106_v27 = vmul.f32 0.6931472, %v4197_v3  ;;  %4210 = vlog2.f32 %v3131_v52  ;;  %v3135_v1 = vadd.f32 1.0, %v3134_v8 }
 0x95a   : > { %v5949_v38 = vpop.eup %4198  ;;  %4212 = vlog2.f32 %v3122_v62  ;;  %vm3138_vm3 = vcmp.lt.f32.partialorder %v3137_v28, 0.0004427343  ;;  %v3127_v43 = vmul.f32 %v5942_v21, %v3126_v58  ;;  %vm3129_vm4 = vcmp.lt.f32.partialorder %v3128_v12, 0.0004427343 }
 0x95b   : > { %v5951_v11 = vpop.eup %4200  ;;  %v3112_v36 = vsel %vm3111_vm13, %v3109_v63, %v3106_v27  ;;  %4214 = vpow2.f32 %v3094_v48  ;;  %v3149_v20 = vadd.f32 1.0, %v5949_v38  ;;  %v3152_v49 = vmul.f32 -0.5, %v5949_v38 }
 0x95c   : > { %v3221_v29 = vsel %vm3052_vm14, %v5903_v37, %v3112_v36  ;;  %4216 = vpow2.f32 %v3098_v22  ;;  %v3140_v41 = vadd.f32 1.0, %v5951_v11  ;;  %v1481_v37 = vpop.xlane.xlu1 %1480  ;;  %v3136_v55 = vmul.f32 %v4195_v18, %v3135_v1 }
 0x95d   : > { %3247 = vrot.lane.b32.xlu0 %v3221_v29, %s4252_s15  ;;  %4218 = vlog2.f32 %v3149_v20  ;;  %v5970_v53 = vadd.f32 %v5661_v51, %v1481_v37  ;;  %v3143_v42 = vmul.f32 -0.5, %v5951_v11  ;;  %v3155_v50 = vand.u32 2147483647, %v5949_v38  ;;  %v1484_v29 = vpop.xlane.xlu0 %1483 }
 0x95e   : > { %v5958_v16 = vpop.eup %4202  ;;  %4220 = vlog2.f32 %v3140_v41  ;;  %v3153_v18 = vadd.f32 1.0, %v3152_v49  ;;  %vm3061_vm14 = vcmp.gt.f32.partialorder %v5938_v44, 20.0 }
 0x95f   : > { %v4205_v46 = vpop.eup %4204  ;;  %v3167_v59 = vadd.f32 1.0, %v5958_v16  ;;  %v3170_v2 = vmul.f32 -0.5, %v5958_v16  ;;  %v3144_v21 = vadd.f32 1.0, %v3143_v42  ;;  %v3076_v63 = vmin.f32 %v5970_v53, 20.0 }
 0x960   : > { %v5964_v60 = vpop.eup %4206  ;;  %v3115_v26 = vmul.f32 0.6931472, %v4205_v46  ;;  %v3154_v7 = vmul.f32 %v5949_v38, %v3153_v18  ;;  %vm6005_vm9 = vcmp.lt.f32.partialorder %v3155_v50, 0.0004427343  ;;  %v6014_v38 = vadd.f32 %v5661_v51, %v1484_v29 }
 0x961   : > { %v3158_v61 = vadd.f32 1.0, %v5964_v60  ;;  %4222 = vlog2.f32 %v3167_v59  ;;  %v3161_v27 = vmul.f32 -0.5, %v5964_v60  ;;  %v3171_v13 = vadd.f32 1.0, %v3170_v2 }
 0x962   : > { %v5967_v47 = vpop.eup %4208  ;;  %v3121_v34 = vsel %vm3120_vm2, %v3118_v25, %v3115_v26  ;;  %v3145_v46 = vmul.f32 %v5951_v11, %v3144_v21  ;;  %v3173_v26 = vand.u32 2147483647, %v5958_v16  ;;  %v3164_v58 = vand.u32 2147483647, %v5964_v60 }
 0x963   : > { %v4211_v4 = vpop.eup %4210  ;;  %v3222_v19 = vsel %vm3053_vm15, %v5907_v0, %v3121_v34  ;;  %4224 = vlog2.f32 %v3158_v61  ;;  %v3185_v52 = vadd.f32 1.0, %v5967_v47  ;;  %v3188_v37 = vmul.f32 -0.5, %v5967_v47 }
 0x964   : > { %v4213_v33 = vpop.eup %4212  ;;  %3249 = vrot.lane.b32.xlu1 %v3222_v19, %s4252_s15  ;;  %v3133_v6 = vmul.f32 0.6931472, %v4211_v4  ;;  %v3162_v25 = vadd.f32 1.0, %v3161_v27  ;;  %v3172_v49 = vmul.f32 %v5958_v16, %v3171_v13  ;;  %vm3174_vm11 = vcmp.lt.f32.partialorder %v3173_v26, 0.0004427343 }
 0x965   : > { %v3124_v32 = vmul.f32 0.6931472, %v4213_v33  ;;  %v5982_v62 = vpop.eup %4214  ;;  %4226 = vlog2.f32 %v3185_v52  ;;  %v3191_v33 = vand.u32 2147483647, %v5967_v47  ;;  %v3077_v50 = vmin.f32 %v6014_v38, 20.0 }
 0x966   : > { %v3139_v0 = vsel %vm3138_vm3, %v3136_v55, %v3133_v6  ;;  %v5986_v3 = vpop.eup %4216  ;;  %v3176_v36 = vadd.f32 1.0, %v5982_v62  ;;  %v3179_v59 = vmul.f32 -0.5, %v5982_v62  ;;  %v3189_v55 = vadd.f32 1.0, %v3188_v37 }
 0x967   : > { %v3224_v48 = vsel %vm3055_vm0, %v5914_v9, %v3139_v0  ;;  %v3130_v17 = vsel %vm3129_vm4, %v3127_v43, %v3124_v32  ;;  %v3146_v9 = vand.u32 2147483647, %v5951_v11  ;;  %v4219_v8 = vpop.eup %4218  ;;  %v3194_v14 = vadd.f32 1.0, %v5986_v3  ;;  %v3462_v43 = vld [vmem:[%s6249_s13 + $0x1] ss:$0 sm:$0xff] }
 0x968   : > { %3253 = vrot.lane.b32.xlu1 %v3224_v48, %s4252_s15  ;;  %v3223_v22 = vsel %vm3054_vm1, %v5911_v23, %v3130_v17  ;;  %v4221_v20 = vpop.eup %4220  ;;  %v3151_v41 = vmul.f32 0.6931472, %v4219_v8  ;;  %4228 = vlog2.f32 %v3176_v36  ;;  %v3197_v42 = vmul.f32 -0.5, %v5986_v3 }
 0x969   : > { %3251 = vrot.lane.b32.xlu0 %v3223_v22, %s4252_s15  ;;  %v3142_v1 = vmul.f32 0.6931472, %v4221_v20  ;;  %4230 = vlog2.f32 %v3194_v14  ;;  %vm3147_vm10 = vcmp.lt.f32.partialorder %v3146_v9, 0.0004427343  ;;  %v3163_v61 = vmul.f32 %v5964_v60, %v3162_v25 }
 0x96a   : > { %v3157_v28 = vsel %vm6005_vm9, %v3154_v7, %v3151_v41  ;;  %v3100_v6 = vmul.f32 1.442695, %v3076_v63  ;;  %vm3165_vm12 = vcmp.lt.f32.partialorder %v3164_v58, 0.0004427343  ;;  %v3180_v2 = vadd.f32 1.0, %v3179_v59 }
 0x96b   : > { %v4223_v12 = vpop.eup %4222  ;;  %v3226_v11 = vsel %vm3057_vm6, %v5922_v57, %v3157_v28  ;;  %v3148_v34 = vsel %vm3147_vm10, %v3145_v46, %v3142_v1  ;;  %v3406_v57 = vld [vmem:[%s6249_s13] ss:$0 sm:$0xff]  ;;  %v3182_v60 = vand.u32 2147483647, %v5982_v62  ;;  %v3190_v17 = vmul.f32 %v5967_v47, %v3189_v55 }
 0x96c   : > { %3257 = vrot.lane.b32.xlu1 %v3226_v11, %s4252_s15  ;;  %v3225_v51 = vsel %vm3056_vm5, %v5919_v45, %v3148_v34  ;;  %v3169_v19 = vmul.f32 0.6931472, %v4223_v12  ;;  %v3198_v21 = vadd.f32 1.0, %v3197_v42  ;;  %vm3192_vm13 = vcmp.lt.f32.partialorder %v3191_v33, 0.0004427343 }
 0x96d   : > { %v4225_v4 = vpop.eup %4224  ;;  %3255 = vrot.lane.b32.xlu0 %v3225_v51, %s4252_s15  ;;  %v3200_v22 = vand.u32 2147483647, %v5986_v3  ;;  %v6050_v27 = vadd.f32 %v3462_v43, %v3406_v57  ;;  %4232 = vpow2.f32 %v3100_v6  ;;  %v3181_v8 = vmul.f32 %v5982_v62, %v3180_v2 }
 0x96e   : > { %v3160_v16 = vmul.f32 0.6931472, %v4225_v4  ;;  %v3175_v45 = vsel %vm3174_vm11, %v3172_v49, %v3169_v19  ;;  %v3102_v47 = vmul.f32 1.442695, %v3077_v50  ;;  %vm3183_vm15 = vcmp.lt.f32.partialorder %v3182_v60, 0.0004427343 }
 0x96f   : > { %v4227_v32 = vpop.eup %4226  ;;  %v3228_v0 = vsel %vm3059_vm7, %v5930_v15, %v3175_v45  ;;  %v3199_v7 = vmul.f32 %v5986_v3, %v3198_v21  ;;  %vm3060_vm0 = vcmp.gt.f32.partialorder %v5935_v10, 20.0  ;;  %vm3201_vm1 = vcmp.lt.f32.partialorder %v3200_v22, 0.0004427343 }
 0x970   : > { %v3166_v18 = vsel %vm3165_vm12, %v3163_v61, %v3160_v16  ;;  %3261 = vrot.lane.b32.xlu1 %v3228_v0, %s4252_s15  ;;  %v3187_v48 = vmul.f32 0.6931472, %v4227_v32  ;;  %v3921_v13 = vadd.f32 %v6050_v27, %v5705_v30  ;;  %vm3062_vm2 = vcmp.gt.f32.partialorder %v5945_v39, 20.0 }
 0x971   : > { %v3227_v52 = vsel %vm3058_vm8, %v5927_v54, %v3166_v18  ;;  %4234 = vpow2.f32 %v3102_v47  ;;  %v3925_v3 = vadd.f32 %v6050_v27, %v5732_v24  ;;  %v3923_v30 = vadd.f32 %v6050_v27, %v5709_v35 }
 0x972   : > { %3259 = vrot.lane.b32.xlu0 %v3227_v52, %s4252_s15  ;;  %v4229_v15 = vpop.eup %4228  ;;  %v3193_v63 = vsel %vm3192_vm13, %v3190_v17, %v3187_v48  ;;  %v3929_v24 = vadd.f32 %v6050_v27, %v5768_v31  ;;  %v3931_v26 = vadd.f32 %v6050_v27, %v5780_v56  ;;  %vm3063_vm4 = vcmp.gt.f32.partialorder %v5970_v53, 20.0 }
 0x973   : > { %v4231_v9 = vpop.eup %4230  ;;  %v3230_v36 = vsel %vm3061_vm14, %v5938_v44, %v3193_v63  ;;  %v3178_v54 = vmul.f32 0.6931472, %v4229_v15  ;;  %vm3064_vm6 = vcmp.gt.f32.partialorder %v6014_v38, 20.0  ;;  %vm2790_vm7 = vcmask 523520  }
 0x974   : > { %3265 = vrot.lane.b32.xlu1 %v3230_v36, %s4252_s15  ;;  %v3196_v29 = vmul.f32 0.6931472, %v4231_v9  ;;  %vm3038_vm8 = vcmask 531968   ;;  %vm3286_vm9 = vcmask 540168   ;;  %vm3300_vm10 = vcmask 1048080  }
 0x975   : > { %v3184_v23 = vsel %vm3183_vm15, %v3181_v8, %v3178_v54 }
 0x976   : > { %v3229_v14 = vsel %vm3060_vm0, %v5935_v10, %v3184_v23  ;;  %v3202_v44 = vsel %vm3201_vm1, %v3199_v7, %v3196_v29  ;;  %v3927_v10 = vadd.f32 %v6050_v27, %v5740_v40 }
 0x977   : > { %3263 = vrot.lane.b32.xlu0 %v3229_v14, %s4252_s15  ;;  %v3231_v62 = vsel %vm3062_vm2, %v5945_v39, %v3202_v44  ;;  %v4233_v20 = vpop.eup %4232 }
 0x978   : > { %2751 = vrot.lane.b32.xlu1 %v3921_v13, %s4253_s21  ;;  %v3203_v46 = vadd.f32 1.0, %v4233_v20  ;;  %v3206_v49 = vmul.f32 -0.5, %v4233_v20  ;;  %v3209_v19 = vand.u32 2147483647, %v4233_v20 }
 0x97a   : > { %4236 = vlog2.f32 %v3203_v46  ;;  %v3207_v4 = vadd.f32 1.0, %v3206_v49  ;;  %vm3210_vm3 = vcmp.lt.f32.partialorder %v3209_v19, 0.0004427343 }
 0x97b   : > { %3267 = vrot.lane.b32.xlu0 %v3231_v62, %s4252_s15  ;;  %v4235_v1 = vpop.eup %4234 }
 0x97c   : > { %2755 = vrot.lane.b32.xlu1 %v3925_v3, %s4253_s21  ;;  %v3212_v28 = vadd.f32 1.0, %v4235_v1  ;;  %v3215_v16 = vmul.f32 -0.5, %v4235_v1  ;;  %v3208_v50 = vmul.f32 %v4233_v20, %v3207_v4  ;;  %v3218_v0 = vand.u32 2147483647, %v4235_v1 }
 0x97e   : > { %4238 = vlog2.f32 %v3212_v28  ;;  %v3216_v43 = vadd.f32 1.0, %v3215_v16  ;;  %vm3219_vm5 = vcmp.lt.f32.partialorder %v3218_v0, 0.0004427343 }
 0x97f   : > { %2753 = vrot.lane.b32.xlu0 %v3923_v30, %s4253_s21 }
 0x980   : > { %2757 = vrot.lane.b32.xlu1 %v3927_v10, %s4253_s21  ;;  %v3217_v17 = vmul.f32 %v4235_v1, %v3216_v43 }
 0x982   : > { %v2682_v41 = vpop.f32.mrb[40].mxu1 }
 0x983   : > { %v3883_v39 = vpop.f32.mrb[41].mxu1  ;;  %2759 = vrot.lane.b32.xlu0 %v3929_v24, %s4253_s21  ;;  %v3933_v35 = vadd.f32 %v6050_v27, %v2682_v41 }
 0x984   : > { %v2685_v37 = vpop.f32.mrb[42].mxu1  ;;  %2761 = vrot.lane.b32.xlu1 %v3931_v26, %s4253_s21  ;;  %v4237_v59 = vpop.eup %4236 }
 0x985   : > { %v3884_v25 = vpop.f32.mrb[43].mxu1  ;;  %v3935_v40 = vadd.f32 %v6050_v27, %v2685_v37  ;;  %v3205_v57 = vmul.f32 0.6931472, %v4237_v59  ;;  %v3000_v9 = vpop.permute.xlu1 %2999 }
 0x987   : > { %2763 = vrot.lane.b32.xlu0 %v3933_v35, %s4253_s21  ;;  %v3211_v32 = vsel %vm3210_vm3, %v3208_v50, %v3205_v57 }
 0x988   : > { %2765 = vrot.lane.b32.xlu1 %v3935_v40, %s4253_s21  ;;  %v4239_v45 = vpop.eup %4238  ;;  %v3232_v60 = vsel %vm3063_vm4, %v5970_v53, %v3211_v32 }
 0x989   : > { %v3214_v18 = vmul.f32 0.6931472, %v4239_v45  ;;  %v3004_v53 = vpop.permute.xlu1 %3003 }
 0x98a   : > { %v2690_v58 = vpop.f32.mrb[44].mxu1 }
 0x98b   : > { %v3937_v31 = vadd.f32 %v6050_v27, %v2690_v58  ;;  %v3887_v12 = vpop.f32.mrb[45].mxu1  ;;  %v3220_v15 = vsel %vm3219_vm5, %v3217_v17, %v3214_v18 }
 0x98c   : > { %v2693_v56 = vpop.f32.mrb[46].mxu1  ;;  %v3233_v63 = vsel %vm3064_vm6, %v6014_v38, %v3220_v15 }
 0x98d   : > { %v3939_v11 = vadd.f32 %v6050_v27, %v2693_v56  ;;  %v3888_v34 = vpop.f32.mrb[47].mxu1  ;;  %2767 = vrot.lane.b32.xlu0 %v3937_v31, %s4253_s21 }
 0x98f   : > { %2769 = vrot.lane.b32.xlu1 %v3939_v11, %s4253_s21 }
 0x990   : > { %v3002_v36 = vpop.permute.xlu0 %3001 }
 0x992   : > { %v2698_v51 = vpop.f32.mrb[48].mxu1 }
 0x993   : > { %v3941_v55 = vadd.f32 %v6050_v27, %v2698_v51  ;;  %v3891_v42 = vpop.f32.mrb[49].mxu1 }
 0x994   : > { %v2701_v61 = vpop.f32.mrb[50].mxu1 }
 0x995   : > { %v3943_v33 = vadd.f32 %v6050_v27, %v2701_v61  ;;  %v3892_v6 = vpop.f32.mrb[51].mxu1  ;;  %2771 = vrot.lane.b32.xlu0 %v3941_v55, %s4253_s21 }
 0x997   : > { %2773 = vrot.lane.b32.xlu1 %v3943_v33, %s4253_s21  ;;  %v3006_v54 = vpop.permute.xlu0 %3005 }
 0x99a   : > { %v2706_v2 = vpop.f32.mrb[52].mxu1 }
 0x99b   : > { %v3945_v52 = vadd.f32 %v6050_v27, %v2706_v2  ;;  %v3895_v48 = vpop.f32.mrb[53].mxu1  ;;  %3269 = vrot.lane.b32.xlu1 %v3232_v60, %s4252_s15  ;;  %v3008_v27 = vpop.permute.xlu1 %3007 }
 0x99c   : > { %v2709_v21 = vpop.f32.mrb[54].mxu1  ;;  %v3010_v47 = vpop.permute.xlu0 %3009 }
 0x99d   : > { %v3896_v22 = vpop.f32.mrb[55].mxu1  ;;  %2775 = vrot.lane.b32.xlu0 %v3945_v52, %s4253_s21 }
 0x99f   : > { %v3012_v8 = vpop.permute.xlu1 %3011 }
 0x9a0   : > { %v3014_v7 = vpop.permute.xlu0 %3013 }
 0x9a1   : > { %3271 = vrot.lane.b32.xlu0 %v3233_v63, %s4252_s15 }
 0x9a3   : > { %v6101_v29 = vpop.permute.xlu1 %3015 }
 0x9a4   : > { %v6105_v13 = vpop.permute.xlu0 %3017 }
 0x9a7   : > { %v6103_v23 = vpop.permute.xlu1 %3019 }
 0x9a8   : > { %v6109_v44 = vpop.permute.xlu0 %3021 }
 0x9ab   : > { %v6107_v14 = vpop.permute.xlu1 %3023 }
 0x9cf   : > { %v3248_v62 = vpop.permute.xlu0 %3247 }
 0x9d6   : > { %v3250_v38 = vpop.permute.xlu1 %3249 }
 0x9da   : > { %v3254_v3 = vpop.permute.xlu1 %3253 }
 0x9db   : > { %v3252_v20 = vpop.permute.xlu0 %3251 }
 0x9de   : > { %v3258_v30 = vpop.permute.xlu1 %3257 }
 0x9df   : > { %v3256_v10 = vpop.permute.xlu0 %3255 }
 0x9e2   : > { %v3262_v41 = vpop.permute.xlu1 %3261 }
 0x9e4   : > { %v3260_v46 = vpop.permute.xlu0 %3259 }
 0x9e6   : > { %v3266_v39 = vpop.permute.xlu1 %3265 }
 0x9e9   : > { %v3264_v24 = vpop.permute.xlu0 %3263 }
 0x9ea   : > { %v2752_v37 = vpop.permute.xlu1 %2751 }
 0x9eb   : > { %2791 = vst.msk [vmem:[%s4631_s16] sm:$0xff] %vm2790_vm7, %v2752_v37 }
 0x9ec   : > { %3039 = vst.msk [vmem:[%s4631_s16] sm:$0xff] %vm3038_vm8, %v3000_v9 }
 0x9ed   : > { %3287 = vst.msk [vmem:[%s4631_s16] sm:$0xff] %vm3286_vm9, %v3248_v62  ;;  %v3268_v1 = vpop.permute.xlu0 %3267 }
 0x9ee   : > { %3301 = vst.msk [vmem:[%s4631_s16] sm:$0xff] %vm3300_vm10, %v4249_v5  ;;  %v2756_v26 = vpop.permute.xlu1 %2755 }
 0x9ef   : > { %2793 = vst.msk [vmem:[%s4631_s16 + $0x10] sm:$0xff] %vm2790_vm7, %v2756_v26 }
 0x9f0   : > { %3041 = vst.msk [vmem:[%s4631_s16 + $0x10] sm:$0xff] %vm3038_vm8, %v3004_v53 }
 0x9f1   : > { %3289 = vst.msk [vmem:[%s4631_s16 + $0x10] sm:$0xff] %vm3286_vm9, %v3252_v20  ;;  %v2754_v25 = vpop.permute.xlu0 %2753 }
 0x9f2   : > { %3303 = vst.msk [vmem:[%s4631_s16 + $0x10] sm:$0xff] %vm3300_vm10, %v4249_v5  ;;  %v2758_v35 = vpop.permute.xlu1 %2757 }
 0x9f3   : > { %2792 = vst.msk [vmem:[%s4631_s16 + $0x8] sm:$0xff] %vm2790_vm7, %v2754_v25  ;;  %2794 = vst.msk [vmem:[%s4631_s16 + $0x18] sm:$0xff] %vm2790_vm7, %v2758_v35 }
 0x9f4   : > { %3040 = vst.msk [vmem:[%s4631_s16 + $0x8] sm:$0xff] %vm3038_vm8, %v3002_v36  ;;  %3042 = vst.msk [vmem:[%s4631_s16 + $0x18] sm:$0xff] %vm3038_vm8, %v3006_v54 }
 0x9f5   : > { %3288 = vst.msk [vmem:[%s4631_s16 + $0x8] sm:$0xff] %vm3286_vm9, %v3250_v38  ;;  %3290 = vst.msk [vmem:[%s4631_s16 + $0x18] sm:$0xff] %vm3286_vm9, %v3254_v3  ;;  %v2760_v40 = vpop.permute.xlu0 %2759 }
 0x9f6   : > { %3302 = vst.msk [vmem:[%s4631_s16 + $0x8] sm:$0xff] %vm3300_vm10, %v4249_v5  ;;  %3304 = vst.msk [vmem:[%s4631_s16 + $0x18] sm:$0xff] %vm3300_vm10, %v4249_v5  ;;  %v2762_v28 = vpop.permute.xlu1 %2761 }
 0x9f7   : > { %2795 = vst.msk [vmem:[%s4631_s16 + $0x20] sm:$0xff] %vm2790_vm7, %v2760_v40  ;;  %2796 = vst.msk [vmem:[%s4631_s16 + $0x28] sm:$0xff] %vm2790_vm7, %v2762_v28 }
 0x9f8   : > { %3043 = vst.msk [vmem:[%s4631_s16 + $0x20] sm:$0xff] %vm3038_vm8, %v3008_v27  ;;  %3044 = vst.msk [vmem:[%s4631_s16 + $0x28] sm:$0xff] %vm3038_vm8, %v3010_v47 }
 0x9f9   : > { %3291 = vst.msk [vmem:[%s4631_s16 + $0x20] sm:$0xff] %vm3286_vm9, %v3256_v10  ;;  %3292 = vst.msk [vmem:[%s4631_s16 + $0x28] sm:$0xff] %vm3286_vm9, %v3258_v30  ;;  %v2764_v58 = vpop.permute.xlu0 %2763 }
 0x9fa   : > { %3305 = vst.msk [vmem:[%s4631_s16 + $0x20] sm:$0xff] %vm3300_vm10, %v4249_v5  ;;  %3306 = vst.msk [vmem:[%s4631_s16 + $0x28] sm:$0xff] %vm3300_vm10, %v4249_v5  ;;  %v2766_v31 = vpop.permute.xlu1 %2765 }
 0x9fb   : > { %2797 = vst.msk [vmem:[%s4631_s16 + $0x30] sm:$0xff] %vm2790_vm7, %v2764_v58  ;;  %2798 = vst.msk [vmem:[%s4631_s16 + $0x38] sm:$0xff] %vm2790_vm7, %v2766_v31 }
 0x9fc   : > { %3045 = vst.msk [vmem:[%s4631_s16 + $0x30] sm:$0xff] %vm3038_vm8, %v3012_v8  ;;  %3046 = vst.msk [vmem:[%s4631_s16 + $0x38] sm:$0xff] %vm3038_vm8, %v3014_v7 }
 0x9fd   : > { %3293 = vst.msk [vmem:[%s4631_s16 + $0x30] sm:$0xff] %vm3286_vm9, %v3260_v46  ;;  %3294 = vst.msk [vmem:[%s4631_s16 + $0x38] sm:$0xff] %vm3286_vm9, %v3262_v41 }
 0x9fe   : > { %3307 = vst.msk [vmem:[%s4631_s16 + $0x30] sm:$0xff] %vm3300_vm10, %v4249_v5  ;;  %3308 = vst.msk [vmem:[%s4631_s16 + $0x38] sm:$0xff] %vm3300_vm10, %v4249_v5 }
 0x9ff   : > { %v2768_v12 = vpop.permute.xlu0 %2767 }
 0xa00   : > { %2799 = vst.msk [vmem:[%s4631_s16 + $0x40] sm:$0xff] %vm2790_vm7, %v2768_v12 }
 0xa01   : > { %v2770_v56 = vpop.permute.xlu1 %2769  ;;  %3047 = vst.msk [vmem:[%s4631_s16 + $0x40] sm:$0xff] %vm3038_vm8, %v6101_v29 }
 0xa02   : > { %2800 = vst.msk [vmem:[%s4631_s16 + $0x48] sm:$0xff] %vm2790_vm7, %v2770_v56 }
 0xa03   : > { %3295 = vst.msk [vmem:[%s4631_s16 + $0x40] sm:$0xff] %vm3286_vm9, %v3264_v24 }
 0xa04   : > { %3048 = vst.msk [vmem:[%s4631_s16 + $0x48] sm:$0xff] %vm3038_vm8, %v6105_v13 }
 0xa05   : > { %3309 = vst.msk [vmem:[%s4631_s16 + $0x40] sm:$0xff] %vm3300_vm10, %v4249_v5 }
 0xa06   : > { %3296 = vst.msk [vmem:[%s4631_s16 + $0x48] sm:$0xff] %vm3286_vm9, %v3266_v39 }
 0xa07   : > { %3310 = vst.msk [vmem:[%s4631_s16 + $0x48] sm:$0xff] %vm3300_vm10, %v4249_v5  ;;  %v2772_v11 = vpop.permute.xlu0 %2771 }
 0xa08   : > { %2801 = vst.msk [vmem:[%s4631_s16 + $0x50] sm:$0xff] %vm2790_vm7, %v2772_v11 }
 0xa09   : > { %3049 = vst.msk [vmem:[%s4631_s16 + $0x50] sm:$0xff] %vm3038_vm8, %v6103_v23  ;;  %v2774_v34 = vpop.permute.xlu1 %2773 }
 0xa0a   : > { %3297 = vst.msk [vmem:[%s4631_s16 + $0x50] sm:$0xff] %vm3286_vm9, %v3268_v1 }
 0xa0b   : > { %2802 = vst.msk [vmem:[%s4631_s16 + $0x58] sm:$0xff] %vm2790_vm7, %v2774_v34 }
 0xa0c   : > { %3311 = vst.msk [vmem:[%s4631_s16 + $0x50] sm:$0xff] %vm3300_vm10, %v4249_v5 }
 0xa0d   : > { %3050 = vst.msk [vmem:[%s4631_s16 + $0x58] sm:$0xff] %vm3038_vm8, %v6109_v44  ;;  %v3270_v49 = vpop.permute.xlu1 %3269 }
 0xa0e   : > { %3298 = vst.msk [vmem:[%s4631_s16 + $0x58] sm:$0xff] %vm3286_vm9, %v3270_v49 }
 0xa0f   : > { %3312 = vst.msk [vmem:[%s4631_s16 + $0x58] sm:$0xff] %vm3300_vm10, %v4249_v5  ;;  %v2776_v59 = vpop.permute.xlu0 %2775 }
 0xa10   : > { %2803 = vst.msk [vmem:[%s4631_s16 + $0x60] sm:$0xff] %vm2790_vm7, %v2776_v59 }
 0xa11   : > { %3051 = vst.msk [vmem:[%s4631_s16 + $0x60] sm:$0xff] %vm3038_vm8, %v6107_v14 }
 0xa13   : > { %v3272_v4 = vpop.permute.xlu0 %3271 }
 0xa14   : > { %3299 = vst.msk [vmem:[%s4631_s16 + $0x60] sm:$0xff] %vm3286_vm9, %v3272_v4 }
 0xa15   : > { %3313 = vst.msk [vmem:[%s4631_s16 + $0x60] sm:$0xff] %vm3300_vm10, %v4249_v5 }
 0xa16 PF: > { %s24_s29 = sadd.s32 1, %s4246_s29  }
 0xa17   : > { %p21_p4 = scmp.ge.s32.totalorder %s24_s29, 4  }
 0xa19   :  { %23 = sbr.rel (!%p21_p4) target bundleno = 1 (0x1), region = 106 }

</bundles_post_ra>
